<compile_context>
chip_gen: v7x
topology: tpu7x:2x2x1
jax: 0.10.0
libtpu: 0.0.40
codegen_flags: <defaults>
</compile_context>

<pallas_src>
import jax
import jax.numpy as jnp
from jax import lax
from jax.experimental import pallas as pl
from jax.experimental.pallas import tpu as pltpu


def _subpixel_conv3x3_kernel(x_ref, w_ref, b_ref, o_ref):
    """One (batch, row-tile) grid step.

    x_ref: (1, H+2, W+2, Cin)     zero-padded 1x-resolution NHWC input
                                  (kept resident across the row-tile axis)
    w_ref: (4, 4, Cin, Cout)      packed weights [2*di+dj, 2*r2+c2, cin, cout]
    b_ref: (1, Cout)              bias (f32)
    o_ref: (1, TH, 2, W, 2*Cout)  output tile, [i, di, j, dj*Cout + co];
                                  becomes y[2i+di, 2j+dj, co] via a free reshape.
    """
    TH = o_ref.shape[1]
    W = o_ref.shape[3]
    Cout = o_ref.shape[4] // 2
    Cin = x_ref.shape[3]

    r = pl.program_id(1)
    row0 = pl.multiple_of(r * TH, TH)
    xt = x_ref[0, pl.ds(row0, TH + 2)]                    # (TH+2, W+2, Cin), 1-row halo

    # The 9 shifted 1x-res views, flattened for the MXU, built ONCE per tile.
    views = {}
    for dr in range(3):
        for dc in range(3):
            views[(dr, dc)] = xt[dr:dr + TH, dc:dc + W, :].reshape(TH * W, Cin)

    # Bias broadcast hoisted out of the subpixel loop.
    bias_b = jnp.broadcast_to(b_ref[...].astype(jnp.float32), (TH * W, Cout))

    for di in range(2):
        for dj in range(2):
            s = 2 * di + dj
            acc = bias_b
            # 4 accumulated K=Cin dots instead of one concatenated K=4*Cin dot:
            # same MACs, no intra-VMEM concat copies.
            for r2 in range(2):
                for c2 in range(2):
                    t = 2 * r2 + c2
                    acc = acc + jnp.dot(views[(di + r2, dj + c2)], w_ref[s, t],
                                        preferred_element_type=jnp.float32)
            # Lane-dense store (last dim 2*Cout); dj selects a contiguous,
            # statically-offset lane window.  Best when Cout is a multiple of
            # 64 (so 2*Cout is a multiple of 128); smaller Cout falls back to
            # masked stores (correct, slower).
            o_ref[0, :, di, :, pl.ds(dj * Cout, Cout)] = (
                acc.reshape(TH, W, Cout).astype(o_ref.dtype))
    # TODO(synk): strict-NCHW in-kernel stores (Cout-tiled grid + XLU transpose
    # + lane interleave) would remove the last wrapper transpose entirely.


def _pack_subpixel_weights(weight_oihw):
    """Fold the x2 nearest upsample + conv padding into the 3x3 weights.

    Returns W of shape (4, 4, Cin, Cout) indexed [2*di+dj, 2*r2+c2, cin, cout]
    such that
        y[2i+di, 2j+dj, co] = sum_{r2,c2,cin} W[...] * x_pad1[i+di+r2, j+dj+c2, cin]
    where x_pad1 is the ORIGINAL-resolution input with a 1-pixel zero pad.
    """
    Cout, Cin, _, _ = weight_oihw.shape
    w_hwio = jnp.transpose(weight_oihw, (2, 3, 1, 0)).astype(jnp.float32)   # (3,3,Cin,Cout)
    # Tap r2 of output subpixel di picks up kernel row kh with coefficient
    # M[di, r2, kh]; same matrix along the column direction.
    M = jnp.array([[[1., 0., 0.],
                    [0., 1., 1.]],
                   [[1., 1., 0.],
                    [0., 0., 1.]]], dtype=jnp.float32)                      # (di, r2, kh)
    w_sub = jnp.einsum('ark,bcl,klio->abrcio', M, M, w_hwio)                # (2,2,2,2,Cin,Cout)
    return w_sub.reshape(4, 4, Cin, Cout)


def _tpu_vmem_capacity_bytes():
    try:
        cap = getattr(pltpu.get_tpu_info(), "vmem_capacity_bytes", None)
        return int(cap) if cap else None
    except Exception:
        return None


def _pick_row_tile(H, target):
    t = max(1, min(target, H))
    for th in range(t, 0, -1):              # prefer (8,128)-friendly tiles
        if H % th == 0 and th % 8 == 0:
            return th
    for th in range(t, 0, -1):
        if H % th == 0:
            return th
    return 1
    # TODO(synk): pad H up to a multiple of 8 and mask tail rows instead of
    # degrading TH when H is prime-ish.


def upsample2d(x_nchw, weight_oihw, bias, *, compute_dtype=jnp.float32,
               row_tile=None, out_layout="NCHW"):
    """Forward pass of UpSample2D.

    x_nchw:       (B, Cin, H, W)    float32
    weight_oihw:  (Cout, Cin, 3, 3) float32 (PyTorch Conv2d layout)
    bias:         (Cout,)           float32
    out_layout:   "NCHW" -> (B, Cout, 2H, 2W)  (module contract, one transpose)
                  "NHWC" -> (B, 2H, 2W, Cout)  (free reshape, no extra pass)
    compute_dtype: jnp.bfloat16 recommended for production channel counts on
                  v5e/v6e/v7x (MXU operands; accumulation & epilogue stay f32).
    """
    B, Cin, H, W = x_nchw.shape
    Cout = weight_oihw.shape[0]
    out_dtype = x_nchw.dtype

    vmem_cap = _tpu_vmem_capacity_bytes()
    if vmem_cap is None:                      # unknown chip -> conservative
        small_vmem = True
        vmem_limit = 48 * 1024 * 1024
    else:
        small_vmem = vmem_cap < 96 * 1024 * 1024          # v7x: 64 MiB physical
        vmem_limit = max(32 * 1024 * 1024,
                         min(vmem_cap - 12 * 1024 * 1024, 100 * 1024 * 1024))
    if row_tile is None:
        row_tile = 8 if small_vmem else 16
    TH = _pick_row_tile(H, row_tile)
    n_rt = H // TH

    # --- cheap 1x-resolution glue only (the 4x upsampled tensor never exists) ---
    # TODO(synk): accept NHWC upstream / zero-pad inside the kernel to drop this
    # input-sized transpose+pad pass as well.
    x_nhwc = jnp.transpose(x_nchw, (0, 2, 3, 1))                  # (B, H, W, Cin)
    x_pad = jnp.pad(x_nhwc, ((0, 0), (1, 1), (1, 1), (0, 0))).astype(compute_dtype)

    w4 = _pack_subpixel_weights(weight_oihw).astype(compute_dtype)    # (4,4,Cin,Cout)
    b2d = bias.reshape(1, Cout).astype(jnp.float32)

    isz = jnp.dtype(compute_dtype).itemsize
    cost = pl.CostEstimate(
        flops=2 * B * H * W * 4 * (4 * Cin) * Cout,
        transcendentals=0,
        bytes_accessed=(x_pad.size * isz + w4.size * isz
                        + B * H * W * 4 * Cout * jnp.dtype(out_dtype).itemsize))

    def build(use_buffered):
        resident = {"pipeline_mode": pl.Buffered(1)} if use_buffered else {}
        in_specs = [
            # Whole padded 1x-res image per batch; the index_map ignores the
            # row axis so the block stays resident across row tiles.
            pl.BlockSpec((1, H + 2, W + 2, Cin), lambda b, r: (b, 0, 0, 0),
                         **resident),
            pl.BlockSpec((4, 4, Cin, Cout), lambda b, r: (0, 0, 0, 0),
                         **resident),
            pl.BlockSpec((1, Cout), lambda b, r: (0, 0), **resident),
        ]
        return pl.pallas_call(
            _subpixel_conv3x3_kernel,
            out_shape=jax.ShapeDtypeStruct((B, H, 2, W, 2 * Cout), out_dtype),
            grid_spec=pltpu.PrefetchScalarGridSpec(
                num_scalar_prefetch=0,
                grid=(B, n_rt),
                in_specs=in_specs,
                out_specs=pl.BlockSpec((1, TH, 2, W, 2 * Cout),
                                       lambda b, r: (b, r, 0, 0, 0)),
            ),
            compiler_params=pltpu.CompilerParams(
                # Megacore shards the batch axis; row axis stays sequential so
                # the resident input block is not duplicated per core.
                dimension_semantics=("parallel", "arbitrary"),
                vmem_limit_bytes=vmem_limit,
            ),
            cost_estimate=cost,
        )

    try:
        raw = build(True)(x_pad, w4, b2d)
    except Exception:
        # pl.Buffered(1) not supported by this JAX version -> default buffering.
        raw = build(False)(x_pad, w4, b2d)

    if out_layout == "NHWC":
        # Free reshape: [b, i, di, j, dj*Cout+co] -> [b, 2i+di, 2j+dj, co].
        return raw.reshape(B, 2 * H, 2 * W, Cout)
    # Strict NCHW module contract: a single fused output transpose.
    out6 = raw.reshape(B, H, 2, W, 2, Cout)
    out = jnp.transpose(out6, (0, 5, 1, 2, 3, 4))
    return out.reshape(B, Cout, 2 * H, 2 * W)
    # TODO(synk): for very large H*W*Cin also tile the width / stream halo'd
    # row blocks so the resident input block stays bounded on v7x (64 MiB VMEM).


def _reference(x_nchw, weight_oihw, bias):
    """Pure-JAX reference: nearest x2 upsample + 3x3 conv (stride 1, padding 1)."""
    x_up = jnp.repeat(jnp.repeat(x_nchw, 2, axis=2), 2, axis=3)
    out = lax.conv_general_dilated(
        x_up, weight_oihw,
        window_strides=(1, 1), padding=((1, 1), (1, 1)),
        dimension_numbers=("NCHW", "OIHW", "NCHW"))
    return out + bias.reshape(1, -1, 1, 1)


if __name__ == "__main__":
    B, Cin, Cout, H, W = 2, 4, 8, 16, 16

    key = jax.random.PRNGKey(0)
    kx, kw, kb = jax.random.split(key, 3)

    x = jax.random.normal(kx, (B, Cin, H, W), dtype=jnp.float32)

    # PyTorch Conv2d default init: U(-bound, bound), bound = 1/sqrt(Cin*3*3).
    fan_in = Cin * 3 * 3
    bound = 1.0 / (fan_in ** 0.5)
    weight = jax.random.uniform(kw, (Cout, Cin, 3, 3), jnp.float32, -bound, bound)
    bias = jax.random.uniform(kb, (Cout,), jnp.float32, -bound, bound)

    ref = jax.block_until_ready(_reference(x, weight, bias))

    # f32 path, NCHW (matches the PyTorch module exactly).
    out = jax.block_until_ready(upsample2d(x, weight, bias))
    assert out.shape == (B, Cout, 2 * H, 2 * W), out.shape
    assert jnp.allclose(out, ref, atol=1e-4, rtol=1e-4), \
        float(jnp.max(jnp.abs(out - ref)))

    # NHWC path (zero extra output passes) — verify against the same reference.
    out_nhwc = jax.block_until_ready(
        upsample2d(x, weight, bias, out_layout="NHWC"))
    assert out_nhwc.shape == (B, 2 * H, 2 * W, Cout), out_nhwc.shape
    assert jnp.allclose(jnp.transpose(out_nhwc, (0, 3, 1, 2)), ref,
                        atol=1e-4, rtol=1e-4), \
        float(jnp.max(jnp.abs(jnp.transpose(out_nhwc, (0, 3, 1, 2)) - ref)))

    # bf16-operand path (f32 accumulation) — looser tolerance.
    out_bf16 = jax.block_until_ready(
        upsample2d(x, weight, bias, compute_dtype=jnp.bfloat16))
    assert out_bf16.shape == (B, Cout, 2 * H, 2 * W), out_bf16.shape
    assert jnp.allclose(out_bf16, ref, atol=1e-1, rtol=1e-1), \
        float(jnp.max(jnp.abs(out_bf16 - ref)))

    print("KERNEL_OK")
</pallas_src>

<mosaic_0001>
module attributes {stable_mosaic.version = 11 : i64} {
  func.func @_subpixel_conv3x3_kernel(%arg0: i32, %arg1: i32, %arg2: memref<1x18x18x4xf32, #tpu.memory_space<vmem>>, %arg3: memref<4x4x4x8xf32, #tpu.memory_space<vmem>>, %arg4: memref<1x8xf32, #tpu.memory_space<vmem>>, %arg5: memref<1x8x2x16x16xf32, #tpu.memory_space<vmem>>) attributes {dimension_semantics = [#tpu.dimension_semantics<parallel>, #tpu.dimension_semantics<arbitrary>], iteration_bounds = array<i64: 2, 2>, scalar_prefetch = 0 : i64, scratch_operands = 0 : i64, tpu.core_type = #tpu.core_type<tc>, window_params = [{pipeline_mode = #tpu.pipeline_mode<synchronous>, transform_indices = @transform_0, window_bounds = array<i64: 1, 18, 18, 4>}, {pipeline_mode = #tpu.pipeline_mode<synchronous>, transform_indices = @transform_1, window_bounds = array<i64: 4, 4, 4, 8>}, {pipeline_mode = #tpu.pipeline_mode<synchronous>, transform_indices = @transform_2, window_bounds = array<i64: 1, 8>}, {transform_indices = @transform_3, window_bounds = array<i64: 1, 8, 2, 16, 16>}]} {
    %c8_i32 = arith.constant 8 : i32
    %0 = arith.muli %arg1, %c8_i32 : i32
    %1 = tpu.assume_multiple %0, 8 : i32
    %c0 = arith.constant 0 : index
    %2 = arith.index_cast %1 : i32 to index
    %c0_0 = arith.constant 0 : index
    %c0_1 = arith.constant 0 : index
    %3 = vector.load %arg2[%c0, %2, %c0_0, %c0_1] : memref<1x18x18x4xf32, #tpu.memory_space<vmem>>, vector<1x10x18x4xf32>
    %4 = vector.shape_cast %3 : vector<1x10x18x4xf32> to vector<10x18x4xf32>
    %5 = vector.extract_strided_slice %4 {offsets = [0, 0, 0], sizes = [8, 16, 4], strides = [1, 1, 1]} : vector<10x18x4xf32> to vector<8x16x4xf32>
    %6 = vector.shape_cast %5 : vector<8x16x4xf32> to vector<128x4xf32>
    %7 = vector.extract_strided_slice %4 {offsets = [0, 1, 0], sizes = [8, 16, 4], strides = [1, 1, 1]} : vector<10x18x4xf32> to vector<8x16x4xf32>
    %8 = vector.shape_cast %7 : vector<8x16x4xf32> to vector<128x4xf32>
    %9 = vector.extract_strided_slice %4 {offsets = [0, 2, 0], sizes = [8, 16, 4], strides = [1, 1, 1]} : vector<10x18x4xf32> to vector<8x16x4xf32>
    %10 = vector.shape_cast %9 : vector<8x16x4xf32> to vector<128x4xf32>
    %11 = vector.extract_strided_slice %4 {offsets = [1, 0, 0], sizes = [8, 16, 4], strides = [1, 1, 1]} : vector<10x18x4xf32> to vector<8x16x4xf32>
    %12 = vector.shape_cast %11 : vector<8x16x4xf32> to vector<128x4xf32>
    %13 = vector.extract_strided_slice %4 {offsets = [1, 1, 0], sizes = [8, 16, 4], strides = [1, 1, 1]} : vector<10x18x4xf32> to vector<8x16x4xf32>
    %14 = vector.shape_cast %13 : vector<8x16x4xf32> to vector<128x4xf32>
    %15 = vector.extract_strided_slice %4 {offsets = [1, 2, 0], sizes = [8, 16, 4], strides = [1, 1, 1]} : vector<10x18x4xf32> to vector<8x16x4xf32>
    %16 = vector.shape_cast %15 : vector<8x16x4xf32> to vector<128x4xf32>
    %17 = vector.extract_strided_slice %4 {offsets = [2, 0, 0], sizes = [8, 16, 4], strides = [1, 1, 1]} : vector<10x18x4xf32> to vector<8x16x4xf32>
    %18 = vector.shape_cast %17 : vector<8x16x4xf32> to vector<128x4xf32>
    %19 = vector.extract_strided_slice %4 {offsets = [2, 1, 0], sizes = [8, 16, 4], strides = [1, 1, 1]} : vector<10x18x4xf32> to vector<8x16x4xf32>
    %20 = vector.shape_cast %19 : vector<8x16x4xf32> to vector<128x4xf32>
    %21 = vector.extract_strided_slice %4 {offsets = [2, 2, 0], sizes = [8, 16, 4], strides = [1, 1, 1]} : vector<10x18x4xf32> to vector<8x16x4xf32>
    %22 = vector.shape_cast %21 : vector<8x16x4xf32> to vector<128x4xf32>
    %c0_2 = arith.constant 0 : index
    %c0_3 = arith.constant 0 : index
    %23 = vector.load %arg4[%c0_2, %c0_3] : memref<1x8xf32, #tpu.memory_space<vmem>>, vector<1x8xf32>
    %24 = vector.shape_cast %23 : vector<1x8xf32> to vector<1x8xf32>
    %25 = vector.broadcast %24 : vector<1x8xf32> to vector<128x8xf32>
    %c0_4 = arith.constant 0 : index
    %c0_5 = arith.constant 0 : index
    %c0_6 = arith.constant 0 : index
    %c0_7 = arith.constant 0 : index
    %26 = vector.load %arg3[%c0_4, %c0_5, %c0_6, %c0_7] : memref<4x4x4x8xf32, #tpu.memory_space<vmem>>, vector<1x1x4x8xf32>
    %27 = vector.shape_cast %26 : vector<1x1x4x8xf32> to vector<4x8xf32>
    %cst = arith.constant dense<0.000000e+00> : vector<128x8xf32>
    %28 = tpu.matmul %6, %27, %cst {dimension_numbers = #tpu.dot_dimension_numbers<[1], [0], [0], [1], [0, 0, 1, 1], [], []>} : vector<128x4xf32>, vector<4x8xf32>, vector<128x8xf32> -> vector<128x8xf32>
    %29 = arith.addf %25, %28 : vector<128x8xf32>
    %c0_8 = arith.constant 0 : index
    %c1 = arith.constant 1 : index
    %c0_9 = arith.constant 0 : index
    %c0_10 = arith.constant 0 : index
    %30 = vector.load %arg3[%c0_8, %c1, %c0_9, %c0_10] : memref<4x4x4x8xf32, #tpu.memory_space<vmem>>, vector<1x1x4x8xf32>
    %31 = vector.shape_cast %30 : vector<1x1x4x8xf32> to vector<4x8xf32>
    %cst_11 = arith.constant dense<0.000000e+00> : vector<128x8xf32>
    %32 = tpu.matmul %8, %31, %cst_11 {dimension_numbers = #tpu.dot_dimension_numbers<[1], [0], [0], [1], [0, 0, 1, 1], [], []>} : vector<128x4xf32>, vector<4x8xf32>, vector<128x8xf32> -> vector<128x8xf32>
    %33 = arith.addf %29, %32 : vector<128x8xf32>
    %c0_12 = arith.constant 0 : index
    %c2 = arith.constant 2 : index
    %c0_13 = arith.constant 0 : index
    %c0_14 = arith.constant 0 : index
    %34 = vector.load %arg3[%c0_12, %c2, %c0_13, %c0_14] : memref<4x4x4x8xf32, #tpu.memory_space<vmem>>, vector<1x1x4x8xf32>
    %35 = vector.shape_cast %34 : vector<1x1x4x8xf32> to vector<4x8xf32>
    %cst_15 = arith.constant dense<0.000000e+00> : vector<128x8xf32>
    %36 = tpu.matmul %12, %35, %cst_15 {dimension_numbers = #tpu.dot_dimension_numbers<[1], [0], [0], [1], [0, 0, 1, 1], [], []>} : vector<128x4xf32>, vector<4x8xf32>, vector<128x8xf32> -> vector<128x8xf32>
    %37 = arith.addf %33, %36 : vector<128x8xf32>
    %c0_16 = arith.constant 0 : index
    %c3 = arith.constant 3 : index
    %c0_17 = arith.constant 0 : index
    %c0_18 = arith.constant 0 : index
    %38 = vector.load %arg3[%c0_16, %c3, %c0_17, %c0_18] : memref<4x4x4x8xf32, #tpu.memory_space<vmem>>, vector<1x1x4x8xf32>
    %39 = vector.shape_cast %38 : vector<1x1x4x8xf32> to vector<4x8xf32>
    %cst_19 = arith.constant dense<0.000000e+00> : vector<128x8xf32>
    %40 = tpu.matmul %14, %39, %cst_19 {dimension_numbers = #tpu.dot_dimension_numbers<[1], [0], [0], [1], [0, 0, 1, 1], [], []>} : vector<128x4xf32>, vector<4x8xf32>, vector<128x8xf32> -> vector<128x8xf32>
    %41 = arith.addf %37, %40 : vector<128x8xf32>
    %42 = vector.shape_cast %41 : vector<128x8xf32> to vector<8x16x8xf32>
    %c0_20 = arith.constant 0 : index
    %c0_21 = arith.constant 0 : index
    %c0_22 = arith.constant 0 : index
    %c0_23 = arith.constant 0 : index
    %c0_24 = arith.constant 0 : index
    %43 = vector.load %arg5[%c0_20, %c0_21, %c0_22, %c0_23, %c0_24] : memref<1x8x2x16x16xf32, #tpu.memory_space<vmem>>, vector<1x8x1x16x8xf32>
    %44 = vector.shape_cast %43 : vector<1x8x1x16x8xf32> to vector<8x16x8xf32>
    %45 = vector.shape_cast %42 : vector<8x16x8xf32> to vector<1x8x1x16x8xf32>
    tpu.vector_store %arg5[%c0_20, %c0_21, %c0_22, %c0_23, %c0_24], %45 {strides = array<i32>} : memref<1x8x2x16x16xf32, #tpu.memory_space<vmem>>, vector<1x8x1x16x8xf32>,
    %c1_25 = arith.constant 1 : index
    %c0_26 = arith.constant 0 : index
    %c0_27 = arith.constant 0 : index
    %c0_28 = arith.constant 0 : index
    %46 = vector.load %arg3[%c1_25, %c0_26, %c0_27, %c0_28] : memref<4x4x4x8xf32, #tpu.memory_space<vmem>>, vector<1x1x4x8xf32>
    %47 = vector.shape_cast %46 : vector<1x1x4x8xf32> to vector<4x8xf32>
    %cst_29 = arith.constant dense<0.000000e+00> : vector<128x8xf32>
    %48 = tpu.matmul %8, %47, %cst_29 {dimension_numbers = #tpu.dot_dimension_numbers<[1], [0], [0], [1], [0, 0, 1, 1], [], []>} : vector<128x4xf32>, vector<4x8xf32>, vector<128x8xf32> -> vector<128x8xf32>
    %49 = arith.addf %25, %48 : vector<128x8xf32>
    %c1_30 = arith.constant 1 : index
    %c1_31 = arith.constant 1 : index
    %c0_32 = arith.constant 0 : index
    %c0_33 = arith.constant 0 : index
    %50 = vector.load %arg3[%c1_30, %c1_31, %c0_32, %c0_33] : memref<4x4x4x8xf32, #tpu.memory_space<vmem>>, vector<1x1x4x8xf32>
    %51 = vector.shape_cast %50 : vector<1x1x4x8xf32> to vector<4x8xf32>
    %cst_34 = arith.constant dense<0.000000e+00> : vector<128x8xf32>
    %52 = tpu.matmul %10, %51, %cst_34 {dimension_numbers = #tpu.dot_dimension_numbers<[1], [0], [0], [1], [0, 0, 1, 1], [], []>} : vector<128x4xf32>, vector<4x8xf32>, vector<128x8xf32> -> vector<128x8xf32>
    %53 = arith.addf %49, %52 : vector<128x8xf32>
    %c1_35 = arith.constant 1 : index
    %c2_36 = arith.constant 2 : index
    %c0_37 = arith.constant 0 : index
    %c0_38 = arith.constant 0 : index
    %54 = vector.load %arg3[%c1_35, %c2_36, %c0_37, %c0_38] : memref<4x4x4x8xf32, #tpu.memory_space<vmem>>, vector<1x1x4x8xf32>
    %55 = vector.shape_cast %54 : vector<1x1x4x8xf32> to vector<4x8xf32>
    %cst_39 = arith.constant dense<0.000000e+00> : vector<128x8xf32>
    %56 = tpu.matmul %14, %55, %cst_39 {dimension_numbers = #tpu.dot_dimension_numbers<[1], [0], [0], [1], [0, 0, 1, 1], [], []>} : vector<128x4xf32>, vector<4x8xf32>, vector<128x8xf32> -> vector<128x8xf32>
    %57 = arith.addf %53, %56 : vector<128x8xf32>
    %c1_40 = arith.constant 1 : index
    %c3_41 = arith.constant 3 : index
    %c0_42 = arith.constant 0 : index
    %c0_43 = arith.constant 0 : index
    %58 = vector.load %arg3[%c1_40, %c3_41, %c0_42, %c0_43] : memref<4x4x4x8xf32, #tpu.memory_space<vmem>>, vector<1x1x4x8xf32>
    %59 = vector.shape_cast %58 : vector<1x1x4x8xf32> to vector<4x8xf32>
    %cst_44 = arith.constant dense<0.000000e+00> : vector<128x8xf32>
    %60 = tpu.matmul %16, %59, %cst_44 {dimension_numbers = #tpu.dot_dimension_numbers<[1], [0], [0], [1], [0, 0, 1, 1], [], []>} : vector<128x4xf32>, vector<4x8xf32>, vector<128x8xf32> -> vector<128x8xf32>
    %61 = arith.addf %57, %60 : vector<128x8xf32>
    %62 = vector.shape_cast %61 : vector<128x8xf32> to vector<8x16x8xf32>
    %c0_45 = arith.constant 0 : index
    %c0_46 = arith.constant 0 : index
    %c0_47 = arith.constant 0 : index
    %c0_48 = arith.constant 0 : index
    %c8 = arith.constant 8 : index
    %63 = vector.load %arg5[%c0_45, %c0_46, %c0_47, %c0_48, %c8] : memref<1x8x2x16x16xf32, #tpu.memory_space<vmem>>, vector<1x8x1x16x8xf32>
    %64 = vector.shape_cast %63 : vector<1x8x1x16x8xf32> to vector<8x16x8xf32>
    %65 = vector.shape_cast %62 : vector<8x16x8xf32> to vector<1x8x1x16x8xf32>
    tpu.vector_store %arg5[%c0_45, %c0_46, %c0_47, %c0_48, %c8], %65 {strides = array<i32>} : memref<1x8x2x16x16xf32, #tpu.memory_space<vmem>>, vector<1x8x1x16x8xf32>,
    %c2_49 = arith.constant 2 : index
    %c0_50 = arith.constant 0 : index
    %c0_51 = arith.constant 0 : index
    %c0_52 = arith.constant 0 : index
    %66 = vector.load %arg3[%c2_49, %c0_50, %c0_51, %c0_52] : memref<4x4x4x8xf32, #tpu.memory_space<vmem>>, vector<1x1x4x8xf32>
    %67 = vector.shape_cast %66 : vector<1x1x4x8xf32> to vector<4x8xf32>
    %cst_53 = arith.constant dense<0.000000e+00> : vector<128x8xf32>
    %68 = tpu.matmul %12, %67, %cst_53 {dimension_numbers = #tpu.dot_dimension_numbers<[1], [0], [0], [1], [0, 0, 1, 1], [], []>} : vector<128x4xf32>, vector<4x8xf32>, vector<128x8xf32> -> vector<128x8xf32>
    %69 = arith.addf %25, %68 : vector<128x8xf32>
    %c2_54 = arith.constant 2 : index
    %c1_55 = arith.constant 1 : index
    %c0_56 = arith.constant 0 : index
    %c0_57 = arith.constant 0 : index
    %70 = vector.load %arg3[%c2_54, %c1_55, %c0_56, %c0_57] : memref<4x4x4x8xf32, #tpu.memory_space<vmem>>, vector<1x1x4x8xf32>
    %71 = vector.shape_cast %70 : vector<1x1x4x8xf32> to vector<4x8xf32>
    %cst_58 = arith.constant dense<0.000000e+00> : vector<128x8xf32>
    %72 = tpu.matmul %14, %71, %cst_58 {dimension_numbers = #tpu.dot_dimension_numbers<[1], [0], [0], [1], [0, 0, 1, 1], [], []>} : vector<128x4xf32>, vector<4x8xf32>, vector<128x8xf32> -> vector<128x8xf32>
    %73 = arith.addf %69, %72 : vector<128x8xf32>
    %c2_59 = arith.constant 2 : index
    %c2_60 = arith.constant 2 : index
    %c0_61 = arith.constant 0 : index
    %c0_62 = arith.constant 0 : index
    %74 = vector.load %arg3[%c2_59, %c2_60, %c0_61, %c0_62] : memref<4x4x4x8xf32, #tpu.memory_space<vmem>>, vector<1x1x4x8xf32>
    %75 = vector.shape_cast %74 : vector<1x1x4x8xf32> to vector<4x8xf32>
    %cst_63 = arith.constant dense<0.000000e+00> : vector<128x8xf32>
    %76 = tpu.matmul %18, %75, %cst_63 {dimension_numbers = #tpu.dot_dimension_numbers<[1], [0], [0], [1], [0, 0, 1, 1], [], []>} : vector<128x4xf32>, vector<4x8xf32>, vector<128x8xf32> -> vector<128x8xf32>
    %77 = arith.addf %73, %76 : vector<128x8xf32>
    %c2_64 = arith.constant 2 : index
    %c3_65 = arith.constant 3 : index
    %c0_66 = arith.constant 0 : index
    %c0_67 = arith.constant 0 : index
    %78 = vector.load %arg3[%c2_64, %c3_65, %c0_66, %c0_67] : memref<4x4x4x8xf32, #tpu.memory_space<vmem>>, vector<1x1x4x8xf32>
    %79 = vector.shape_cast %78 : vector<1x1x4x8xf32> to vector<4x8xf32>
    %cst_68 = arith.constant dense<0.000000e+00> : vector<128x8xf32>
    %80 = tpu.matmul %20, %79, %cst_68 {dimension_numbers = #tpu.dot_dimension_numbers<[1], [0], [0], [1], [0, 0, 1, 1], [], []>} : vector<128x4xf32>, vector<4x8xf32>, vector<128x8xf32> -> vector<128x8xf32>
    %81 = arith.addf %77, %80 : vector<128x8xf32>
    %82 = vector.shape_cast %81 : vector<128x8xf32> to vector<8x16x8xf32>
    %c0_69 = arith.constant 0 : index
    %c0_70 = arith.constant 0 : index
    %c1_71 = arith.constant 1 : index
    %c0_72 = arith.constant 0 : index
    %c0_73 = arith.constant 0 : index
    %83 = vector.load %arg5[%c0_69, %c0_70, %c1_71, %c0_72, %c0_73] : memref<1x8x2x16x16xf32, #tpu.memory_space<vmem>>, vector<1x8x1x16x8xf32>
    %84 = vector.shape_cast %83 : vector<1x8x1x16x8xf32> to vector<8x16x8xf32>
    %85 = vector.shape_cast %82 : vector<8x16x8xf32> to vector<1x8x1x16x8xf32>
    tpu.vector_store %arg5[%c0_69, %c0_70, %c1_71, %c0_72, %c0_73], %85 {strides = array<i32>} : memref<1x8x2x16x16xf32, #tpu.memory_space<vmem>>, vector<1x8x1x16x8xf32>,
    %c3_74 = arith.constant 3 : index
    %c0_75 = arith.constant 0 : index
    %c0_76 = arith.constant 0 : index
    %c0_77 = arith.constant 0 : index
    %86 = vector.load %arg3[%c3_74, %c0_75, %c0_76, %c0_77] : memref<4x4x4x8xf32, #tpu.memory_space<vmem>>, vector<1x1x4x8xf32>
    %87 = vector.shape_cast %86 : vector<1x1x4x8xf32> to vector<4x8xf32>
    %cst_78 = arith.constant dense<0.000000e+00> : vector<128x8xf32>
    %88 = tpu.matmul %14, %87, %cst_78 {dimension_numbers = #tpu.dot_dimension_numbers<[1], [0], [0], [1], [0, 0, 1, 1], [], []>} : vector<128x4xf32>, vector<4x8xf32>, vector<128x8xf32> -> vector<128x8xf32>
    %89 = arith.addf %25, %88 : vector<128x8xf32>
    %c3_79 = arith.constant 3 : index
    %c1_80 = arith.constant 1 : index
    %c0_81 = arith.constant 0 : index
    %c0_82 = arith.constant 0 : index
    %90 = vector.load %arg3[%c3_79, %c1_80, %c0_81, %c0_82] : memref<4x4x4x8xf32, #tpu.memory_space<vmem>>, vector<1x1x4x8xf32>
    %91 = vector.shape_cast %90 : vector<1x1x4x8xf32> to vector<4x8xf32>
    %cst_83 = arith.constant dense<0.000000e+00> : vector<128x8xf32>
    %92 = tpu.matmul %16, %91, %cst_83 {dimension_numbers = #tpu.dot_dimension_numbers<[1], [0], [0], [1], [0, 0, 1, 1], [], []>} : vector<128x4xf32>, vector<4x8xf32>, vector<128x8xf32> -> vector<128x8xf32>
    %93 = arith.addf %89, %92 : vector<128x8xf32>
    %c3_84 = arith.constant 3 : index
    %c2_85 = arith.constant 2 : index
    %c0_86 = arith.constant 0 : index
    %c0_87 = arith.constant 0 : index
    %94 = vector.load %arg3[%c3_84, %c2_85, %c0_86, %c0_87] : memref<4x4x4x8xf32, #tpu.memory_space<vmem>>, vector<1x1x4x8xf32>
    %95 = vector.shape_cast %94 : vector<1x1x4x8xf32> to vector<4x8xf32>
    %cst_88 = arith.constant dense<0.000000e+00> : vector<128x8xf32>
    %96 = tpu.matmul %20, %95, %cst_88 {dimension_numbers = #tpu.dot_dimension_numbers<[1], [0], [0], [1], [0, 0, 1, 1], [], []>} : vector<128x4xf32>, vector<4x8xf32>, vector<128x8xf32> -> vector<128x8xf32>
    %97 = arith.addf %93, %96 : vector<128x8xf32>
    %c3_89 = arith.constant 3 : index
    %c3_90 = arith.constant 3 : index
    %c0_91 = arith.constant 0 : index
    %c0_92 = arith.constant 0 : index
    %98 = vector.load %arg3[%c3_89, %c3_90, %c0_91, %c0_92] : memref<4x4x4x8xf32, #tpu.memory_space<vmem>>, vector<1x1x4x8xf32>
    %99 = vector.shape_cast %98 : vector<1x1x4x8xf32> to vector<4x8xf32>
    %cst_93 = arith.constant dense<0.000000e+00> : vector<128x8xf32>
    %100 = tpu.matmul %22, %99, %cst_93 {dimension_numbers = #tpu.dot_dimension_numbers<[1], [0], [0], [1], [0, 0, 1, 1], [], []>} : vector<128x4xf32>, vector<4x8xf32>, vector<128x8xf32> -> vector<128x8xf32>
    %101 = arith.addf %97, %100 : vector<128x8xf32>
    %102 = vector.shape_cast %101 : vector<128x8xf32> to vector<8x16x8xf32>
    %c0_94 = arith.constant 0 : index
    %c0_95 = arith.constant 0 : index
    %c1_96 = arith.constant 1 : index
    %c0_97 = arith.constant 0 : index
    %c8_98 = arith.constant 8 : index
    %103 = vector.load %arg5[%c0_94, %c0_95, %c1_96, %c0_97, %c8_98] : memref<1x8x2x16x16xf32, #tpu.memory_space<vmem>>, vector<1x8x1x16x8xf32>
    %104 = vector.shape_cast %103 : vector<1x8x1x16x8xf32> to vector<8x16x8xf32>
    %105 = vector.shape_cast %102 : vector<8x16x8xf32> to vector<1x8x1x16x8xf32>
    tpu.vector_store %arg5[%c0_94, %c0_95, %c1_96, %c0_97, %c8_98], %105 {strides = array<i32>} : memref<1x8x2x16x16xf32, #tpu.memory_space<vmem>>, vector<1x8x1x16x8xf32>,
    return
  }
  func.func @transform_0(%arg0: i32, %arg1: i32) -> (i32, i32, i32, i32) {
    %c0_i32 = arith.constant 0 : i32
    %c0_i32_0 = arith.constant 0 : i32
    %c0_i32_1 = arith.constant 0 : i32
    %c0_i32_2 = arith.constant 0 : i32
    return %arg0, %c0_i32, %c0_i32_0, %c0_i32_1 : i32, i32, i32, i32
  }
  func.func @transform_1(%arg0: i32, %arg1: i32) -> (i32, i32, i32, i32) {
    %c0_i32 = arith.constant 0 : i32
    %c0_i32_0 = arith.constant 0 : i32
    %c0_i32_1 = arith.constant 0 : i32
    %c0_i32_2 = arith.constant 0 : i32
    %c0_i32_3 = arith.constant 0 : i32
    return %c0_i32, %c0_i32_0, %c0_i32_1, %c0_i32_2 : i32, i32, i32, i32
  }
  func.func @transform_2(%arg0: i32, %arg1: i32) -> (i32, i32) {
    %c0_i32 = arith.constant 0 : i32
    %c0_i32_0 = arith.constant 0 : i32
    %c0_i32_1 = arith.constant 0 : i32
    return %c0_i32, %c0_i32_0 : i32, i32
  }
  func.func @transform_3(%arg0: i32, %arg1: i32) -> (i32, i32, i32, i32, i32) {
    %c0_i32 = arith.constant 0 : i32
    %c0_i32_0 = arith.constant 0 : i32
    %c0_i32_1 = arith.constant 0 : i32
    %c0_i32_2 = arith.constant 0 : i32
    return %arg0, %arg1, %c0_i32, %c0_i32_0, %c0_i32_1 : i32, i32, i32, i32, i32
  }
}

module attributes {stable_mosaic.version = 11 : i64} {
  func.func @_subpixel_conv3x3_kernel(%arg0: i32, %arg1: i32, %arg2: memref<1x18x18x4xf32, #tpu.memory_space<vmem>>, %arg3: memref<4x4x4x8xf32, #tpu.memory_space<vmem>>, %arg4: memref<1x8xf32, #tpu.memory_space<vmem>>, %arg5: memref<1x8x2x16x16xf32, #tpu.memory_space<vmem>>) attributes {dimension_semantics = [#tpu.dimension_semantics<parallel>, #tpu.dimension_semantics<arbitrary>], iteration_bounds = array<i64: 2, 2>, scalar_prefetch = 0 : i64, scratch_operands = 0 : i64, tpu.core_type = #tpu.core_type<tc>, window_params = [{transform_indices = @transform_0, window_bounds = array<i64: 1, 18, 18, 4>}, {pipeline_mode = #tpu.pipeline_mode<synchronous>, transform_indices = @transform_1, window_bounds = array<i64: 4, 4, 4, 8>}, {pipeline_mode = #tpu.pipeline_mode<synchronous>, transform_indices = @transform_2, window_bounds = array<i64: 1, 8>}, {transform_indices = @transform_3, window_bounds = array<i64: 1, 8, 2, 16, 16>}]} {
    %c8_i32 = arith.constant 8 : i32
    %0 = arith.muli %arg1, %c8_i32 : i32
    %1 = tpu.assume_multiple %0, 8 : i32
    %c0 = arith.constant 0 : index
    %2 = arith.index_cast %1 : i32 to index
    %c0_0 = arith.constant 0 : index
    %c0_1 = arith.constant 0 : index
    %3 = vector.load %arg2[%c0, %2, %c0_0, %c0_1] : memref<1x18x18x4xf32, #tpu.memory_space<vmem>>, vector<1x10x18x4xf32>
    %4 = vector.shape_cast %3 : vector<1x10x18x4xf32> to vector<10x18x4xf32>
    %5 = vector.extract_strided_slice %4 {offsets = [0, 0, 0], sizes = [8, 16, 4], strides = [1, 1, 1]} : vector<10x18x4xf32> to vector<8x16x4xf32>
    %6 = vector.shape_cast %5 : vector<8x16x4xf32> to vector<128x4xf32>
    %7 = vector.extract_strided_slice %4 {offsets = [0, 1, 0], sizes = [8, 16, 4], strides = [1, 1, 1]} : vector<10x18x4xf32> to vector<8x16x4xf32>
    %8 = vector.shape_cast %7 : vector<8x16x4xf32> to vector<128x4xf32>
    %9 = vector.extract_strided_slice %4 {offsets = [0, 2, 0], sizes = [8, 16, 4], strides = [1, 1, 1]} : vector<10x18x4xf32> to vector<8x16x4xf32>
    %10 = vector.shape_cast %9 : vector<8x16x4xf32> to vector<128x4xf32>
    %11 = vector.extract_strided_slice %4 {offsets = [1, 0, 0], sizes = [8, 16, 4], strides = [1, 1, 1]} : vector<10x18x4xf32> to vector<8x16x4xf32>
    %12 = vector.shape_cast %11 : vector<8x16x4xf32> to vector<128x4xf32>
    %13 = vector.extract_strided_slice %4 {offsets = [1, 1, 0], sizes = [8, 16, 4], strides = [1, 1, 1]} : vector<10x18x4xf32> to vector<8x16x4xf32>
    %14 = vector.shape_cast %13 : vector<8x16x4xf32> to vector<128x4xf32>
    %15 = vector.extract_strided_slice %4 {offsets = [1, 2, 0], sizes = [8, 16, 4], strides = [1, 1, 1]} : vector<10x18x4xf32> to vector<8x16x4xf32>
    %16 = vector.shape_cast %15 : vector<8x16x4xf32> to vector<128x4xf32>
    %17 = vector.extract_strided_slice %4 {offsets = [2, 0, 0], sizes = [8, 16, 4], strides = [1, 1, 1]} : vector<10x18x4xf32> to vector<8x16x4xf32>
    %18 = vector.shape_cast %17 : vector<8x16x4xf32> to vector<128x4xf32>
    %19 = vector.extract_strided_slice %4 {offsets = [2, 1, 0], sizes = [8, 16, 4], strides = [1, 1, 1]} : vector<10x18x4xf32> to vector<8x16x4xf32>
    %20 = vector.shape_cast %19 : vector<8x16x4xf32> to vector<128x4xf32>
    %21 = vector.extract_strided_slice %4 {offsets = [2, 2, 0], sizes = [8, 16, 4], strides = [1, 1, 1]} : vector<10x18x4xf32> to vector<8x16x4xf32>
    %22 = vector.shape_cast %21 : vector<8x16x4xf32> to vector<128x4xf32>
    %c0_2 = arith.constant 0 : index
    %c0_3 = arith.constant 0 : index
    %23 = vector.load %arg4[%c0_2, %c0_3] : memref<1x8xf32, #tpu.memory_space<vmem>>, vector<1x8xf32>
    %24 = vector.shape_cast %23 : vector<1x8xf32> to vector<1x8xf32>
    %25 = vector.broadcast %24 : vector<1x8xf32> to vector<128x8xf32>
    %c0_4 = arith.constant 0 : index
    %c0_5 = arith.constant 0 : index
    %c0_6 = arith.constant 0 : index
    %c0_7 = arith.constant 0 : index
    %26 = vector.load %arg3[%c0_4, %c0_5, %c0_6, %c0_7] : memref<4x4x4x8xf32, #tpu.memory_space<vmem>>, vector<1x1x4x8xf32>
    %27 = vector.shape_cast %26 : vector<1x1x4x8xf32> to vector<4x8xf32>
    %cst = arith.constant dense<0.000000e+00> : vector<128x8xf32>
    %28 = tpu.matmul %6, %27, %cst {dimension_numbers = #tpu.dot_dimension_numbers<[1], [0], [0], [1], [0, 0, 1, 1], [], []>} : vector<128x4xf32>, vector<4x8xf32>, vector<128x8xf32> -> vector<128x8xf32>
    %29 = arith.addf %25, %28 : vector<128x8xf32>
    %c0_8 = arith.constant 0 : index
    %c1 = arith.constant 1 : index
    %c0_9 = arith.constant 0 : index
    %c0_10 = arith.constant 0 : index
    %30 = vector.load %arg3[%c0_8, %c1, %c0_9, %c0_10] : memref<4x4x4x8xf32, #tpu.memory_space<vmem>>, vector<1x1x4x8xf32>
    %31 = vector.shape_cast %30 : vector<1x1x4x8xf32> to vector<4x8xf32>
    %cst_11 = arith.constant dense<0.000000e+00> : vector<128x8xf32>
    %32 = tpu.matmul %8, %31, %cst_11 {dimension_numbers = #tpu.dot_dimension_numbers<[1], [0], [0], [1], [0, 0, 1, 1], [], []>} : vector<128x4xf32>, vector<4x8xf32>, vector<128x8xf32> -> vector<128x8xf32>
    %33 = arith.addf %29, %32 : vector<128x8xf32>
    %c0_12 = arith.constant 0 : index
    %c2 = arith.constant 2 : index
    %c0_13 = arith.constant 0 : index
    %c0_14 = arith.constant 0 : index
    %34 = vector.load %arg3[%c0_12, %c2, %c0_13, %c0_14] : memref<4x4x4x8xf32, #tpu.memory_space<vmem>>, vector<1x1x4x8xf32>
    %35 = vector.shape_cast %34 : vector<1x1x4x8xf32> to vector<4x8xf32>
    %cst_15 = arith.constant dense<0.000000e+00> : vector<128x8xf32>
    %36 = tpu.matmul %12, %35, %cst_15 {dimension_numbers = #tpu.dot_dimension_numbers<[1], [0], [0], [1], [0, 0, 1, 1], [], []>} : vector<128x4xf32>, vector<4x8xf32>, vector<128x8xf32> -> vector<128x8xf32>
    %37 = arith.addf %33, %36 : vector<128x8xf32>
    %c0_16 = arith.constant 0 : index
    %c3 = arith.constant 3 : index
    %c0_17 = arith.constant 0 : index
    %c0_18 = arith.constant 0 : index
    %38 = vector.load %arg3[%c0_16, %c3, %c0_17, %c0_18] : memref<4x4x4x8xf32, #tpu.memory_space<vmem>>, vector<1x1x4x8xf32>
    %39 = vector.shape_cast %38 : vector<1x1x4x8xf32> to vector<4x8xf32>
    %cst_19 = arith.constant dense<0.000000e+00> : vector<128x8xf32>
    %40 = tpu.matmul %14, %39, %cst_19 {dimension_numbers = #tpu.dot_dimension_numbers<[1], [0], [0], [1], [0, 0, 1, 1], [], []>} : vector<128x4xf32>, vector<4x8xf32>, vector<128x8xf32> -> vector<128x8xf32>
    %41 = arith.addf %37, %40 : vector<128x8xf32>
    %42 = vector.shape_cast %41 : vector<128x8xf32> to vector<8x16x8xf32>
    %c0_20 = arith.constant 0 : index
    %c0_21 = arith.constant 0 : index
    %c0_22 = arith.constant 0 : index
    %c0_23 = arith.constant 0 : index
    %c0_24 = arith.constant 0 : index
    %43 = vector.load %arg5[%c0_20, %c0_21, %c0_22, %c0_23, %c0_24] : memref<1x8x2x16x16xf32, #tpu.memory_space<vmem>>, vector<1x8x1x16x8xf32>
    %44 = vector.shape_cast %43 : vector<1x8x1x16x8xf32> to vector<8x16x8xf32>
    %45 = vector.shape_cast %42 : vector<8x16x8xf32> to vector<1x8x1x16x8xf32>
    tpu.vector_store %arg5[%c0_20, %c0_21, %c0_22, %c0_23, %c0_24], %45 {strides = array<i32>} : memref<1x8x2x16x16xf32, #tpu.memory_space<vmem>>, vector<1x8x1x16x8xf32>,
    %c1_25 = arith.constant 1 : index
    %c0_26 = arith.constant 0 : index
    %c0_27 = arith.constant 0 : index
    %c0_28 = arith.constant 0 : index
    %46 = vector.load %arg3[%c1_25, %c0_26, %c0_27, %c0_28] : memref<4x4x4x8xf32, #tpu.memory_space<vmem>>, vector<1x1x4x8xf32>
    %47 = vector.shape_cast %46 : vector<1x1x4x8xf32> to vector<4x8xf32>
    %cst_29 = arith.constant dense<0.000000e+00> : vector<128x8xf32>
    %48 = tpu.matmul %8, %47, %cst_29 {dimension_numbers = #tpu.dot_dimension_numbers<[1], [0], [0], [1], [0, 0, 1, 1], [], []>} : vector<128x4xf32>, vector<4x8xf32>, vector<128x8xf32> -> vector<128x8xf32>
    %49 = arith.addf %25, %48 : vector<128x8xf32>
    %c1_30 = arith.constant 1 : index
    %c1_31 = arith.constant 1 : index
    %c0_32 = arith.constant 0 : index
    %c0_33 = arith.constant 0 : index
    %50 = vector.load %arg3[%c1_30, %c1_31, %c0_32, %c0_33] : memref<4x4x4x8xf32, #tpu.memory_space<vmem>>, vector<1x1x4x8xf32>
    %51 = vector.shape_cast %50 : vector<1x1x4x8xf32> to vector<4x8xf32>
    %cst_34 = arith.constant dense<0.000000e+00> : vector<128x8xf32>
    %52 = tpu.matmul %10, %51, %cst_34 {dimension_numbers = #tpu.dot_dimension_numbers<[1], [0], [0], [1], [0, 0, 1, 1], [], []>} : vector<128x4xf32>, vector<4x8xf32>, vector<128x8xf32> -> vector<128x8xf32>
    %53 = arith.addf %49, %52 : vector<128x8xf32>
    %c1_35 = arith.constant 1 : index
    %c2_36 = arith.constant 2 : index
    %c0_37 = arith.constant 0 : index
    %c0_38 = arith.constant 0 : index
    %54 = vector.load %arg3[%c1_35, %c2_36, %c0_37, %c0_38] : memref<4x4x4x8xf32, #tpu.memory_space<vmem>>, vector<1x1x4x8xf32>
    %55 = vector.shape_cast %54 : vector<1x1x4x8xf32> to vector<4x8xf32>
    %cst_39 = arith.constant dense<0.000000e+00> : vector<128x8xf32>
    %56 = tpu.matmul %14, %55, %cst_39 {dimension_numbers = #tpu.dot_dimension_numbers<[1], [0], [0], [1], [0, 0, 1, 1], [], []>} : vector<128x4xf32>, vector<4x8xf32>, vector<128x8xf32> -> vector<128x8xf32>
    %57 = arith.addf %53, %56 : vector<128x8xf32>
    %c1_40 = arith.constant 1 : index
    %c3_41 = arith.constant 3 : index
    %c0_42 = arith.constant 0 : index
    %c0_43 = arith.constant 0 : index
    %58 = vector.load %arg3[%c1_40, %c3_41, %c0_42, %c0_43] : memref<4x4x4x8xf32, #tpu.memory_space<vmem>>, vector<1x1x4x8xf32>
    %59 = vector.shape_cast %58 : vector<1x1x4x8xf32> to vector<4x8xf32>
    %cst_44 = arith.constant dense<0.000000e+00> : vector<128x8xf32>
    %60 = tpu.matmul %16, %59, %cst_44 {dimension_numbers = #tpu.dot_dimension_numbers<[1], [0], [0], [1], [0, 0, 1, 1], [], []>} : vector<128x4xf32>, vector<4x8xf32>, vector<128x8xf32> -> vector<128x8xf32>
    %61 = arith.addf %57, %60 : vector<128x8xf32>
    %62 = vector.shape_cast %61 : vector<128x8xf32> to vector<8x16x8xf32>
    %c0_45 = arith.constant 0 : index
    %c0_46 = arith.constant 0 : index
    %c0_47 = arith.constant 0 : index
    %c0_48 = arith.constant 0 : index
    %c8 = arith.constant 8 : index
    %63 = vector.load %arg5[%c0_45, %c0_46, %c0_47, %c0_48, %c8] : memref<1x8x2x16x16xf32, #tpu.memory_space<vmem>>, vector<1x8x1x16x8xf32>
    %64 = vector.shape_cast %63 : vector<1x8x1x16x8xf32> to vector<8x16x8xf32>
    %65 = vector.shape_cast %62 : vector<8x16x8xf32> to vector<1x8x1x16x8xf32>
    tpu.vector_store %arg5[%c0_45, %c0_46, %c0_47, %c0_48, %c8], %65 {strides = array<i32>} : memref<1x8x2x16x16xf32, #tpu.memory_space<vmem>>, vector<1x8x1x16x8xf32>,
    %c2_49 = arith.constant 2 : index
    %c0_50 = arith.constant 0 : index
    %c0_51 = arith.constant 0 : index
    %c0_52 = arith.constant 0 : index
    %66 = vector.load %arg3[%c2_49, %c0_50, %c0_51, %c0_52] : memref<4x4x4x8xf32, #tpu.memory_space<vmem>>, vector<1x1x4x8xf32>
    %67 = vector.shape_cast %66 : vector<1x1x4x8xf32> to vector<4x8xf32>
    %cst_53 = arith.constant dense<0.000000e+00> : vector<128x8xf32>
    %68 = tpu.matmul %12, %67, %cst_53 {dimension_numbers = #tpu.dot_dimension_numbers<[1], [0], [0], [1], [0, 0, 1, 1], [], []>} : vector<128x4xf32>, vector<4x8xf32>, vector<128x8xf32> -> vector<128x8xf32>
    %69 = arith.addf %25, %68 : vector<128x8xf32>
    %c2_54 = arith.constant 2 : index
    %c1_55 = arith.constant 1 : index
    %c0_56 = arith.constant 0 : index
    %c0_57 = arith.constant 0 : index
    %70 = vector.load %arg3[%c2_54, %c1_55, %c0_56, %c0_57] : memref<4x4x4x8xf32, #tpu.memory_space<vmem>>, vector<1x1x4x8xf32>
    %71 = vector.shape_cast %70 : vector<1x1x4x8xf32> to vector<4x8xf32>
    %cst_58 = arith.constant dense<0.000000e+00> : vector<128x8xf32>
    %72 = tpu.matmul %14, %71, %cst_58 {dimension_numbers = #tpu.dot_dimension_numbers<[1], [0], [0], [1], [0, 0, 1, 1], [], []>} : vector<128x4xf32>, vector<4x8xf32>, vector<128x8xf32> -> vector<128x8xf32>
    %73 = arith.addf %69, %72 : vector<128x8xf32>
    %c2_59 = arith.constant 2 : index
    %c2_60 = arith.constant 2 : index
    %c0_61 = arith.constant 0 : index
    %c0_62 = arith.constant 0 : index
    %74 = vector.load %arg3[%c2_59, %c2_60, %c0_61, %c0_62] : memref<4x4x4x8xf32, #tpu.memory_space<vmem>>, vector<1x1x4x8xf32>
    %75 = vector.shape_cast %74 : vector<1x1x4x8xf32> to vector<4x8xf32>
    %cst_63 = arith.constant dense<0.000000e+00> : vector<128x8xf32>
    %76 = tpu.matmul %18, %75, %cst_63 {dimension_numbers = #tpu.dot_dimension_numbers<[1], [0], [0], [1], [0, 0, 1, 1], [], []>} : vector<128x4xf32>, vector<4x8xf32>, vector<128x8xf32> -> vector<128x8xf32>
    %77 = arith.addf %73, %76 : vector<128x8xf32>
    %c2_64 = arith.constant 2 : index
    %c3_65 = arith.constant 3 : index
    %c0_66 = arith.constant 0 : index
    %c0_67 = arith.constant 0 : index
    %78 = vector.load %arg3[%c2_64, %c3_65, %c0_66, %c0_67] : memref<4x4x4x8xf32, #tpu.memory_space<vmem>>, vector<1x1x4x8xf32>
    %79 = vector.shape_cast %78 : vector<1x1x4x8xf32> to vector<4x8xf32>
    %cst_68 = arith.constant dense<0.000000e+00> : vector<128x8xf32>
    %80 = tpu.matmul %20, %79, %cst_68 {dimension_numbers = #tpu.dot_dimension_numbers<[1], [0], [0], [1], [0, 0, 1, 1], [], []>} : vector<128x4xf32>, vector<4x8xf32>, vector<128x8xf32> -> vector<128x8xf32>
    %81 = arith.addf %77, %80 : vector<128x8xf32>
    %82 = vector.shape_cast %81 : vector<128x8xf32> to vector<8x16x8xf32>
    %c0_69 = arith.constant 0 : index
    %c0_70 = arith.constant 0 : index
    %c1_71 = arith.constant 1 : index
    %c0_72 = arith.constant 0 : index
    %c0_73 = arith.constant 0 : index
    %83 = vector.load %arg5[%c0_69, %c0_70, %c1_71, %c0_72, %c0_73] : memref<1x8x2x16x16xf32, #tpu.memory_space<vmem>>, vector<1x8x1x16x8xf32>
    %84 = vector.shape_cast %83 : vector<1x8x1x16x8xf32> to vector<8x16x8xf32>
    %85 = vector.shape_cast %82 : vector<8x16x8xf32> to vector<1x8x1x16x8xf32>
    tpu.vector_store %arg5[%c0_69, %c0_70, %c1_71, %c0_72, %c0_73], %85 {strides = array<i32>} : memref<1x8x2x16x16xf32, #tpu.memory_space<vmem>>, vector<1x8x1x16x8xf32>,
    %c3_74 = arith.constant 3 : index
    %c0_75 = arith.constant 0 : index
    %c0_76 = arith.constant 0 : index
    %c0_77 = arith.constant 0 : index
    %86 = vector.load %arg3[%c3_74, %c0_75, %c0_76, %c0_77] : memref<4x4x4x8xf32, #tpu.memory_space<vmem>>, vector<1x1x4x8xf32>
    %87 = vector.shape_cast %86 : vector<1x1x4x8xf32> to vector<4x8xf32>
    %cst_78 = arith.constant dense<0.000000e+00> : vector<128x8xf32>
    %88 = tpu.matmul %14, %87, %cst_78 {dimension_numbers = #tpu.dot_dimension_numbers<[1], [0], [0], [1], [0, 0, 1, 1], [], []>} : vector<128x4xf32>, vector<4x8xf32>, vector<128x8xf32> -> vector<128x8xf32>
    %89 = arith.addf %25, %88 : vector<128x8xf32>
    %c3_79 = arith.constant 3 : index
    %c1_80 = arith.constant 1 : index
    %c0_81 = arith.constant 0 : index
    %c0_82 = arith.constant 0 : index
    %90 = vector.load %arg3[%c3_79, %c1_80, %c0_81, %c0_82] : memref<4x4x4x8xf32, #tpu.memory_space<vmem>>, vector<1x1x4x8xf32>
    %91 = vector.shape_cast %90 : vector<1x1x4x8xf32> to vector<4x8xf32>
    %cst_83 = arith.constant dense<0.000000e+00> : vector<128x8xf32>
    %92 = tpu.matmul %16, %91, %cst_83 {dimension_numbers = #tpu.dot_dimension_numbers<[1], [0], [0], [1], [0, 0, 1, 1], [], []>} : vector<128x4xf32>, vector<4x8xf32>, vector<128x8xf32> -> vector<128x8xf32>
    %93 = arith.addf %89, %92 : vector<128x8xf32>
    %c3_84 = arith.constant 3 : index
    %c2_85 = arith.constant 2 : index
    %c0_86 = arith.constant 0 : index
    %c0_87 = arith.constant 0 : index
    %94 = vector.load %arg3[%c3_84, %c2_85, %c0_86, %c0_87] : memref<4x4x4x8xf32, #tpu.memory_space<vmem>>, vector<1x1x4x8xf32>
    %95 = vector.shape_cast %94 : vector<1x1x4x8xf32> to vector<4x8xf32>
    %cst_88 = arith.constant dense<0.000000e+00> : vector<128x8xf32>
    %96 = tpu.matmul %20, %95, %cst_88 {dimension_numbers = #tpu.dot_dimension_numbers<[1], [0], [0], [1], [0, 0, 1, 1], [], []>} : vector<128x4xf32>, vector<4x8xf32>, vector<128x8xf32> -> vector<128x8xf32>
    %97 = arith.addf %93, %96 : vector<128x8xf32>
    %c3_89 = arith.constant 3 : index
    %c3_90 = arith.constant 3 : index
    %c0_91 = arith.constant 0 : index
    %c0_92 = arith.constant 0 : index
    %98 = vector.load %arg3[%c3_89, %c3_90, %c0_91, %c0_92] : memref<4x4x4x8xf32, #tpu.memory_space<vmem>>, vector<1x1x4x8xf32>
    %99 = vector.shape_cast %98 : vector<1x1x4x8xf32> to vector<4x8xf32>
    %cst_93 = arith.constant dense<0.000000e+00> : vector<128x8xf32>
    %100 = tpu.matmul %22, %99, %cst_93 {dimension_numbers = #tpu.dot_dimension_numbers<[1], [0], [0], [1], [0, 0, 1, 1], [], []>} : vector<128x4xf32>, vector<4x8xf32>, vector<128x8xf32> -> vector<128x8xf32>
    %101 = arith.addf %97, %100 : vector<128x8xf32>
    %102 = vector.shape_cast %101 : vector<128x8xf32> to vector<8x16x8xf32>
    %c0_94 = arith.constant 0 : index
    %c0_95 = arith.constant 0 : index
    %c1_96 = arith.constant 1 : index
    %c0_97 = arith.constant 0 : index
    %c8_98 = arith.constant 8 : index
    %103 = vector.load %arg5[%c0_94, %c0_95, %c1_96, %c0_97, %c8_98] : memref<1x8x2x16x16xf32, #tpu.memory_space<vmem>>, vector<1x8x1x16x8xf32>
    %104 = vector.shape_cast %103 : vector<1x8x1x16x8xf32> to vector<8x16x8xf32>
    %105 = vector.shape_cast %102 : vector<8x16x8xf32> to vector<1x8x1x16x8xf32>
    tpu.vector_store %arg5[%c0_94, %c0_95, %c1_96, %c0_97, %c8_98], %105 {strides = array<i32>} : memref<1x8x2x16x16xf32, #tpu.memory_space<vmem>>, vector<1x8x1x16x8xf32>,
    return
  }
  func.func @transform_0(%arg0: i32, %arg1: i32) -> (i32, i32, i32, i32) {
    %c0_i32 = arith.constant 0 : i32
    %c0_i32_0 = arith.constant 0 : i32
    %c0_i32_1 = arith.constant 0 : i32
    %c0_i32_2 = arith.constant 0 : i32
    return %arg0, %c0_i32, %c0_i32_0, %c0_i32_1 : i32, i32, i32, i32
  }
  func.func @transform_1(%arg0: i32, %arg1: i32) -> (i32, i32, i32, i32) {
    %c0_i32 = arith.constant 0 : i32
    %c0_i32_0 = arith.constant 0 : i32
    %c0_i32_1 = arith.constant 0 : i32
    %c0_i32_2 = arith.constant 0 : i32
    %c0_i32_3 = arith.constant 0 : i32
    return %c0_i32, %c0_i32_0, %c0_i32_1, %c0_i32_2 : i32, i32, i32, i32
  }
  func.func @transform_2(%arg0: i32, %arg1: i32) -> (i32, i32) {
    %c0_i32 = arith.constant 0 : i32
    %c0_i32_0 = arith.constant 0 : i32
    %c0_i32_1 = arith.constant 0 : i32
    return %c0_i32, %c0_i32_0 : i32, i32
  }
  func.func @transform_3(%arg0: i32, %arg1: i32) -> (i32, i32, i32, i32, i32) {
    %c0_i32 = arith.constant 0 : i32
    %c0_i32_0 = arith.constant 0 : i32
    %c0_i32_1 = arith.constant 0 : i32
    %c0_i32_2 = arith.constant 0 : i32
    return %arg0, %arg1, %c0_i32, %c0_i32_0, %c0_i32_1 : i32, i32, i32, i32, i32
  }
}

</mosaic_0001>

<bundles_post_ra>
// kernel: tpu_custom_call.1
= control target key start
LH: loop header
LB: loop body
LE: loop exit
PB: predicated region body
PF: predicated region fallthrough
CT: control target
= control target key end

     0   :  { %8 = vsyncpa [#allocation3], 0  ;;  %s6117_s0 = inlined_call_operand.vmem [shape: f32[2,18,18,4], index: 0, kind: input, shape index: {}]   ;;  %s6118_s1 = inlined_call_operand.vmem [shape: f32[4,4,4,8], index: 1, kind: input, shape index: {}]   ;;  %s6119_s2 = inlined_call_operand.vmem [shape: f32[1,8], index: 2, kind: input, shape index: {}]   ;;  %s6120_s3 = inlined_call_operand.hbm [shape: f32[2,16,2,16,16], index: 3, kind: output, shape index: {}]  }
   0x1   :  { %10 = vsyncpa [#allocation3 + $0x1], 0  ;;  %s4899_s12 = smov 0   ;;  %s4901_s13 = smov 0  }
   0x2   :  { %s4903_s14 = smov 0   ;;  %s4905_s15 = smov 0  }
   0x3   :  { %s4907_s16 = smov 0   ;;  %s4909_s17 = smov 0  }
   0x4   :  { %s4911_s18 = smov 0   ;;  %s4913_s19 = smov 0  }
   0x5 LB: > { %s3426_s20 = sadd.s32 4294967295, %s4874_s19   ;;  %s3427_s21 = sadd.s32 4294967294, %s4874_s19   ;;  %s4874_s19 = sphi %s4913_s19, %s16_s19   ;;  %s4870_s18 = sphi %s4911_s18, %s6129_s18   ;;  %s4866_s17 = sphi %s4909_s17, %s6128_s17   ;;  %s4862_s16 = sphi %s4907_s16, %s6127_s16   ;;  %s4858_s15 = sphi %s4905_s15, %s6126_s15   ;;  %s4854_s14 = sphi %s4903_s14, %s6125_s14   ;;  %s4850_s13 = sphi %s4901_s13, %s6124_s13   ;;  %s4846_s12 = sphi %s4899_s12, %s6123_s12  }
   0x6   : > { %s25_s22 = sadd.s32 1, %s4866_s17  ;;  %s28_s23 = sadd.s32 1, %s4870_s18 }
   0x7   : > { %p26_p0 = scmp.ge.s32.totalorder %s25_s22, 2  ;;  %p115_p1 = scmp.ne.s32.totalorder %s4854_s14, %s4850_s13 }
   0x8   : > { %p116_p2 = scmp.eq.s32.totalorder %s3426_s20, 3  ;;  %p121_p5 = scmp.ne.s32.totalorder %s4850_s13, %s4846_s12 }
   0x9   : > { %s6131_s22 = smov (%p26_p0, %s25_s22), 0  ;;  %s6133_s23 = smov (!%p26_p0, %s28_s23), %s4870_s18 }
   0xa   : > { %s101_s24 = ssub.s32 %s4866_s17, %s6131_s22  ;;  %p4950_p3 = por %p116_p2, %p115_p1 }
   0xb   : > { %p30_p4 = scmp.ge.s32.totalorder %s6133_s23, 2  ;;  %p122_p6 = scmp.eq.s32.totalorder %s3427_s21, 3 }
   0xc   : > { %p3429_p7 = scmp.ge.s32.totalorder %s4874_s19, 1  ;;  %p154_p9 = scmp.lt.s32.totalorder %s4874_s19, 5 }
   0xd   : > { %s6135_s23 = smov (%p30_p4, %s6133_s23), 0  ;;  %p4959_p8 = por %p122_p6, %p121_p5 }
   0xe   : > { %s100_s27 = ssub.s32 %s4870_s18, %s6135_s23  ;;  %s105_s28 = sadd.s32 1, %s4854_s14 }
   0xf   : > { %s102_s29 = sor.u32 %s101_s24, %s100_s27  ;;  %p155_p10 = pnand %p3429_p7, %p154_p9 }
  0x10   : > { %p103_p11 = scmp.eq.s32.totalorder %s102_s29, 0  ;;  %vm390_vm0 = vcmask (!%p155_p10), 1043456   ;;  %v3506_v0 = vld [vmem:[%s6118_s1 + $0x10] sm:$0xf] (!%p155_p10)  ;;  %p178_p12 = scmp.lt.s32.totalorder (!%p155_p10), %s4862_s16, 1  ;;  %vm241_vm1 = vcmask (!%p155_p10), 1046528  }
  0x11   : > { %158 = sbr.rel (%p155_p10) target bundleno = 632 (0x278), region = 32  ;;  %4138 = vmatprep.subr.msk.mxu1 (!%p155_p10), %vm390_vm0, %v3506_v0  ;;  %v3524_v1 = vld [vmem:[%s6118_s1 + $0x14] sm:$0xf] (!%p155_p10)  ;;  %v356_v2 = vld [vmem:[%s6118_s1] sm:$0xf] (!%p155_p10)  ;;  %vm357_vm2 = vcmask (!%p155_p10), 31744  }
  0x12   : > { %s4968_s30 = scalar_select %p103_p11, %s4854_s14, %s105_s28  }
  0x13   : > { %4139 = vmatpush3.msk.msra.mxu1 (!%p155_p10), %vm390_vm0, %v3506_v0  ;;  %4034 = vmatprep.subr.msk.mxu0 (!%p155_p10), %vm390_vm0, %v356_v2  ;;  %v3452_v3 = vld [vmem:[%s6118_s1 + $0x4] sm:$0xf] (!%p155_p10)  ;;  %s3433_s21 = smul.u32 (!%p155_p10), 192, %s4858_s15  ;;  %v4999_v4 = vld [vmem:[%s6118_s1 + $0x8] sm:$0xf] (!%p155_p10)  ;;  %vm282_vm3 = vcmask (!%p155_p10), 1045504  }
  0x14   : > { %4164 = vmatprep.subr.msk.mxu1 (!%p155_p10), %vm390_vm0, %v3524_v1  ;;  %4035 = vmatpush3.msk.msra.mxu0 (!%p155_p10), %vm390_vm0, %v356_v2  ;;  %v5063_v27 = vld [vmem:[%s6118_s1 + $0x18] sm:$0xf] (!%p155_p10)  ;;  %vm1093_vm4 = vcmask (!%p155_p10), 64512   ;;  %s4876_s7 = smov (!%p155_p10), 8   ;;  %vm1874_vm5 = vcmask (!%p155_p10), 130112   ;;  %s3761_s8 = sshll.u32 (!%p155_p10), %s4858_s15, 5 }
  0x15   : > { %4060 = vmatprep.subr.msk.mxu0 (!%p155_p10), %vm390_vm0, %v3452_v3  ;;  %s3757_s9 = sshll.u32 (!%p155_p10), %s4862_s16, 6 }
  0x18   : > { %s179_s10 = scalar_select %p178_p12, %s4862_s16, 1 }
  0x1a   : > { %s4706_s24 = smul.u32 432, %s179_s10  ;;  %s3342_s10 = sadd.s32 %s3761_s8, %s3757_s9 }
  0x1b   : > { %s3758_s11 = sshll.u32 %s3342_s10, 7 }
  0x1c   : > { %s182_s29 = scalar_lea.vmem %s6117_s0, %s4706_s24 }
  0x1d   : > { %s4994_s4 = scalar_lea.vmem %s182_s29, %s3433_s21  ;;  %s6054_s21 = scalar_lea.hbm %s6120_s3, %s3758_s11 }
  0x1e   : > { %v5002_v5 = vld [vmem:[%s4994_s4] sm:$0xff]  ;;  %v5005_v6 = vld [vmem:[%s4994_s4 + $0x8] sm:$0xff]  ;;  %v5008_v7 = vld [vmem:[%s4994_s4 + $0x10] sm:$0x3] }
  0x1f   : > { %v242_v8 = vrot.slane %v5002_v5, 1  ;;  %v243_v9 = vrot.slane %v5005_v6, 1  ;;  %v245_v10 = vrot.slane %v5008_v7, 1  ;;  %v5014_v11 = vld [vmem:[%s4994_s4 + $0x18] sm:$0xff]  ;;  %v5017_v12 = vld [vmem:[%s4994_s4 + $0x20] sm:$0xff]  ;;  %4036 = vmatprep.mubr.msk.f32.mxu0 %vm357_vm2, %v5002_v5  ;;  %v5027_v16 = vld [vmem:[%s4994_s4 + $0x30] sm:$0xff] }
  0x20   : > { %v247_v13 = vrot.slane %v5014_v11, 1  ;;  %v248_v14 = vrot.slane %v5017_v12, 1  ;;  %v5024_v15 = vld [vmem:[%s4994_s4 + $0x28] sm:$0x3]  ;;  %v5030_v17 = vld [vmem:[%s4994_s4 + $0x38] sm:$0xff]  ;;  %4037 = vmatmul.mubr.msk.f32.vlgmr.msra.gmra.mrb[0].mxu0 %vm357_vm2, %v5005_v6  ;;  %v252_v21 = vrot.slane %v5027_v16, 1 }
  0x21   : > { %v5035_v18 = vsel %vm241_vm1, %v242_v8, %v243_v9  ;;  %v5038_v19 = vsel %vm241_vm1, %v243_v9, %v245_v10  ;;  %v250_v20 = vrot.slane %v5024_v15, 1  ;;  %v5043_v22 = vld [vmem:[%s4994_s4 + $0x40] sm:$0x3]  ;;  %4039 = vmatprep.mubr.msk.f32.mxu0 %vm357_vm2, %v5014_v11  ;;  %4061 = vmatpush3.msk.msra.mxu0 %vm390_vm0, %v3452_v3  ;;  %v253_v24 = vrot.slane %v5030_v17, 1  ;;  %v5055_v25 = vld [vmem:[%s4994_s4 + $0x48] sm:$0xff]  ;;  %v5058_v26 = vld [vmem:[%s4994_s4 + $0x50] sm:$0xff] }
  0x22   : > { %4140 = vmatprep.mubr.msk.f32.mxu1 %vm357_vm2, %v5035_v18  ;;  %v5051_v23 = vsel %vm241_vm1, %v247_v13, %v248_v14  ;;  %4086 = vmatprep.subr.msk.mxu0 %vm390_vm0, %v4999_v4  ;;  %v255_v29 = vrot.slane %v5043_v22, 1  ;;  %v257_v31 = vrot.slane %v5055_v25, 1  ;;  %v258_v32 = vrot.slane %v5058_v26, 1  ;;  %v5082_v33 = vld [vmem:[%s4994_s4 + $0x58] sm:$0x3]  ;;  %v5089_v34 = vld [vmem:[%s4994_s4 + $0x60] sm:$0xff] }
  0x23   : > { %4141 = vmatmul.mubr.msk.f32.vlgmr.msra.gmra.mrb[0].mxu1 %vm357_vm2, %v5038_v19  ;;  %v5073_v28 = vsel %vm241_vm1, %v248_v14, %v250_v20  ;;  %v5077_v30 = vsel %vm241_vm1, %v252_v21, %v253_v24  ;;  %v5092_v35 = vld [vmem:[%s4994_s4 + $0x68] sm:$0xff]  ;;  %v260_v37 = vrot.slane %v5082_v33, 1  ;;  %v262_v39 = vrot.slane %v5089_v34, 1  ;;  %v5110_v41 = vld [vmem:[%s4994_s4 + $0x70] sm:$0x3]  ;;  %v5115_v42 = vld [vmem:[%s4994_s4 + $0x78] sm:$0xff] }
  0x24   : > { %4165 = vmatpush3.msk.msra.mxu1 %vm390_vm0, %v3524_v1  ;;  %4143 = vmatprep.mubr.msk.f32.mxu1 %vm357_vm2, %v5051_v23  ;;  %v5101_v36 = vsel %vm241_vm1, %v253_v24, %v255_v29  ;;  %v5105_v38 = vsel %vm241_vm1, %v257_v31, %v258_v32  ;;  %v263_v40 = vrot.slane %v5092_v35, 1  ;;  %v5118_v43 = vld [vmem:[%s4994_s4 + $0x80] sm:$0xff]  ;;  %v265_v45 = vrot.slane %v5110_v41, 1  ;;  %v5136_v49 = vld [vmem:[%s4994_s4 + $0x88] sm:$0x3]  ;;  %v5141_v50 = vld [vmem:[%s4994_s4 + $0x90] sm:$0xff] }
  0x25   : > { %4040 = vmatmul.mubr.msk.f32.gmra.mrb[2].mxu0 %vm357_vm2, %v5017_v12  ;;  %4190 = vmatprep.subr.msk.mxu1 %vm390_vm0, %v5063_v27  ;;  %v5127_v44 = vsel %vm241_vm1, %v258_v32, %v260_v37  ;;  %v267_v47 = vrot.slane %v5115_v42, 1  ;;  %v268_v48 = vrot.slane %v5118_v43, 1  ;;  %v5144_v51 = vld [vmem:[%s4994_s4 + $0x98] sm:$0xff]  ;;  %v270_v53 = vrot.slane %v5136_v49, 1  ;;  %v5162_v57 = vld [vmem:[%s4994_s4 + $0xa0] sm:$0x3] }
  0x26   : > { %4042 = vmatprep.mubr.msk.f32.mxu0 %vm357_vm2, %v5027_v16  ;;  %v5131_v46 = vsel %vm241_vm1, %v262_v39, %v263_v40  ;;  %v5153_v52 = vsel %vm241_vm1, %v263_v40, %v265_v45  ;;  %v272_v55 = vrot.slane %v5141_v50, 1  ;;  %v273_v56 = vrot.slane %v5144_v51, 1  ;;  %v5167_v58 = vld [vmem:[%s4994_s4 + $0xa8] sm:$0xff]  ;;  %v5170_v59 = vld [vmem:[%s4994_s4 + $0xb0] sm:$0xff]  ;;  %v5188_v1 = vld [vmem:[%s4994_s4 + $0xb8] sm:$0x3] }
  0x27   : > { %4144 = vmatmul.mubr.msk.f32.gmra.mrb[2].mxu1 %vm357_vm2, %v5073_v28  ;;  %v5157_v54 = vsel %vm241_vm1, %v267_v47, %v268_v48  ;;  %v5179_v60 = vsel %vm241_vm1, %v268_v48, %v270_v53  ;;  %v275_v61 = vrot.slane %v5162_v57, 1  ;;  %v277_v63 = vrot.slane %v5167_v58, 1  ;;  %v5234_v24 = vld [vmem:[%s6118_s1 + $0xc] sm:$0xf] }
  0x28   : > { %4146 = vmatprep.mubr.msk.f32.mxu1 %vm357_vm2, %v5077_v30  ;;  %v5183_v62 = vsel %vm241_vm1, %v272_v55, %v273_v56  ;;  %v278_v0 = vrot.slane %v5170_v59, 1  ;;  %v280_v3 = vrot.slane %v5188_v1, 1  ;;  %v283_v9 = vrot.slane %v5002_v5, 2 }
  0x29   : > { %4043 = vmatmul.mubr.msk.f32.gmra.mrb[4].mxu0 %vm357_vm2, %v5030_v17  ;;  %v5199_v2 = vsel %vm241_vm1, %v273_v56, %v275_v61  ;;  %v284_v10 = vrot.slane %v5005_v6, 2  ;;  %v286_v13 = vrot.slane %v5008_v7, 2  ;;  %v288_v6 = vrot.slane %v5014_v11, 2 }
  0x2a   : > { %4045 = vmatprep.mubr.msk.f32.mxu0 %vm357_vm2, %v5055_v25  ;;  %v5203_v8 = vsel %vm241_vm1, %v277_v63, %v278_v0  ;;  %v5217_v14 = vsel %vm241_vm1, %v278_v0, %v280_v3  ;;  %v289_v20 = vrot.slane %v5017_v12, 2  ;;  %v291_v21 = vrot.slane %v5024_v15, 2  ;;  %v5248_v15 = vld [vmem:[%s6118_s1 + $0x1c] sm:$0xf] }
  0x2b   : > { %4147 = vmatmul.mubr.msk.f32.gmra.mrb[4].mxu1 %vm357_vm2, %v5101_v36  ;;  %v285_v5 = vsel %vm282_vm3, %v283_v9, %v284_v10  ;;  %v287_v7 = vsel %vm282_vm3, %v284_v10, %v286_v13  ;;  %v293_v31 = vrot.slane %v5027_v16, 2  ;;  %v296_v32 = vrot.slane %v5043_v22, 2 }
  0x2c   : > { %4149 = vmatprep.mubr.msk.f32.mxu1 %vm357_vm2, %v5105_v38  ;;  %v5237_v29 = vsel %vm282_vm3, %v288_v6, %v289_v20  ;;  %v299_v39 = vrot.slane %v5058_v26, 2  ;;  %v303_v45 = vrot.slane %v5089_v34, 2  ;;  %v304_v47 = vrot.slane %v5092_v35, 2 }
  0x2d   : > { %4046 = vmatmul.mubr.msk.f32.gmra.mrb[6].mxu0 %vm357_vm2, %v5058_v26  ;;  %v306_v48 = vrot.slane %v5110_v41, 2  ;;  %v308_v55 = vrot.slane %v5115_v42, 2  ;;  %v309_v56 = vrot.slane %v5118_v43, 2  ;;  %v311_v61 = vrot.slane %v5136_v49, 2 }
  0x2e   : > { %4048 = vmatprep.mubr.msk.f32.mxu0 %vm357_vm2, %v5089_v34  ;;  %v5300_v53 = vsel %vm282_vm3, %v303_v45, %v304_v47  ;;  %v313_v0 = vrot.slane %v5141_v50, 2  ;;  %v314_v3 = vrot.slane %v5144_v51, 2  ;;  %v316_v9 = vrot.slane %v5162_v57, 2  ;;  %v3596_v45 = vld [vmem:[%s6118_s1 + $0x24] sm:$0xf] }
  0x2f   : > { %4150 = vmatmul.mubr.msk.f32.gmra.mrb[6].mxu1 %vm357_vm2, %v5127_v44  ;;  %v5313_v41 = vsel %vm282_vm3, %v304_v47, %v306_v48  ;;  %v5317_v63 = vsel %vm282_vm3, %v308_v55, %v309_v56  ;;  %v5330_v49 = vsel %vm282_vm3, %v309_v56, %v311_v61  ;;  %v318_v13 = vrot.slane %v5167_v58, 2  ;;  %v3684_v47 = vld [vmem:[%s6118_s1 + $0x34] sm:$0xf] }
  0x30   : > { %4152 = vmatprep.mubr.msk.f32.mxu1 %vm357_vm2, %v5131_v46  ;;  %v5334_v10 = vsel %vm282_vm3, %v313_v0, %v314_v3  ;;  %v5347_v57 = vsel %vm282_vm3, %v314_v3, %v316_v9  ;;  %v321_v6 = vrot.slane %v5188_v1, 2  ;;  %v3578_v1 = vld [vmem:[%s6118_s1 + $0x20] sm:$0xf]  ;;  %v3614_v3 = vld [vmem:[%s6118_s1 + $0x28] sm:$0xf] }
  0x31   : > { %4049 = vmatmul.mubr.msk.f32.gmra.mrb[8].mxu0 %vm357_vm2, %v5092_v35 }
  0x32   : > { %4051 = vmatprep.mubr.msk.f32.mxu0 %vm357_vm2, %v5115_v42 }
  0x33   : > { %4153 = vmatmul.mubr.msk.f32.gmra.mrb[8].mxu1 %vm357_vm2, %v5153_v52 }
  0x34   : > { %4155 = vmatprep.mubr.msk.f32.mxu1 %vm357_vm2, %v5157_v54 }
  0x35   : > { %4052 = vmatmul.mubr.msk.f32.gmra.mrb[10].mxu0 %vm357_vm2, %v5118_v43 }
  0x36   : > { %4054 = vmatprep.mubr.msk.f32.mxu0 %vm357_vm2, %v5141_v50 }
  0x37   : > { %4156 = vmatmul.mubr.msk.f32.gmra.mrb[10].mxu1 %vm357_vm2, %v5179_v60 }
  0x38   : > { %4158 = vmatprep.mubr.msk.f32.mxu1 %vm357_vm2, %v5183_v62 }
  0x39   : > { %4055 = vmatmul.mubr.msk.f32.gmra.mrb[12].mxu0 %vm357_vm2, %v5144_v51 }
  0x3a   : > { %4057 = vmatprep.mubr.msk.f32.mxu0 %vm357_vm2, %v5167_v58 }
  0x3b   : > { %4159 = vmatmul.mubr.msk.f32.gmra.mrb[12].mxu1 %vm357_vm2, %v5199_v2 }
  0x3c   : > { %4161 = vmatprep.mubr.msk.f32.mxu1 %vm357_vm2, %v5203_v8 }
  0x3d   : > { %4058 = vmatmul.mubr.msk.f32.gmra.mrb[14].mxu0 %vm357_vm2, %v5170_v59 }
  0x3e   : > { %4062 = vmatprep.mubr.msk.f32.mxu0 %vm357_vm2, %v5035_v18  ;;  %v294_v18 = vrot.slane %v5030_v17, 2 }
  0x3f   : > { %4162 = vmatmul.mubr.msk.f32.gmra.mrb[14].mxu1 %vm357_vm2, %v5217_v14 }
  0x40   : > { %4166 = vmatprep.mubr.msk.f32.mxu1 %vm357_vm2, %v285_v5  ;;  %v5264_v37 = vsel %vm282_vm3, %v293_v31, %v294_v18  ;;  %v5279_v22 = vsel %vm282_vm3, %v294_v18, %v296_v32  ;;  %v319_v5 = vrot.slane %v5170_v59, 2  ;;  %v5422_v31 = vld [vmem:[%s4994_s4 + $0xc8] sm:$0xff]  ;;  %v213_v32 = vld [vmem:[%s4994_s4 + $0xd0] sm:$0x3] }
  0x41   : > { %4063 = vmatmul.mubr.msk.f32.vlgmr.msra.gmra.mrb[0].mxu0 %vm357_vm2, %v5038_v19  ;;  %v5260_v19 = vsel %vm282_vm3, %v289_v20, %v291_v21  ;;  %v3666_v21 = vld [vmem:[%s6118_s1 + $0x30] sm:$0xf]  ;;  %v332_v55 = vrot.slane %v5422_v31, 2  ;;  %v334_v56 = vrot.slane %v213_v32, 2 }
  0x42   : > { %4065 = vmatprep.mubr.msk.f32.mxu0 %vm357_vm2, %v5051_v23  ;;  %4087 = vmatpush3.msk.msra.mxu0 %vm390_vm0, %v4999_v4  ;;  %v298_v4 = vrot.slane %v5055_v25, 2  ;;  %v5351_v20 = vsel %vm282_vm3, %v318_v13, %v319_v5 }
  0x43   : > { %4167 = vmatmul.mubr.msk.f32.vlgmr.msra.gmra.mrb[0].mxu1 %vm357_vm2, %v287_v7  ;;  %4112 = vmatprep.subr.msk.mxu0 %vm390_vm0, %v5234_v24  ;;  %v5362_v7 = vsel %vm282_vm3, %v319_v5, %v321_v6  ;;  %v5535_v0 = vsel %vm282_vm3, %v332_v55, %v334_v56 }
  0x44   : > { %4191 = vmatpush3.msk.msra.mxu1 %vm390_vm0, %v5063_v27  ;;  %4169 = vmatprep.mubr.msk.f32.mxu1 %vm357_vm2, %v5237_v29  ;;  %v301_v27 = vrot.slane %v5082_v33, 2  ;;  %v5283_v40 = vsel %vm282_vm3, %v298_v4, %v299_v39  ;;  %v329_v4 = vrot.slane %v213_v32, 1 }
  0x45   : > { %4066 = vmatmul.mubr.msk.f32.gmra.mrb[2].mxu0 %vm357_vm2, %v5073_v28  ;;  %4216 = vmatprep.subr.msk.mxu1 %vm390_vm0, %v5248_v15 }
  0x46   : > { %4068 = vmatprep.mubr.msk.f32.mxu0 %vm357_vm2, %v5077_v30  ;;  %v5296_v33 = vsel %vm282_vm3, %v299_v39, %v301_v27 }
  0x47   : > { %4170 = vmatmul.mubr.msk.f32.gmra.mrb[2].mxu1 %vm357_vm2, %v5260_v19 }
  0x48   : > { %4172 = vmatprep.mubr.msk.f32.mxu1 %vm357_vm2, %v5264_v37 }
  0x49   : > { %4069 = vmatmul.mubr.msk.f32.gmra.mrb[4].mxu0 %vm357_vm2, %v5101_v36 }
  0x4a   : > { %4071 = vmatprep.mubr.msk.f32.mxu0 %vm357_vm2, %v5105_v38 }
  0x4b   : > { %4173 = vmatmul.mubr.msk.f32.gmra.mrb[4].mxu1 %vm357_vm2, %v5279_v22 }
  0x4c   : > { %4175 = vmatprep.mubr.msk.f32.mxu1 %vm357_vm2, %v5283_v40 }
  0x4d   : > { %4072 = vmatmul.mubr.msk.f32.gmra.mrb[6].mxu0 %vm357_vm2, %v5127_v44 }
  0x4e   : > { %4074 = vmatprep.mubr.msk.f32.mxu0 %vm357_vm2, %v5131_v46 }
  0x4f   : > { %4176 = vmatmul.mubr.msk.f32.gmra.mrb[6].mxu1 %vm357_vm2, %v5296_v33 }
  0x50   : > { %4178 = vmatprep.mubr.msk.f32.mxu1 %vm357_vm2, %v5300_v53 }
  0x51   : > { %4075 = vmatmul.mubr.msk.f32.gmra.mrb[8].mxu0 %vm357_vm2, %v5153_v52 }
  0x52   : > { %4077 = vmatprep.mubr.msk.f32.mxu0 %vm357_vm2, %v5157_v54 }
  0x53   : > { %4179 = vmatmul.mubr.msk.f32.gmra.mrb[8].mxu1 %vm357_vm2, %v5313_v41 }
  0x54   : > { %4181 = vmatprep.mubr.msk.f32.mxu1 %vm357_vm2, %v5317_v63 }
  0x55   : > { %4078 = vmatmul.mubr.msk.f32.gmra.mrb[10].mxu0 %vm357_vm2, %v5179_v60 }
  0x56   : > { %4080 = vmatprep.mubr.msk.f32.mxu0 %vm357_vm2, %v5183_v62 }
  0x57   : > { %4182 = vmatmul.mubr.msk.f32.gmra.mrb[10].mxu1 %vm357_vm2, %v5330_v49 }
  0x58   : > { %4184 = vmatprep.mubr.msk.f32.mxu1 %vm357_vm2, %v5334_v10 }
  0x59   : > { %4081 = vmatmul.mubr.msk.f32.gmra.mrb[12].mxu0 %vm357_vm2, %v5199_v2 }
  0x5a   : > { %4083 = vmatprep.mubr.msk.f32.mxu0 %vm357_vm2, %v5203_v8 }
  0x5b   : > { %4185 = vmatmul.mubr.msk.f32.gmra.mrb[12].mxu1 %vm357_vm2, %v5347_v57 }
  0x5c   : > { %4187 = vmatprep.mubr.msk.f32.mxu1 %vm357_vm2, %v5351_v20 }
  0x5d   : > { %4084 = vmatmul.mubr.msk.f32.gmra.mrb[14].mxu0 %vm357_vm2, %v5217_v14 }
  0x5e   : > { %4088 = vmatprep.mubr.msk.f32.mxu0 %vm357_vm2, %v5014_v11 }
  0x5f   : > { %4188 = vmatmul.mubr.msk.f32.gmra.mrb[14].mxu1 %vm357_vm2, %v5362_v7 }
  0x60   : > { %4192 = vmatprep.mubr.msk.f32.mxu1 %vm357_vm2, %v5051_v23 }
  0x61   : > { %4089 = vmatmul.mubr.msk.f32.vlgmr.msra.gmra.mrb[0].mxu0 %vm357_vm2, %v5017_v12 }
  0x62   : > { %4091 = vmatprep.mubr.msk.f32.mxu0 %vm357_vm2, %v5027_v16  ;;  %4113 = vmatpush3.msk.msra.mxu0 %vm390_vm0, %v5234_v24  ;;  %v5419_v24 = vld [vmem:[%s4994_s4 + $0xc0] sm:$0xff] }
  0x63   : > { %4193 = vmatmul.mubr.msk.f32.vlgmr.msra.gmra.mrb[0].mxu1 %vm357_vm2, %v5073_v28  ;;  %4242 = vmatprep.subr.msk.mxu0 %vm390_vm0, %v3578_v1  ;;  %v326_v18 = vrot.slane %v5419_v24, 1  ;;  %v331_v48 = vrot.slane %v5419_v24, 2 }
  0x64   : > { %4217 = vmatpush3.msk.msra.mxu1 %vm390_vm0, %v5248_v15  ;;  %4195 = vmatprep.mubr.msk.f32.mxu1 %vm357_vm2, %v5077_v30  ;;  %v327_v15 = vrot.slane %v5422_v31, 1 }
  0x65   : > { %4092 = vmatmul.mubr.msk.f32.gmra.mrb[2].mxu0 %vm357_vm2, %v5030_v17  ;;  %4346 = vmatprep.subr.msk.mxu1 %vm390_vm0, %v3666_v21  ;;  %v5524_v61 = vsel %vm282_vm3, %v331_v48, %v332_v55 }
  0x66   : > { %4094 = vmatprep.mubr.msk.f32.mxu0 %vm357_vm2, %v5055_v25  ;;  %v5442_v39 = vsel %vm241_vm1, %v326_v18, %v327_v15  ;;  %v5453_v27 = vsel %vm241_vm1, %v327_v15, %v329_v4 }
  0x67   : > { %4196 = vmatmul.mubr.msk.f32.gmra.mrb[2].mxu1 %vm357_vm2, %v5101_v36 }
  0x68   : > { %4198 = vmatprep.mubr.msk.f32.mxu1 %vm357_vm2, %v5105_v38 }
  0x69   : > { %4095 = vmatmul.mubr.msk.f32.gmra.mrb[4].mxu0 %vm357_vm2, %v5058_v26 }
  0x6a   : > { %4097 = vmatprep.mubr.msk.f32.mxu0 %vm357_vm2, %v5089_v34 }
  0x6b   : > { %4199 = vmatmul.mubr.msk.f32.gmra.mrb[4].mxu1 %vm357_vm2, %v5127_v44 }
  0x6c   : > { %4201 = vmatprep.mubr.msk.f32.mxu1 %vm357_vm2, %v5131_v46 }
  0x6d   : > { %4098 = vmatmul.mubr.msk.f32.gmra.mrb[6].mxu0 %vm357_vm2, %v5092_v35 }
  0x6e   : > { %4100 = vmatprep.mubr.msk.f32.mxu0 %vm357_vm2, %v5115_v42 }
  0x6f   : > { %4202 = vmatmul.mubr.msk.f32.gmra.mrb[6].mxu1 %vm357_vm2, %v5153_v52 }
  0x70   : > { %4204 = vmatprep.mubr.msk.f32.mxu1 %vm357_vm2, %v5157_v54 }
  0x71   : > { %4101 = vmatmul.mubr.msk.f32.gmra.mrb[8].mxu0 %vm357_vm2, %v5118_v43 }
  0x72   : > { %4103 = vmatprep.mubr.msk.f32.mxu0 %vm357_vm2, %v5141_v50 }
  0x73   : > { %4205 = vmatmul.mubr.msk.f32.gmra.mrb[8].mxu1 %vm357_vm2, %v5179_v60 }
  0x74   : > { %4207 = vmatprep.mubr.msk.f32.mxu1 %vm357_vm2, %v5183_v62 }
  0x75   : > { %4104 = vmatmul.mubr.msk.f32.gmra.mrb[10].mxu0 %vm357_vm2, %v5144_v51 }
  0x76   : > { %4106 = vmatprep.mubr.msk.f32.mxu0 %vm357_vm2, %v5167_v58 }
  0x77   : > { %4208 = vmatmul.mubr.msk.f32.gmra.mrb[10].mxu1 %vm357_vm2, %v5199_v2 }
  0x78   : > { %4210 = vmatprep.mubr.msk.f32.mxu1 %vm357_vm2, %v5203_v8 }
  0x79   : > { %4107 = vmatmul.mubr.msk.f32.gmra.mrb[12].mxu0 %vm357_vm2, %v5170_v59 }
  0x7a   : > { %4109 = vmatprep.mubr.msk.f32.mxu0 %vm357_vm2, %v5419_v24 }
  0x7b   : > { %4211 = vmatmul.mubr.msk.f32.gmra.mrb[12].mxu1 %vm357_vm2, %v5217_v14 }
  0x7c   : > { %4213 = vmatprep.mubr.msk.f32.mxu1 %vm357_vm2, %v5442_v39 }
  0x7d   : > { %4110 = vmatmul.mubr.msk.f32.gmra.mrb[14].mxu0 %vm357_vm2, %v5422_v31 }
  0x7e   : > { %4114 = vmatprep.mubr.msk.f32.mxu0 %vm357_vm2, %v5051_v23 }
  0x7f   : > { %4214 = vmatmul.mubr.msk.f32.gmra.mrb[14].mxu1 %vm357_vm2, %v5453_v27 }
  0x80   : > { %4218 = vmatprep.mubr.msk.f32.mxu1 %vm357_vm2, %v5237_v29 }
  0x81   : > { %4115 = vmatmul.mubr.msk.f32.vlgmr.msra.gmra.mrb[0].mxu0 %vm357_vm2, %v5073_v28 }
  0x82   : > { %4117 = vmatprep.mubr.msk.f32.mxu0 %vm357_vm2, %v5077_v30  ;;  %4243 = vmatpush3.msk.msra.mxu0 %vm390_vm0, %v3578_v1 }
  0x83   : > { %4219 = vmatmul.mubr.msk.f32.vlgmr.msra.gmra.mrb[0].mxu1 %vm357_vm2, %v5260_v19  ;;  %4268 = vmatprep.subr.msk.mxu0 %vm390_vm0, %v3596_v45 }
  0x84   : > { %4347 = vmatpush3.msk.msra.mxu1 %vm390_vm0, %v3666_v21  ;;  %4221 = vmatprep.mubr.msk.f32.mxu1 %vm357_vm2, %v5264_v37 }
  0x85   : > { %4118 = vmatmul.mubr.msk.f32.gmra.mrb[2].mxu0 %vm357_vm2, %v5101_v36  ;;  %4372 = vmatprep.subr.msk.mxu1 %vm390_vm0, %v3684_v47 }
  0x86   : > { %4120 = vmatprep.mubr.msk.f32.mxu0 %vm357_vm2, %v5105_v38 }
  0x87   : > { %4222 = vmatmul.mubr.msk.f32.gmra.mrb[2].mxu1 %vm357_vm2, %v5279_v22 }
  0x88   : > { %4224 = vmatprep.mubr.msk.f32.mxu1 %vm357_vm2, %v5283_v40 }
  0x89   : > { %4121 = vmatmul.mubr.msk.f32.gmra.mrb[4].mxu0 %vm357_vm2, %v5127_v44 }
  0x8a   : > { %4123 = vmatprep.mubr.msk.f32.mxu0 %vm357_vm2, %v5131_v46 }
  0x8b   : > { %4225 = vmatmul.mubr.msk.f32.gmra.mrb[4].mxu1 %vm357_vm2, %v5296_v33 }
  0x8c   : > { %4227 = vmatprep.mubr.msk.f32.mxu1 %vm357_vm2, %v5300_v53 }
  0x8d   : > { %4124 = vmatmul.mubr.msk.f32.gmra.mrb[6].mxu0 %vm357_vm2, %v5153_v52 }
  0x8e   : > { %4126 = vmatprep.mubr.msk.f32.mxu0 %vm357_vm2, %v5157_v54 }
  0x8f   : > { %4228 = vmatmul.mubr.msk.f32.gmra.mrb[6].mxu1 %vm357_vm2, %v5313_v41 }
  0x90   : > { %4230 = vmatprep.mubr.msk.f32.mxu1 %vm357_vm2, %v5317_v63 }
  0x91   : > { %4127 = vmatmul.mubr.msk.f32.gmra.mrb[8].mxu0 %vm357_vm2, %v5179_v60 }
  0x92   : > { %4129 = vmatprep.mubr.msk.f32.mxu0 %vm357_vm2, %v5183_v62 }
  0x93   : > { %4231 = vmatmul.mubr.msk.f32.gmra.mrb[8].mxu1 %vm357_vm2, %v5330_v49 }
  0x94   : > { %4233 = vmatprep.mubr.msk.f32.mxu1 %vm357_vm2, %v5334_v10 }
  0x95   : > { %4130 = vmatmul.mubr.msk.f32.gmra.mrb[10].mxu0 %vm357_vm2, %v5199_v2 }
  0x96   : > { %4132 = vmatprep.mubr.msk.f32.mxu0 %vm357_vm2, %v5203_v8 }
  0x97   : > { %4234 = vmatmul.mubr.msk.f32.gmra.mrb[10].mxu1 %vm357_vm2, %v5347_v57 }
  0x98   : > { %4236 = vmatprep.mubr.msk.f32.mxu1 %vm357_vm2, %v5351_v20 }
  0x99   : > { %4133 = vmatmul.mubr.msk.f32.gmra.mrb[12].mxu0 %vm357_vm2, %v5217_v14 }
  0x9a   : > { %4135 = vmatprep.mubr.msk.f32.mxu0 %vm357_vm2, %v5442_v39 }
  0x9b   : > { %4237 = vmatmul.mubr.msk.f32.gmra.mrb[12].mxu1 %vm357_vm2, %v5362_v7 }
  0x9c   : > { %4239 = vmatprep.mubr.msk.f32.mxu1 %vm357_vm2, %v5524_v61 }
  0x9d   : > { %4136 = vmatmul.mubr.msk.f32.gmra.mrb[14].mxu0 %vm357_vm2, %v5453_v27 }
  0x9e   : > { %4244 = vmatprep.mubr.msk.f32.mxu0 %vm357_vm2, %v5014_v11  ;;  %v3702_v11 = vld [vmem:[%s6118_s1 + $0x38] sm:$0xf] }
  0x9f   : > { %4240 = vmatmul.mubr.msk.f32.gmra.mrb[14].mxu1 %vm357_vm2, %v5535_v0 }
  0xa0   : > { %4348 = vmatprep.mubr.msk.f32.mxu1 %vm357_vm2, %v5051_v23 }
  0xa1   : > { %4245 = vmatmul.mubr.msk.f32.vlgmr.msra.gmra.mrb[16].mxu0 %vm357_vm2, %v5017_v12  ;;  %v3632_v12 = vld [vmem:[%s6118_s1 + $0x2c] sm:$0xf] }
  0xa2   : > { %4247 = vmatprep.mubr.msk.f32.mxu0 %vm357_vm2, %v5027_v16  ;;  %4269 = vmatpush3.msk.msra.mxu0 %vm390_vm0, %v3596_v45 }
  0xa3   : > { %4349 = vmatmul.mubr.msk.f32.vlgmr.msra.gmra.mrb[16].mxu1 %vm357_vm2, %v5073_v28  ;;  %4294 = vmatprep.subr.msk.mxu0 %vm390_vm0, %v3614_v3 }
  0xa4   : > { %4373 = vmatpush3.msk.msra.mxu1 %vm390_vm0, %v3684_v47  ;;  %4351 = vmatprep.mubr.msk.f32.mxu1 %vm357_vm2, %v5077_v30 }
  0xa5   : > { %4248 = vmatmul.mubr.msk.f32.gmra.mrb[18].mxu0 %vm357_vm2, %v5030_v17  ;;  %4398 = vmatprep.subr.msk.mxu1 %vm390_vm0, %v3702_v11 }
  0xa6   : > { %4250 = vmatprep.mubr.msk.f32.mxu0 %vm357_vm2, %v5055_v25 }
  0xa7   : > { %4352 = vmatmul.mubr.msk.f32.gmra.mrb[18].mxu1 %vm357_vm2, %v5101_v36 }
  0xa8   : > { %4354 = vmatprep.mubr.msk.f32.mxu1 %vm357_vm2, %v5105_v38 }
  0xa9   : > { %4251 = vmatmul.mubr.msk.f32.gmra.mrb[20].mxu0 %vm357_vm2, %v5058_v26 }
  0xaa   : > { %4253 = vmatprep.mubr.msk.f32.mxu0 %vm357_vm2, %v5089_v34 }
  0xab   : > { %4355 = vmatmul.mubr.msk.f32.gmra.mrb[20].mxu1 %vm357_vm2, %v5127_v44 }
  0xac   : > { %4357 = vmatprep.mubr.msk.f32.mxu1 %vm357_vm2, %v5131_v46 }
  0xad   : > { %4254 = vmatmul.mubr.msk.f32.gmra.mrb[22].mxu0 %vm357_vm2, %v5092_v35 }
  0xae   : > { %4256 = vmatprep.mubr.msk.f32.mxu0 %vm357_vm2, %v5115_v42 }
  0xaf   : > { %4358 = vmatmul.mubr.msk.f32.gmra.mrb[22].mxu1 %vm357_vm2, %v5153_v52 }
  0xb0   : > { %4360 = vmatprep.mubr.msk.f32.mxu1 %vm357_vm2, %v5157_v54 }
  0xb1   : > { %4257 = vmatmul.mubr.msk.f32.gmra.mrb[24].mxu0 %vm357_vm2, %v5118_v43 }
  0xb2   : > { %4259 = vmatprep.mubr.msk.f32.mxu0 %vm357_vm2, %v5141_v50 }
  0xb3   : > { %4361 = vmatmul.mubr.msk.f32.gmra.mrb[24].mxu1 %vm357_vm2, %v5179_v60 }
  0xb4   : > { %4363 = vmatprep.mubr.msk.f32.mxu1 %vm357_vm2, %v5183_v62 }
  0xb5   : > { %4260 = vmatmul.mubr.msk.f32.gmra.mrb[26].mxu0 %vm357_vm2, %v5144_v51 }
  0xb6   : > { %4262 = vmatprep.mubr.msk.f32.mxu0 %vm357_vm2, %v5167_v58 }
  0xb7   : > { %4364 = vmatmul.mubr.msk.f32.gmra.mrb[26].mxu1 %vm357_vm2, %v5199_v2 }
  0xb8   : > { %4366 = vmatprep.mubr.msk.f32.mxu1 %vm357_vm2, %v5203_v8 }
  0xb9   : > { %4263 = vmatmul.mubr.msk.f32.gmra.mrb[28].mxu0 %vm357_vm2, %v5170_v59 }
  0xba   : > { %4265 = vmatprep.mubr.msk.f32.mxu0 %vm357_vm2, %v5419_v24 }
  0xbb   : > { %4367 = vmatmul.mubr.msk.f32.gmra.mrb[28].mxu1 %vm357_vm2, %v5217_v14 }
  0xbc   : > { %4369 = vmatprep.mubr.msk.f32.mxu1 %vm357_vm2, %v5442_v39 }
  0xbd   : > { %4266 = vmatmul.mubr.msk.f32.gmra.mrb[30].mxu0 %vm357_vm2, %v5422_v31 }
  0xbe   : > { %4270 = vmatprep.mubr.msk.f32.mxu0 %vm357_vm2, %v5051_v23  ;;  %v3720_v23 = vld [vmem:[%s6118_s1 + $0x3c] sm:$0xf] }
  0xbf   : > { %4370 = vmatmul.mubr.msk.f32.gmra.mrb[30].mxu1 %vm357_vm2, %v5453_v27 }
  0xc0   : > { %4374 = vmatprep.mubr.msk.f32.mxu1 %vm357_vm2, %v5237_v29 }
  0xc1   : > { %4271 = vmatmul.mubr.msk.f32.vlgmr.msra.gmra.mrb[16].mxu0 %vm357_vm2, %v5073_v28  ;;  %v216_v28 = vld [vmem:[%s4994_s4 + $0xe8] sm:$0x3] }
  0xc2   : > { %4273 = vmatprep.mubr.msk.f32.mxu0 %vm357_vm2, %v5077_v30  ;;  %4295 = vmatpush3.msk.msra.mxu0 %vm390_vm0, %v3614_v3 }
  0xc3   : > { %4375 = vmatmul.mubr.msk.f32.vlgmr.msra.gmra.mrb[16].mxu1 %vm357_vm2, %v5260_v19  ;;  %4320 = vmatprep.subr.msk.mxu0 %vm390_vm0, %v3632_v12 }
  0xc4   : > { %4399 = vmatpush3.msk.msra.mxu1 %vm390_vm0, %v3702_v11  ;;  %4377 = vmatprep.mubr.msk.f32.mxu1 %vm357_vm2, %v5264_v37 }
  0xc5   : > { %4274 = vmatmul.mubr.msk.f32.gmra.mrb[18].mxu0 %vm357_vm2, %v5101_v36  ;;  %4424 = vmatprep.subr.msk.mxu1 %vm390_vm0, %v3720_v23 }
  0xc6   : > { %4276 = vmatprep.mubr.msk.f32.mxu0 %vm357_vm2, %v5105_v38 }
  0xc7   : > { %4378 = vmatmul.mubr.msk.f32.gmra.mrb[18].mxu1 %vm357_vm2, %v5279_v22 }
  0xc8   : > { %4380 = vmatprep.mubr.msk.f32.mxu1 %vm357_vm2, %v5283_v40 }
  0xc9   : > { %4277 = vmatmul.mubr.msk.f32.gmra.mrb[20].mxu0 %vm357_vm2, %v5127_v44 }
  0xca   : > { %4279 = vmatprep.mubr.msk.f32.mxu0 %vm357_vm2, %v5131_v46 }
  0xcb   : > { %4381 = vmatmul.mubr.msk.f32.gmra.mrb[20].mxu1 %vm357_vm2, %v5296_v33 }
  0xcc   : > { %4383 = vmatprep.mubr.msk.f32.mxu1 %vm357_vm2, %v5300_v53 }
  0xcd   : > { %4280 = vmatmul.mubr.msk.f32.gmra.mrb[22].mxu0 %vm357_vm2, %v5153_v52 }
  0xce   : > { %4282 = vmatprep.mubr.msk.f32.mxu0 %vm357_vm2, %v5157_v54 }
  0xcf   : > { %4384 = vmatmul.mubr.msk.f32.gmra.mrb[22].mxu1 %vm357_vm2, %v5313_v41 }
  0xd0   : > { %4386 = vmatprep.mubr.msk.f32.mxu1 %vm357_vm2, %v5317_v63 }
  0xd1   : > { %4283 = vmatmul.mubr.msk.f32.gmra.mrb[24].mxu0 %vm357_vm2, %v5179_v60 }
  0xd2   : > { %4285 = vmatprep.mubr.msk.f32.mxu0 %vm357_vm2, %v5183_v62 }
  0xd3   : > { %4387 = vmatmul.mubr.msk.f32.gmra.mrb[24].mxu1 %vm357_vm2, %v5330_v49 }
  0xd4   : > { %4389 = vmatprep.mubr.msk.f32.mxu1 %vm357_vm2, %v5334_v10 }
  0xd5   : > { %4286 = vmatmul.mubr.msk.f32.gmra.mrb[26].mxu0 %vm357_vm2, %v5199_v2 }
  0xd6   : > { %4288 = vmatprep.mubr.msk.f32.mxu0 %vm357_vm2, %v5203_v8 }
  0xd7   : > { %4390 = vmatmul.mubr.msk.f32.gmra.mrb[26].mxu1 %vm357_vm2, %v5347_v57 }
  0xd8   : > { %4392 = vmatprep.mubr.msk.f32.mxu1 %vm357_vm2, %v5351_v20 }
  0xd9   : > { %4289 = vmatmul.mubr.msk.f32.gmra.mrb[28].mxu0 %vm357_vm2, %v5217_v14 }
  0xda   : > { %4291 = vmatprep.mubr.msk.f32.mxu0 %vm357_vm2, %v5442_v39 }
  0xdb   : > { %4393 = vmatmul.mubr.msk.f32.gmra.mrb[28].mxu1 %vm357_vm2, %v5362_v7 }
  0xdc   : > { %4395 = vmatprep.mubr.msk.f32.mxu1 %vm357_vm2, %v5524_v61 }
  0xdd   : > { %4292 = vmatmul.mubr.msk.f32.gmra.mrb[30].mxu0 %vm357_vm2, %v5453_v27 }
  0xde   : > { %4296 = vmatprep.mubr.msk.f32.mxu0 %vm357_vm2, %v5027_v16  ;;  %v214_v16 = vld [vmem:[%s4994_s4 + $0xd8] sm:$0xff] }
  0xdf   : > { %4396 = vmatmul.mubr.msk.f32.gmra.mrb[30].mxu1 %vm357_vm2, %v5535_v0 }
  0xe0   : > { %4400 = vmatprep.mubr.msk.f32.mxu1 %vm357_vm2, %v5077_v30 }
  0xe1   : > { %4297 = vmatmul.mubr.msk.f32.vlgmr.msra.gmra.mrb[16].mxu0 %vm357_vm2, %v5030_v17  ;;  %v215_v17 = vld [vmem:[%s4994_s4 + $0xe0] sm:$0xff]  ;;  %s175_s4 = sand.u32 1, %s4850_s13  }
  0xe2   : > { %4299 = vmatprep.mubr.msk.f32.mxu0 %vm357_vm2, %v5055_v25  ;;  %4321 = vmatpush3.msk.msra.mxu0 %vm390_vm0, %v3632_v12  ;;  %v339_v25 = vrot.slane %v214_v16, 1  ;;  %s3430_s28 = sshll.u32 %s175_s4, 8  ;;  %s6064_s24 = scalar_lea.sflag [#allocation3], %s175_s4 }
  0xe3   : > { %4401 = vmatmul.mubr.msk.f32.vlgmr.msra.gmra.mrb[16].mxu1 %vm357_vm2, %v5101_v36  ;;  %s5829_s6 = scalar_lea.vmem [#allocation2], %s3430_s28  ;;  %s4877_s28 = smov [#allocation2]  }
  0xe4   : > { %4425 = vmatpush3.msk.msra.mxu1 %vm390_vm0, %v3720_v23  ;;  %4403 = vmatprep.mubr.msk.f32.mxu1 %vm357_vm2, %v5105_v38  ;;  %s3345_s20 = sshll.u32 %s5829_s6, 4  ;;  %s4784_s29 = sshll.u32 %s4877_s28, 4  ;;  %s6056_s20 = int_to_ptr.vmem [resolvable:$true] %s3345_s20  ;;  %s4785_s29 = int_to_ptr.vmem [resolvable:$false] %s4784_s29 }
  0xe5   : > { %4300 = vmatmul.mubr.msk.f32.gmra.mrb[18].mxu0 %vm357_vm2, %v5058_v26  ;;  %v340_v26 = vrot.slane %v215_v17, 1  ;;  %s4780_s27 = scalar_lea.vmem %s6056_s20, 4096  ;;  %s4786_s5 = scalar_lea.vmem %s4785_s29, 8192 }
  0xe6   : > { %4302 = vmatprep.mubr.msk.f32.mxu0 %vm357_vm2, %v5089_v34  ;;  %v342_v34 = vrot.slane %v216_v28, 1  ;;  %p4781_p13 = scmp.ne.s32.totalorder %s6056_s20, %s4780_s27  ;;  %p4787_p2 = scmp.lt.s32.totalorder %s6056_s20, %s4785_s29 }
  0xe7   : > { %4404 = vmatmul.mubr.msk.f32.gmra.mrb[18].mxu1 %vm357_vm2, %v5127_v44  ;;  %p4788_p4 = scmp.lt.s32.totalorder %s4786_s5, %s4780_s27 }
  0xe8   : > { %4406 = vmatprep.mubr.msk.f32.mxu1 %vm357_vm2, %v5131_v46  ;;  %p4782_p0 = pnand %p4781_p13, %p4950_p3 }
  0xe9   : > { %4303 = vmatmul.mubr.msk.f32.gmra.mrb[20].mxu0 %vm357_vm2, %v5092_v35  ;;  %v341_v35 = vsel %vm241_vm1, %v339_v25, %v340_v26  ;;  %p4789_p5 = por %p4788_p4, %p4787_p2 }
  0xea   : > { %4305 = vmatprep.mubr.msk.f32.mxu0 %vm357_vm2, %v5115_v42  ;;  %v343_v42 = vsel %vm241_vm1, %v340_v26, %v342_v34  ;;  %p4783_p1 = pneg %p4782_p0 }
  0xeb   : > { %4407 = vmatmul.mubr.msk.f32.gmra.mrb[20].mxu1 %vm357_vm2, %v5153_v52 }
  0xec   : > { %4409 = vmatprep.mubr.msk.f32.mxu1 %vm357_vm2, %v5157_v54  ;;  %p4790_p6 = pnand %p4789_p5, %p4783_p1 }
  0xed   : > { %4306 = vmatmul.mubr.msk.f32.gmra.mrb[22].mxu0 %vm357_vm2, %v5118_v43 }
  0xee   : > { %4308 = vmatprep.mubr.msk.f32.mxu0 %vm357_vm2, %v5141_v50 }
  0xef   : > { %4410 = vmatmul.mubr.msk.f32.gmra.mrb[22].mxu1 %vm357_vm2, %v5179_v60 }
  0xf0   : > { %4412 = vmatprep.mubr.msk.f32.mxu1 %vm357_vm2, %v5183_v62 }
  0xf1   : > { %4309 = vmatmul.mubr.msk.f32.gmra.mrb[24].mxu0 %vm357_vm2, %v5144_v51 }
  0xf2   : > { %4311 = vmatprep.mubr.msk.f32.mxu0 %vm357_vm2, %v5167_v58 }
  0xf3   : > { %4413 = vmatmul.mubr.msk.f32.gmra.mrb[24].mxu1 %vm357_vm2, %v5199_v2 }
  0xf4   : > { %4415 = vmatprep.mubr.msk.f32.mxu1 %vm357_vm2, %v5203_v8 }
  0xf5   : > { %4312 = vmatmul.mubr.msk.f32.gmra.mrb[26].mxu0 %vm357_vm2, %v5170_v59 }
  0xf6   : > { %4314 = vmatprep.mubr.msk.f32.mxu0 %vm357_vm2, %v5419_v24 }
  0xf7   : > { %4416 = vmatmul.mubr.msk.f32.gmra.mrb[26].mxu1 %vm357_vm2, %v5217_v14 }
  0xf8   : > { %4418 = vmatprep.mubr.msk.f32.mxu1 %vm357_vm2, %v5442_v39 }
  0xf9   : > { %4315 = vmatmul.mubr.msk.f32.gmra.mrb[28].mxu0 %vm357_vm2, %v5422_v31 }
  0xfa   : > { %4317 = vmatprep.mubr.msk.f32.mxu0 %vm357_vm2, %v214_v16 }
  0xfb   : > { %4419 = vmatmul.mubr.msk.f32.gmra.mrb[28].mxu1 %vm357_vm2, %v5453_v27 }
  0xfc   : > { %4421 = vmatprep.mubr.msk.f32.mxu1 %vm357_vm2, %v341_v35 }
  0xfd   : > { %4318 = vmatmul.mubr.msk.f32.gmra.mrb[30].mxu0 %vm357_vm2, %v215_v17 }
  0xfe   : > { %4322 = vmatprep.mubr.msk.f32.mxu0 %vm357_vm2, %v5077_v30  ;;  %v344_v30 = vrot.slane %v214_v16, 2 }
  0xff   : > { %4422 = vmatmul.mubr.msk.f32.gmra.mrb[30].mxu1 %vm357_vm2, %v343_v42 }
 0x100   : > { %4426 = vmatprep.mubr.msk.f32.mxu1 %vm357_vm2, %v5264_v37 }
 0x101   : > { %4323 = vmatmul.mubr.msk.f32.vlgmr.msra.gmra.mrb[16].mxu0 %vm357_vm2, %v5101_v36  ;;  %v345_v36 = vrot.slane %v215_v17, 2 }
 0x102   : > { %4325 = vmatprep.mubr.msk.f32.mxu0 %vm357_vm2, %v5105_v38  ;;  %v347_v38 = vrot.slane %v216_v28, 2 }
 0x103   : > { %4427 = vmatmul.mubr.msk.f32.vlgmr.msra.gmra.mrb[16].mxu1 %vm357_vm2, %v5279_v22  ;;  %v346_v43 = vsel %vm282_vm3, %v344_v30, %v345_v36 }
 0x104   : > { %4429 = vmatprep.mubr.msk.f32.mxu1 %vm357_vm2, %v5283_v40 }
 0x105   : > { %4326 = vmatmul.mubr.msk.f32.gmra.mrb[18].mxu0 %vm357_vm2, %v5127_v44  ;;  %v348_v44 = vsel %vm282_vm3, %v345_v36, %v347_v38 }
 0x106   : > { %4328 = vmatprep.mubr.msk.f32.mxu0 %vm357_vm2, %v5131_v46  ;;  %v5824_v46 = vld [vmem:[%s6119_s2] ss:$0 sm:$0xff] }
 0x107   : > { %4430 = vmatmul.mubr.msk.f32.gmra.mrb[18].mxu1 %vm357_vm2, %v5296_v33 }
 0x108   : > { %4432 = vmatprep.mubr.msk.f32.mxu1 %vm357_vm2, %v5300_v53 }
 0x109   : > { %4329 = vmatmul.mubr.msk.f32.gmra.mrb[20].mxu0 %vm357_vm2, %v5153_v52 }
 0x10a   : > { %4331 = vmatprep.mubr.msk.f32.mxu0 %vm357_vm2, %v5157_v54 }
 0x10b   : > { %4433 = vmatmul.mubr.msk.f32.gmra.mrb[20].mxu1 %vm357_vm2, %v5313_v41 }
 0x10c   : > { %4435 = vmatprep.mubr.msk.f32.mxu1 %vm357_vm2, %v5317_v63 }
 0x10d   : > { %4332 = vmatmul.mubr.msk.f32.gmra.mrb[22].mxu0 %vm357_vm2, %v5179_v60 }
 0x10e   : > { %4334 = vmatprep.mubr.msk.f32.mxu0 %vm357_vm2, %v5183_v62 }
 0x10f   : > { %4436 = vmatmul.mubr.msk.f32.gmra.mrb[22].mxu1 %vm357_vm2, %v5330_v49 }
 0x110   : > { %4438 = vmatprep.mubr.msk.f32.mxu1 %vm357_vm2, %v5334_v10 }
 0x111   : > { %4335 = vmatmul.mubr.msk.f32.gmra.mrb[24].mxu0 %vm357_vm2, %v5199_v2 }
 0x112   : > { %4337 = vmatprep.mubr.msk.f32.mxu0 %vm357_vm2, %v5203_v8 }
 0x113   : > { %4439 = vmatmul.mubr.msk.f32.gmra.mrb[24].mxu1 %vm357_vm2, %v5347_v57 }
 0x114   : > { %4441 = vmatprep.mubr.msk.f32.mxu1 %vm357_vm2, %v5351_v20 }
 0x115   : > { %4338 = vmatmul.mubr.msk.f32.gmra.mrb[26].mxu0 %vm357_vm2, %v5217_v14 }
 0x116   : > { %4340 = vmatprep.mubr.msk.f32.mxu0 %vm357_vm2, %v5442_v39 }
 0x117   : > { %4442 = vmatmul.mubr.msk.f32.gmra.mrb[26].mxu1 %vm357_vm2, %v5362_v7 }
 0x118   : > { %4444 = vmatprep.mubr.msk.f32.mxu1 %vm357_vm2, %v5524_v61 }
 0x119   : > { %4341 = vmatmul.mubr.msk.f32.gmra.mrb[28].mxu0 %vm357_vm2, %v5453_v27 }
 0x11a   : > { %4343 = vmatprep.mubr.msk.f32.mxu0 %vm357_vm2, %v341_v35 }
 0x11b   : > { %4445 = vmatmul.mubr.msk.f32.gmra.mrb[28].mxu1 %vm357_vm2, %v5535_v0 }
 0x11c   : > { %4447 = vmatprep.mubr.msk.f32.mxu1 %vm357_vm2, %v346_v43 }
 0x11d   : > { %4344 = vmatmul.mubr.msk.f32.gmra.mrb[30].mxu0 %vm357_vm2, %v343_v42 }
 0x11f   : > { %4448 = vmatmul.mubr.msk.f32.gmra.mrb[30].mxu1 %vm357_vm2, %v348_v44 }
 0x154   : > { %v4116_v50 = vpop.f32.mrb[0].mxu0 }
 0x155   : > { %v4450_v51 = vadd.f32 %v4116_v50, %v5824_v46  ;;  %v998_v52 = vpop.f32.mrb[1].mxu0 }
 0x156   : > { %v4220_v54 = vpop.f32.mrb[0].mxu1  ;;  %v4451_v58 = vadd.f32 %v5824_v46, %v998_v52 }
 0x157   : > { %v4466_v59 = vadd.f32 %v4220_v54, %v5824_v46  ;;  %v1715_v60 = vpop.f32.mrb[1].mxu1  ;;  %1095 = vst.msk [vmem:[%s5829_s6 + $0x8] sm:$0xff] %vm1093_vm4, %v4450_v51 }
 0x158   : > { %1094 = vst.msk [vmem:[%s5829_s6] sm:$0xff] %vm1093_vm4, %v4451_v58  ;;  %v4119_v62 = vpop.f32.mrb[2].mxu0  ;;  %v4467_v19 = vadd.f32 %v5824_v46, %v1715_v60 }
 0x159   : > { %1828 = vrot.lane.b32.xlu0 %v4466_v59, %s4876_s7  ;;  %v4452_v2 = vadd.f32 %v4119_v62, %v5824_v46  ;;  %v1008_v8 = vpop.f32.mrb[3].mxu0 }
 0x15a   : > { %v4223_v14 = vpop.f32.mrb[2].mxu1  ;;  %v4453_v29 = vadd.f32 %v5824_v46, %v1008_v8 }
 0x15b   : > { %v4468_v37 = vadd.f32 %v4223_v14, %v5824_v46  ;;  %v1725_v22 = vpop.f32.mrb[3].mxu1  ;;  %1097 = vst.msk [vmem:[%s5829_s6 + $0x28] sm:$0xff] %vm1093_vm4, %v4452_v2 }
 0x15c   : > { %1096 = vst.msk [vmem:[%s5829_s6 + $0x20] sm:$0xff] %vm1093_vm4, %v4453_v29  ;;  %v4122_v40 = vpop.f32.mrb[4].mxu0  ;;  %v4469_v49 = vadd.f32 %v5824_v46, %v1725_v22 }
 0x15d   : > { %1826 = vrot.lane.b32.xlu0 %v4467_v19, %s4876_s7  ;;  %1832 = vrot.lane.b32.xlu1 %v4468_v37, %s4876_s7  ;;  %v4454_v33 = vadd.f32 %v4122_v40, %v5824_v46  ;;  %v1018_v53 = vpop.f32.mrb[5].mxu0 }
 0x15e   : > { %v4226_v41 = vpop.f32.mrb[4].mxu1  ;;  %v4455_v63 = vadd.f32 %v5824_v46, %v1018_v53 }
 0x15f   : > { %v1735_v9 = vpop.f32.mrb[5].mxu1  ;;  %1099 = vst.msk [vmem:[%s5829_s6 + $0x48] sm:$0xff] %vm1093_vm4, %v4454_v33  ;;  %v4470_v7 = vadd.f32 %v4226_v41, %v5824_v46 }
 0x160   : > { %v4471_v10 = vadd.f32 %v5824_v46, %v1735_v9  ;;  %1098 = vst.msk [vmem:[%s5829_s6 + $0x40] sm:$0xff] %vm1093_vm4, %v4455_v63  ;;  %v4125_v13 = vpop.f32.mrb[6].mxu0 }
 0x161   : > { %1830 = vrot.lane.b32.xlu1 %v4469_v49, %s4876_s7  ;;  %v4456_v5 = vadd.f32 %v4125_v13, %v5824_v46  ;;  %v1028_v57 = vpop.f32.mrb[7].mxu0 }
 0x162   : > { %1834 = vrot.lane.b32.xlu0 %v4471_v10, %s4876_s7  ;;  %v4229_v6 = vpop.f32.mrb[6].mxu1  ;;  %v4457_v20 = vadd.f32 %v5824_v46, %v1028_v57 }
 0x163   : > { %v1745_v1 = vpop.f32.mrb[7].mxu1  ;;  %1101 = vst.msk [vmem:[%s5829_s6 + $0x68] sm:$0xff] %vm1093_vm4, %v4456_v5  ;;  %v4472_v4 = vadd.f32 %v4229_v6, %v5824_v46 }
 0x164   : > { %v4473_v21 = vadd.f32 %v5824_v46, %v1745_v1  ;;  %1100 = vst.msk [vmem:[%s5829_s6 + $0x60] sm:$0xff] %vm1093_vm4, %v4457_v20  ;;  %v4128_v24 = vpop.f32.mrb[8].mxu0 }
 0x165   : > { %1836 = vrot.lane.b32.xlu1 %v4470_v7, %s4876_s7  ;;  %v4458_v31 = vadd.f32 %v4128_v24, %v5824_v46  ;;  %v1038_v18 = vpop.f32.mrb[9].mxu0 }
 0x166   : > { %1838 = vrot.lane.b32.xlu0 %v4473_v21, %s4876_s7  ;;  %v4232_v15 = vpop.f32.mrb[8].mxu1  ;;  %v4459_v32 = vadd.f32 %v5824_v46, %v1038_v18 }
 0x167   : > { %v1755_v39 = vpop.f32.mrb[9].mxu1  ;;  %1103 = vst.msk [vmem:[%s5829_s6 + $0x88] sm:$0xff] %vm1093_vm4, %v4458_v31  ;;  %v4474_v61 = vadd.f32 %v4232_v15, %v5824_v46 }
 0x168   : > { %v4475_v27 = vadd.f32 %v5824_v46, %v1755_v39  ;;  %1102 = vst.msk [vmem:[%s5829_s6 + $0x80] sm:$0xff] %vm1093_vm4, %v4459_v32  ;;  %v4131_v45 = vpop.f32.mrb[10].mxu0 }
 0x169   : > { %1840 = vrot.lane.b32.xlu1 %v4472_v4, %s4876_s7  ;;  %v4460_v47 = vadd.f32 %v4131_v45, %v5824_v46  ;;  %v1048_v48 = vpop.f32.mrb[11].mxu0 }
 0x16a   : > { %1842 = vrot.lane.b32.xlu0 %v4475_v27, %s4876_s7  ;;  %v4235_v55 = vpop.f32.mrb[10].mxu1  ;;  %v4461_v56 = vadd.f32 %v5824_v46, %v1048_v48 }
 0x16b   : > { %v1765_v0 = vpop.f32.mrb[11].mxu1  ;;  %1105 = vst.msk [vmem:[%s5829_s6 + $0xa8] sm:$0xff] %vm1093_vm4, %v4460_v47  ;;  %v4476_v25 = vadd.f32 %v4235_v55, %v5824_v46 }
 0x16c   : > { %v4477_v3 = vadd.f32 %v5824_v46, %v1765_v0  ;;  %1104 = vst.msk [vmem:[%s5829_s6 + $0xa0] sm:$0xff] %vm1093_vm4, %v4461_v56  ;;  %v4134_v11 = vpop.f32.mrb[12].mxu0 }
 0x16d   : > { %1844 = vrot.lane.b32.xlu1 %v4474_v61, %s4876_s7  ;;  %v4462_v12 = vadd.f32 %v4134_v11, %v5824_v46  ;;  %v1058_v23 = vpop.f32.mrb[13].mxu0 }
 0x16e   : > { %1846 = vrot.lane.b32.xlu0 %v4477_v3, %s4876_s7  ;;  %v4238_v16 = vpop.f32.mrb[12].mxu1  ;;  %v4463_v17 = vadd.f32 %v5824_v46, %v1058_v23 }
 0x16f   : > { %v1775_v26 = vpop.f32.mrb[13].mxu1  ;;  %1107 = vst.msk [vmem:[%s5829_s6 + $0xc8] sm:$0xff] %vm1093_vm4, %v4462_v12  ;;  %v4478_v38 = vadd.f32 %v4238_v16, %v5824_v46 }
 0x170   : > { %v4479_v28 = vadd.f32 %v5824_v46, %v1775_v26  ;;  %1106 = vst.msk [vmem:[%s5829_s6 + $0xc0] sm:$0xff] %vm1093_vm4, %v4463_v17  ;;  %v4137_v34 = vpop.f32.mrb[14].mxu0 }
 0x171   : > { %1848 = vrot.lane.b32.xlu1 %v4476_v25, %s4876_s7  ;;  %v4464_v35 = vadd.f32 %v4137_v34, %v5824_v46  ;;  %v1068_v42 = vpop.f32.mrb[15].mxu0 }
 0x172   : > { %1850 = vrot.lane.b32.xlu0 %v4479_v28, %s4876_s7  ;;  %v4241_v30 = vpop.f32.mrb[14].mxu1  ;;  %v4465_v36 = vadd.f32 %v5824_v46, %v1068_v42 }
 0x173   : > { %v1785_v43 = vpop.f32.mrb[15].mxu1  ;;  %1109 = vst.msk [vmem:[%s5829_s6 + $0xe8] sm:$0xff] %vm1093_vm4, %v4464_v35  ;;  %v4480_v50 = vadd.f32 %v4241_v30, %v5824_v46 }
 0x174   : > { %v4481_v44 = vadd.f32 %v5824_v46, %v1785_v43  ;;  %1108 = vst.msk [vmem:[%s5829_s6 + $0xe0] sm:$0xff] %vm1093_vm4, %v4465_v36 }
 0x175   : > { %1852 = vrot.lane.b32.xlu1 %v4478_v38, %s4876_s7 }
 0x176   : > { %1854 = vrot.lane.b32.xlu0 %v4481_v44, %s4876_s7 }
 0x179   : > { %1856 = vrot.lane.b32.xlu1 %v4480_v50, %s4876_s7 }
 0x1cb   : > { %v1829_v51 = vpop.permute.xlu0 %1828 }
 0x1cc   : > { %1876 = vst.msk [vmem:[%s5829_s6 + $0x8] sm:$0xff] %vm1874_vm5, %v1829_v51 }
 0x1cf   : > { %v1827_v52 = vpop.permute.xlu0 %1826  ;;  %v1833_v54 = vpop.permute.xlu1 %1832 }
 0x1d0   : > { %1875 = vst.msk [vmem:[%s5829_s6] sm:$0xff] %vm1874_vm5, %v1827_v52  ;;  %1878 = vst.msk [vmem:[%s5829_s6 + $0x28] sm:$0xff] %vm1874_vm5, %v1833_v54 }
 0x1d3   : > { %v1831_v58 = vpop.permute.xlu1 %1830 }
 0x1d4   : > { %1877 = vst.msk [vmem:[%s5829_s6 + $0x20] sm:$0xff] %vm1874_vm5, %v1831_v58  ;;  %v1835_v59 = vpop.permute.xlu0 %1834  ;;  %v4324_v60 = vpop.f32.mrb[16].mxu0 }
 0x1d5   : > { %1879 = vst.msk [vmem:[%s5829_s6 + $0x40] sm:$0xff] %vm1874_vm5, %v1835_v59  ;;  %v4482_v62 = vadd.f32 %v4324_v60, %v5824_v46  ;;  %v2468_v2 = vpop.f32.mrb[17].mxu0 }
 0x1d6   : > { %v4428_v8 = vpop.f32.mrb[16].mxu1  ;;  %v4483_v14 = vadd.f32 %v5824_v46, %v2468_v2 }
 0x1d7   : > { %v4498_v29 = vadd.f32 %v4428_v8, %v5824_v46  ;;  %v1837_v19 = vpop.permute.xlu1 %1836  ;;  %v3153_v37 = vpop.f32.mrb[17].mxu1  ;;  %3651 = vst.msk [vmem:[%s5829_s6 + $0x18] sm:$0xff] %vm1093_vm4, %v4482_v62 }
 0x1d8   : > { %1880 = vst.msk [vmem:[%s5829_s6 + $0x48] sm:$0xff] %vm1874_vm5, %v1837_v19  ;;  %v4499_v22 = vadd.f32 %v5824_v46, %v3153_v37  ;;  %v1839_v40 = vpop.permute.xlu0 %1838  ;;  %v4327_v33 = vpop.f32.mrb[18].mxu0 }
 0x1d9   : > { %3650 = vst.msk [vmem:[%s5829_s6 + $0x10] sm:$0xff] %vm1093_vm4, %v4483_v14  ;;  %3266 = vrot.lane.b32.xlu1 %v4498_v29, %s4876_s7  ;;  %v4484_v53 = vadd.f32 %v4327_v33, %v5824_v46  ;;  %v2478_v41 = vpop.f32.mrb[19].mxu0 }
 0x1da   : > { %1881 = vst.msk [vmem:[%s5829_s6 + $0x60] sm:$0xff] %vm1874_vm5, %v1839_v40  ;;  %v4431_v63 = vpop.f32.mrb[18].mxu1  ;;  %3264 = vrot.lane.b32.xlu0 %v4499_v22, %s4876_s7  ;;  %v4485_v49 = vadd.f32 %v5824_v46, %v2478_v41 }
 0x1db   : > { %v4500_v9 = vadd.f32 %v4431_v63, %v5824_v46  ;;  %v1841_v10 = vpop.permute.xlu1 %1840  ;;  %v3163_v13 = vpop.f32.mrb[19].mxu1  ;;  %3653 = vst.msk [vmem:[%s5829_s6 + $0x38] sm:$0xff] %vm1093_vm4, %v4484_v53 }
 0x1dc   : > { %1882 = vst.msk [vmem:[%s5829_s6 + $0x68] sm:$0xff] %vm1874_vm5, %v1841_v10  ;;  %v4501_v5 = vadd.f32 %v5824_v46, %v3163_v13  ;;  %v1843_v57 = vpop.permute.xlu0 %1842  ;;  %v4330_v6 = vpop.f32.mrb[20].mxu0 }
 0x1dd   : > { %3652 = vst.msk [vmem:[%s5829_s6 + $0x30] sm:$0xff] %vm1093_vm4, %v4485_v49  ;;  %3270 = vrot.lane.b32.xlu1 %v4500_v9, %s4876_s7  ;;  %v4486_v20 = vadd.f32 %v4330_v6, %v5824_v46  ;;  %v2488_v7 = vpop.f32.mrb[21].mxu0 }
 0x1de   : > { %1883 = vst.msk [vmem:[%s5829_s6 + $0x80] sm:$0xff] %vm1874_vm5, %v1843_v57  ;;  %v4434_v1 = vpop.f32.mrb[20].mxu1  ;;  %3268 = vrot.lane.b32.xlu0 %v4501_v5, %s4876_s7  ;;  %v4487_v21 = vadd.f32 %v5824_v46, %v2488_v7 }
 0x1df   : > { %v4502_v24 = vadd.f32 %v4434_v1, %v5824_v46  ;;  %v1845_v31 = vpop.permute.xlu1 %1844  ;;  %v3173_v18 = vpop.f32.mrb[21].mxu1  ;;  %3655 = vst.msk [vmem:[%s5829_s6 + $0x58] sm:$0xff] %vm1093_vm4, %v4486_v20 }
 0x1e0   : > { %1884 = vst.msk [vmem:[%s5829_s6 + $0x88] sm:$0xff] %vm1874_vm5, %v1845_v31  ;;  %v4503_v15 = vadd.f32 %v5824_v46, %v3173_v18  ;;  %v1847_v32 = vpop.permute.xlu0 %1846  ;;  %v4333_v4 = vpop.f32.mrb[22].mxu0 }
 0x1e1   : > { %3654 = vst.msk [vmem:[%s5829_s6 + $0x50] sm:$0xff] %vm1093_vm4, %v4487_v21  ;;  %3274 = vrot.lane.b32.xlu1 %v4502_v24, %s4876_s7  ;;  %v4488_v39 = vadd.f32 %v4333_v4, %v5824_v46  ;;  %v2498_v27 = vpop.f32.mrb[23].mxu0 }
 0x1e2   : > { %1885 = vst.msk [vmem:[%s5829_s6 + $0xa0] sm:$0xff] %vm1874_vm5, %v1847_v32  ;;  %v4437_v45 = vpop.f32.mrb[22].mxu1  ;;  %3272 = vrot.lane.b32.xlu0 %v4503_v15, %s4876_s7  ;;  %v4489_v47 = vadd.f32 %v5824_v46, %v2498_v27 }
 0x1e3   : > { %v4504_v48 = vadd.f32 %v4437_v45, %v5824_v46  ;;  %v1849_v55 = vpop.permute.xlu1 %1848  ;;  %v3183_v56 = vpop.f32.mrb[23].mxu1  ;;  %3657 = vst.msk [vmem:[%s5829_s6 + $0x78] sm:$0xff] %vm1093_vm4, %v4488_v39 }
 0x1e4   : > { %1886 = vst.msk [vmem:[%s5829_s6 + $0xa8] sm:$0xff] %vm1874_vm5, %v1849_v55  ;;  %v4505_v61 = vadd.f32 %v5824_v46, %v3183_v56  ;;  %v1851_v0 = vpop.permute.xlu0 %1850  ;;  %v4336_v3 = vpop.f32.mrb[24].mxu0 }
 0x1e5   : > { %3656 = vst.msk [vmem:[%s5829_s6 + $0x70] sm:$0xff] %vm1093_vm4, %v4489_v47  ;;  %3278 = vrot.lane.b32.xlu1 %v4504_v48, %s4876_s7  ;;  %v4490_v11 = vadd.f32 %v4336_v3, %v5824_v46  ;;  %v2508_v12 = vpop.f32.mrb[25].mxu0 }
 0x1e6   : > { %1887 = vst.msk [vmem:[%s5829_s6 + $0xc0] sm:$0xff] %vm1874_vm5, %v1851_v0  ;;  %v4440_v23 = vpop.f32.mrb[24].mxu1  ;;  %3276 = vrot.lane.b32.xlu0 %v4505_v61, %s4876_s7  ;;  %v4491_v16 = vadd.f32 %v5824_v46, %v2508_v12 }
 0x1e7   : > { %v4506_v17 = vadd.f32 %v4440_v23, %v5824_v46  ;;  %v1853_v25 = vpop.permute.xlu1 %1852  ;;  %v3193_v26 = vpop.f32.mrb[25].mxu1  ;;  %3659 = vst.msk [vmem:[%s5829_s6 + $0x98] sm:$0xff] %vm1093_vm4, %v4490_v11 }
 0x1e8   : > { %1888 = vst.msk [vmem:[%s5829_s6 + $0xc8] sm:$0xff] %vm1874_vm5, %v1853_v25  ;;  %v4507_v28 = vadd.f32 %v5824_v46, %v3193_v26  ;;  %v1855_v34 = vpop.permute.xlu0 %1854  ;;  %v4339_v35 = vpop.f32.mrb[26].mxu0 }
 0x1e9   : > { %3658 = vst.msk [vmem:[%s5829_s6 + $0x90] sm:$0xff] %vm1093_vm4, %v4491_v16  ;;  %3282 = vrot.lane.b32.xlu1 %v4506_v17, %s4876_s7  ;;  %v4492_v42 = vadd.f32 %v4339_v35, %v5824_v46  ;;  %v2518_v30 = vpop.f32.mrb[27].mxu0 }
 0x1ea   : > { %1889 = vst.msk [vmem:[%s5829_s6 + $0xe0] sm:$0xff] %vm1874_vm5, %v1855_v34  ;;  %v4443_v36 = vpop.f32.mrb[26].mxu1  ;;  %3280 = vrot.lane.b32.xlu0 %v4507_v28, %s4876_s7  ;;  %v4493_v38 = vadd.f32 %v5824_v46, %v2518_v30 }
 0x1eb   : > { %v4508_v43 = vadd.f32 %v4443_v36, %v5824_v46  ;;  %v1857_v44 = vpop.permute.xlu1 %1856  ;;  %v3203_v50 = vpop.f32.mrb[27].mxu1  ;;  %3661 = vst.msk [vmem:[%s5829_s6 + $0xb8] sm:$0xff] %vm1093_vm4, %v4492_v42 }
 0x1ec   : > { %1890 = vst.msk [vmem:[%s5829_s6 + $0xe8] sm:$0xff] %vm1874_vm5, %v1857_v44  ;;  %v4509_v51 = vadd.f32 %v5824_v46, %v3203_v50  ;;  %v4342_v52 = vpop.f32.mrb[28].mxu0 }
 0x1ed   : > { %3660 = vst.msk [vmem:[%s5829_s6 + $0xb0] sm:$0xff] %vm1093_vm4, %v4493_v38  ;;  %3286 = vrot.lane.b32.xlu1 %v4508_v43, %s4876_s7  ;;  %v4494_v54 = vadd.f32 %v4342_v52, %v5824_v46  ;;  %v2528_v58 = vpop.f32.mrb[29].mxu0 }
 0x1ee   : > { %v4446_v59 = vpop.f32.mrb[28].mxu1  ;;  %3284 = vrot.lane.b32.xlu0 %v4509_v51, %s4876_s7  ;;  %v4495_v60 = vadd.f32 %v5824_v46, %v2528_v58 }
 0x1ef   : > { %v4510_v62 = vadd.f32 %v4446_v59, %v5824_v46  ;;  %v3213_v2 = vpop.f32.mrb[29].mxu1  ;;  %3663 = vst.msk [vmem:[%s5829_s6 + $0xd8] sm:$0xff] %vm1093_vm4, %v4494_v54 }
 0x1f0   : > { %v4511_v8 = vadd.f32 %v5824_v46, %v3213_v2  ;;  %3662 = vst.msk [vmem:[%s5829_s6 + $0xd0] sm:$0xff] %vm1093_vm4, %v4495_v60  ;;  %v4345_v14 = vpop.f32.mrb[30].mxu0 }
 0x1f1   : > { %3290 = vrot.lane.b32.xlu1 %v4510_v62, %s4876_s7  ;;  %v4496_v29 = vadd.f32 %v4345_v14, %v5824_v46  ;;  %v2538_v19 = vpop.f32.mrb[31].mxu0 }
 0x1f2   : > { %v4449_v37 = vpop.f32.mrb[30].mxu1  ;;  %3288 = vrot.lane.b32.xlu0 %v4511_v8, %s4876_s7  ;;  %v4497_v22 = vadd.f32 %v5824_v46, %v2538_v19 }
 0x1f3   : > { %v4512_v40 = vadd.f32 %v4449_v37, %v5824_v46  ;;  %v3223_v33 = vpop.f32.mrb[31].mxu1  ;;  %3665 = vst.msk [vmem:[%s5829_s6 + $0xf8] sm:$0xff] %vm1093_vm4, %v4496_v29 }
 0x1f4   : > { %v4513_v53 = vadd.f32 %v5824_v46, %v3223_v33  ;;  %3664 = vst.msk [vmem:[%s5829_s6 + $0xf0] sm:$0xff] %vm1093_vm4, %v4497_v22 }
 0x1f5   : > { %3294 = vrot.lane.b32.xlu1 %v4512_v40, %s4876_s7 }
 0x1f6   : > { %3292 = vrot.lane.b32.xlu0 %v4513_v53, %s4876_s7 }
 0x24b   : > { %v3267_v41 = vpop.permute.xlu1 %3266 }
 0x24c   : > { %3739 = vst.msk [vmem:[%s5829_s6 + $0x18] sm:$0xff] %vm1874_vm5, %v3267_v41  ;;  %v3265_v63 = vpop.permute.xlu0 %3264 }
 0x24d   : > { %3738 = vst.msk [vmem:[%s5829_s6 + $0x10] sm:$0xff] %vm1874_vm5, %v3265_v63 }
 0x24f   : > { %v3271_v49 = vpop.permute.xlu1 %3270 }
 0x250   : > { %3741 = vst.msk [vmem:[%s5829_s6 + $0x38] sm:$0xff] %vm1874_vm5, %v3271_v49  ;;  %v3269_v46 = vpop.permute.xlu0 %3268 }
 0x251   : > { %3740 = vst.msk [vmem:[%s5829_s6 + $0x30] sm:$0xff] %vm1874_vm5, %v3269_v46 }
 0x253   : > { %v3275_v9 = vpop.permute.xlu1 %3274 }
 0x254   : > { %3743 = vst.msk [vmem:[%s5829_s6 + $0x58] sm:$0xff] %vm1874_vm5, %v3275_v9  ;;  %v3273_v10 = vpop.permute.xlu0 %3272 }
 0x255   : > { %3742 = vst.msk [vmem:[%s5829_s6 + $0x50] sm:$0xff] %vm1874_vm5, %v3273_v10 }
 0x257   : > { %v3279_v13 = vpop.permute.xlu1 %3278 }
 0x258   : > { %3745 = vst.msk [vmem:[%s5829_s6 + $0x78] sm:$0xff] %vm1874_vm5, %v3279_v13  ;;  %v3277_v5 = vpop.permute.xlu0 %3276 }
 0x259   : > { %3744 = vst.msk [vmem:[%s5829_s6 + $0x70] sm:$0xff] %vm1874_vm5, %v3277_v5 }
 0x25b   : > { %v3283_v57 = vpop.permute.xlu1 %3282 }
 0x25c   : > { %3747 = vst.msk [vmem:[%s5829_s6 + $0x98] sm:$0xff] %vm1874_vm5, %v3283_v57  ;;  %v3281_v6 = vpop.permute.xlu0 %3280 }
 0x25d   : > { %3746 = vst.msk [vmem:[%s5829_s6 + $0x90] sm:$0xff] %vm1874_vm5, %v3281_v6 }
 0x25f   : > { %v3287_v20 = vpop.permute.xlu1 %3286 }
 0x260   : > { %3749 = vst.msk [vmem:[%s5829_s6 + $0xb8] sm:$0xff] %vm1874_vm5, %v3287_v20  ;;  %v3285_v7 = vpop.permute.xlu0 %3284 }
 0x261   : > { %3748 = vst.msk [vmem:[%s5829_s6 + $0xb0] sm:$0xff] %vm1874_vm5, %v3285_v7 }
 0x263   : > { %v3291_v1 = vpop.permute.xlu1 %3290 }
 0x264   : > { %3751 = vst.msk [vmem:[%s5829_s6 + $0xd8] sm:$0xff] %vm1874_vm5, %v3291_v1  ;;  %v3289_v21 = vpop.permute.xlu0 %3288 }
 0x265   : > { %3750 = vst.msk [vmem:[%s5829_s6 + $0xd0] sm:$0xff] %vm1874_vm5, %v3289_v21 }
 0x267   : > { %v3295_v24 = vpop.permute.xlu1 %3294 }
 0x268   : > { %3753 = vst.msk [vmem:[%s5829_s6 + $0xf8] sm:$0xff] %vm1874_vm5, %v3295_v24  ;;  %v3293_v31 = vpop.permute.xlu0 %3292 }
 0x269   : > { %3752 = vst.msk [vmem:[%s5829_s6 + $0xf0] sm:$0xff] %vm1874_vm5, %v3293_v31 }
 0x26a   : > { %4793 = shalt.err (!%p4790_p6)
}
 0x26b   : > { %s4794_s4 = scalar_lea.hbm %s6054_s21, 4096  ;;  %s4798_s9 = scalar_lea.hbm %s6120_s3, 16384 }
 0x26c   : > { %p4795_p7 = scmp.ne.s32.totalorder %s6054_s21, %s4794_s4  ;;  %p4799_p11 = scmp.lt.u32.totalorder %s6054_s21, %s6120_s3 }
 0x26d   : > { %p4800_p12 = scmp.lt.u32.totalorder %s4798_s9, %s4794_s4  ;;  %p4802_p0 = scmp.lt.u32.totalorder %s4794_s4, %s6054_s21 }
 0x26e   : > { %p4796_p9 = pnand %p4795_p7, %p4950_p3 }
 0x26f   : > { %p4801_p13 = por %p4800_p12, %p4799_p11 }
 0x270   : > { %p4797_p10 = pneg %p4796_p9 }
 0x271   : > { %p4803_p1 = por %p4802_p0, %p4801_p13 }
 0x273   : > { %p4804_p2 = pnand %p4803_p1, %p4797_p10 }
 0x275   : > { %4807 = shalt.err (!%p4804_p2)
}
 0x276   : > { %s4878_s15 = smov 128  }
 0x277   : > { %4707 = dma.vmem_to_hbm [thread:$0]  (%p4950_p3), %s6056_s20, 4096, %s6054_s21, %s6064_s24, %s4878_s15, %s4878_s15, %s4876_s7  }
 0x278 PF: > { %p4713_p4 = scmp.ge.s32.totalorder %s4874_s19, 2  ;;  %s3360_s16 = sand.u32 1, %s4846_s12  }
 0x279   : > { %s3361_s27 = scalar_lea.sflag [#allocation3], %s3360_s16 }
 0x27a   : > { %p4710_p5 = pnand %p4713_p4, %p4959_p8 }
 0x27c   : > { %4841 = dma.done.wait (!%p4710_p5), %s3361_s27, 4096  }
 0x27d   : > { %4843 = vsyncadd (!%p4710_p5), %s3361_s27, 4294963200  ;;  %s16_s19 = sadd.s32 1, %s4874_s19   ;;  %s6123_s12 = smov %s4850_s13 }
 0x27e   : > { %p13_p6 = scmp.ge.s32.totalorder %s16_s19, 6   ;;  %s6124_s13 = smov %s4854_s14 }
 0x27f   : > { %s6125_s14 = smov %s4968_s30  ;;  %s6126_s15 = smov %s4866_s17 }
 0x280   : > { %s6127_s16 = smov %s4870_s18  ;;  %s6128_s17 = smov %s6131_s22 }
 0x281   : > { %s6129_s18 = smov %s6135_s23  ;;  %15 = sbr.rel (!%p13_p6) target bundleno = 5 (0x5), region = 84 }
 0x288   :  { %3366 = vsyncpa [#allocation3], 1 }
 0x289   :  { %3368 = vsyncpa [#allocation3 + $0x1], 1 }

// kernel: tpu_custom_call.1
= control target key start
LH: loop header
LB: loop body
LE: loop exit
PB: predicated region body
PF: predicated region fallthrough
CT: control target
= control target key end

     0   :  { %8 = vsyncpa [#allocation3], 0  ;;  %s6115_s0 = inlined_call_operand.vmem [shape: f32[2,18,18,4], index: 0, kind: input, shape index: {}]   ;;  %s6116_s1 = inlined_call_operand.vmem [shape: f32[4,4,4,8], index: 1, kind: input, shape index: {}]   ;;  %s6117_s2 = inlined_call_operand.vmem [shape: f32[1,8], index: 2, kind: input, shape index: {}]   ;;  %s6118_s3 = inlined_call_operand.hbm [shape: f32[2,16,2,16,16], index: 3, kind: output, shape index: {}]  }
   0x1   :  { %10 = vsyncpa [#allocation3 + $0x1], 0  ;;  %s4897_s12 = smov 0   ;;  %s4899_s13 = smov 0  }
   0x2   :  { %s4901_s14 = smov 0   ;;  %s4903_s15 = smov 0  }
   0x3   :  { %s4905_s16 = smov 0   ;;  %s4907_s17 = smov 0  }
   0x4   :  { %s4909_s18 = smov 0   ;;  %s4911_s19 = smov 0  }
   0x5 LB: > { %s3423_s20 = sadd.s32 4294967295, %s4872_s19   ;;  %s3424_s21 = sadd.s32 4294967294, %s4872_s19   ;;  %s4872_s19 = sphi %s4911_s19, %s16_s19   ;;  %s4868_s18 = sphi %s4909_s18, %s6127_s18   ;;  %s4864_s17 = sphi %s4907_s17, %s6126_s17   ;;  %s4860_s16 = sphi %s4905_s16, %s6125_s16   ;;  %s4856_s15 = sphi %s4903_s15, %s6124_s15   ;;  %s4852_s14 = sphi %s4901_s14, %s6123_s14   ;;  %s4848_s13 = sphi %s4899_s13, %s6122_s13   ;;  %s4844_s12 = sphi %s4897_s12, %s6121_s12  }
   0x6   : > { %s25_s22 = sadd.s32 1, %s4864_s17  ;;  %s28_s23 = sadd.s32 1, %s4868_s18 }
   0x7   : > { %p26_p0 = scmp.ge.s32.totalorder %s25_s22, 2  ;;  %p115_p1 = scmp.ne.s32.totalorder %s4852_s14, %s4848_s13 }
   0x8   : > { %p116_p2 = scmp.eq.s32.totalorder %s3423_s20, 3  ;;  %p121_p5 = scmp.ne.s32.totalorder %s4848_s13, %s4844_s12 }
   0x9   : > { %s6129_s22 = smov (%p26_p0, %s25_s22), 0  ;;  %s6131_s23 = smov (!%p26_p0, %s28_s23), %s4868_s18 }
   0xa   : > { %s101_s24 = ssub.s32 %s4864_s17, %s6129_s22  ;;  %p4948_p3 = por %p116_p2, %p115_p1 }
   0xb   : > { %p30_p4 = scmp.ge.s32.totalorder %s6131_s23, 2  ;;  %p122_p6 = scmp.eq.s32.totalorder %s3424_s21, 3 }
   0xc   : > { %p3427_p7 = scmp.ge.s32.totalorder %s4872_s19, 1  ;;  %p154_p9 = scmp.lt.s32.totalorder %s4872_s19, 5 }
   0xd   : > { %s6133_s23 = smov (%p30_p4, %s6131_s23), 0  ;;  %p4957_p8 = por %p122_p6, %p121_p5 }
   0xe   : > { %s100_s27 = ssub.s32 %s4868_s18, %s6133_s23  ;;  %s105_s28 = sadd.s32 1, %s4852_s14 }
   0xf   : > { %s102_s29 = sor.u32 %s101_s24, %s100_s27  ;;  %p155_p10 = pnand %p3427_p7, %p154_p9 }
  0x10   : > { %p103_p11 = scmp.eq.s32.totalorder %s102_s29, 0  ;;  %vm390_vm0 = vcmask (!%p155_p10), 1043456   ;;  %v3504_v0 = vld [vmem:[%s6116_s1 + $0x10] sm:$0xf] (!%p155_p10)  ;;  %p178_p12 = scmp.lt.s32.totalorder (!%p155_p10), %s4860_s16, 1  ;;  %vm241_vm1 = vcmask (!%p155_p10), 1046528  }
  0x11   : > { %158 = sbr.rel (%p155_p10) target bundleno = 632 (0x278), region = 32  ;;  %4136 = vmatprep.subr.msk.mxu1 (!%p155_p10), %vm390_vm0, %v3504_v0  ;;  %v3522_v1 = vld [vmem:[%s6116_s1 + $0x14] sm:$0xf] (!%p155_p10)  ;;  %v356_v2 = vld [vmem:[%s6116_s1] sm:$0xf] (!%p155_p10)  ;;  %vm357_vm2 = vcmask (!%p155_p10), 31744  }
  0x12   : > { %s4966_s30 = scalar_select %p103_p11, %s4852_s14, %s105_s28  }
  0x13   : > { %4137 = vmatpush3.msk.msra.mxu1 (!%p155_p10), %vm390_vm0, %v3504_v0  ;;  %4032 = vmatprep.subr.msk.mxu0 (!%p155_p10), %vm390_vm0, %v356_v2  ;;  %v3450_v3 = vld [vmem:[%s6116_s1 + $0x4] sm:$0xf] (!%p155_p10)  ;;  %s3431_s21 = smul.u32 (!%p155_p10), 192, %s4856_s15  ;;  %v4997_v4 = vld [vmem:[%s6116_s1 + $0x8] sm:$0xf] (!%p155_p10)  ;;  %vm282_vm3 = vcmask (!%p155_p10), 1045504  }
  0x14   : > { %4162 = vmatprep.subr.msk.mxu1 (!%p155_p10), %vm390_vm0, %v3522_v1  ;;  %4033 = vmatpush3.msk.msra.mxu0 (!%p155_p10), %vm390_vm0, %v356_v2  ;;  %v5061_v27 = vld [vmem:[%s6116_s1 + $0x18] sm:$0xf] (!%p155_p10)  ;;  %vm1093_vm4 = vcmask (!%p155_p10), 64512   ;;  %s4874_s7 = smov (!%p155_p10), 8   ;;  %vm1874_vm5 = vcmask (!%p155_p10), 130112   ;;  %s3759_s8 = sshll.u32 (!%p155_p10), %s4856_s15, 5 }
  0x15   : > { %4058 = vmatprep.subr.msk.mxu0 (!%p155_p10), %vm390_vm0, %v3450_v3  ;;  %s3755_s9 = sshll.u32 (!%p155_p10), %s4860_s16, 6 }
  0x18   : > { %s179_s10 = scalar_select %p178_p12, %s4860_s16, 1 }
  0x1a   : > { %s4704_s24 = smul.u32 432, %s179_s10  ;;  %s3342_s10 = sadd.s32 %s3759_s8, %s3755_s9 }
  0x1b   : > { %s3756_s11 = sshll.u32 %s3342_s10, 7 }
  0x1c   : > { %s182_s29 = scalar_lea.vmem %s6115_s0, %s4704_s24 }
  0x1d   : > { %s4992_s4 = scalar_lea.vmem %s182_s29, %s3431_s21  ;;  %s6052_s21 = scalar_lea.hbm %s6118_s3, %s3756_s11 }
  0x1e   : > { %v5000_v5 = vld [vmem:[%s4992_s4] sm:$0xff]  ;;  %v5003_v6 = vld [vmem:[%s4992_s4 + $0x8] sm:$0xff]  ;;  %v5006_v7 = vld [vmem:[%s4992_s4 + $0x10] sm:$0x3] }
  0x1f   : > { %v242_v8 = vrot.slane %v5000_v5, 1  ;;  %v243_v9 = vrot.slane %v5003_v6, 1  ;;  %v245_v10 = vrot.slane %v5006_v7, 1  ;;  %v5012_v11 = vld [vmem:[%s4992_s4 + $0x18] sm:$0xff]  ;;  %v5015_v12 = vld [vmem:[%s4992_s4 + $0x20] sm:$0xff]  ;;  %4034 = vmatprep.mubr.msk.f32.mxu0 %vm357_vm2, %v5000_v5  ;;  %v5025_v16 = vld [vmem:[%s4992_s4 + $0x30] sm:$0xff] }
  0x20   : > { %v247_v13 = vrot.slane %v5012_v11, 1  ;;  %v248_v14 = vrot.slane %v5015_v12, 1  ;;  %v5022_v15 = vld [vmem:[%s4992_s4 + $0x28] sm:$0x3]  ;;  %v5028_v17 = vld [vmem:[%s4992_s4 + $0x38] sm:$0xff]  ;;  %4035 = vmatmul.mubr.msk.f32.vlgmr.msra.gmra.mrb[0].mxu0 %vm357_vm2, %v5003_v6  ;;  %v252_v21 = vrot.slane %v5025_v16, 1 }
  0x21   : > { %v5033_v18 = vsel %vm241_vm1, %v242_v8, %v243_v9  ;;  %v5036_v19 = vsel %vm241_vm1, %v243_v9, %v245_v10  ;;  %v250_v20 = vrot.slane %v5022_v15, 1  ;;  %v5041_v22 = vld [vmem:[%s4992_s4 + $0x40] sm:$0x3]  ;;  %4037 = vmatprep.mubr.msk.f32.mxu0 %vm357_vm2, %v5012_v11  ;;  %4059 = vmatpush3.msk.msra.mxu0 %vm390_vm0, %v3450_v3  ;;  %v253_v24 = vrot.slane %v5028_v17, 1  ;;  %v5053_v25 = vld [vmem:[%s4992_s4 + $0x48] sm:$0xff]  ;;  %v5056_v26 = vld [vmem:[%s4992_s4 + $0x50] sm:$0xff] }
  0x22   : > { %4138 = vmatprep.mubr.msk.f32.mxu1 %vm357_vm2, %v5033_v18  ;;  %v5049_v23 = vsel %vm241_vm1, %v247_v13, %v248_v14  ;;  %4084 = vmatprep.subr.msk.mxu0 %vm390_vm0, %v4997_v4  ;;  %v255_v29 = vrot.slane %v5041_v22, 1  ;;  %v257_v31 = vrot.slane %v5053_v25, 1  ;;  %v258_v32 = vrot.slane %v5056_v26, 1  ;;  %v5080_v33 = vld [vmem:[%s4992_s4 + $0x58] sm:$0x3]  ;;  %v5087_v34 = vld [vmem:[%s4992_s4 + $0x60] sm:$0xff] }
  0x23   : > { %4139 = vmatmul.mubr.msk.f32.vlgmr.msra.gmra.mrb[0].mxu1 %vm357_vm2, %v5036_v19  ;;  %v5071_v28 = vsel %vm241_vm1, %v248_v14, %v250_v20  ;;  %v5075_v30 = vsel %vm241_vm1, %v252_v21, %v253_v24  ;;  %v5090_v35 = vld [vmem:[%s4992_s4 + $0x68] sm:$0xff]  ;;  %v260_v37 = vrot.slane %v5080_v33, 1  ;;  %v262_v39 = vrot.slane %v5087_v34, 1  ;;  %v5108_v41 = vld [vmem:[%s4992_s4 + $0x70] sm:$0x3]  ;;  %v5113_v42 = vld [vmem:[%s4992_s4 + $0x78] sm:$0xff] }
  0x24   : > { %4163 = vmatpush3.msk.msra.mxu1 %vm390_vm0, %v3522_v1  ;;  %4141 = vmatprep.mubr.msk.f32.mxu1 %vm357_vm2, %v5049_v23  ;;  %v5099_v36 = vsel %vm241_vm1, %v253_v24, %v255_v29  ;;  %v5103_v38 = vsel %vm241_vm1, %v257_v31, %v258_v32  ;;  %v263_v40 = vrot.slane %v5090_v35, 1  ;;  %v5116_v43 = vld [vmem:[%s4992_s4 + $0x80] sm:$0xff]  ;;  %v265_v45 = vrot.slane %v5108_v41, 1  ;;  %v5134_v49 = vld [vmem:[%s4992_s4 + $0x88] sm:$0x3]  ;;  %v5139_v50 = vld [vmem:[%s4992_s4 + $0x90] sm:$0xff] }
  0x25   : > { %4038 = vmatmul.mubr.msk.f32.gmra.mrb[2].mxu0 %vm357_vm2, %v5015_v12  ;;  %4188 = vmatprep.subr.msk.mxu1 %vm390_vm0, %v5061_v27  ;;  %v5125_v44 = vsel %vm241_vm1, %v258_v32, %v260_v37  ;;  %v267_v47 = vrot.slane %v5113_v42, 1  ;;  %v268_v48 = vrot.slane %v5116_v43, 1  ;;  %v5142_v51 = vld [vmem:[%s4992_s4 + $0x98] sm:$0xff]  ;;  %v270_v53 = vrot.slane %v5134_v49, 1  ;;  %v5160_v57 = vld [vmem:[%s4992_s4 + $0xa0] sm:$0x3] }
  0x26   : > { %4040 = vmatprep.mubr.msk.f32.mxu0 %vm357_vm2, %v5025_v16  ;;  %v5129_v46 = vsel %vm241_vm1, %v262_v39, %v263_v40  ;;  %v5151_v52 = vsel %vm241_vm1, %v263_v40, %v265_v45  ;;  %v272_v55 = vrot.slane %v5139_v50, 1  ;;  %v273_v56 = vrot.slane %v5142_v51, 1  ;;  %v5165_v58 = vld [vmem:[%s4992_s4 + $0xa8] sm:$0xff]  ;;  %v5168_v59 = vld [vmem:[%s4992_s4 + $0xb0] sm:$0xff]  ;;  %v5186_v1 = vld [vmem:[%s4992_s4 + $0xb8] sm:$0x3] }
  0x27   : > { %4142 = vmatmul.mubr.msk.f32.gmra.mrb[2].mxu1 %vm357_vm2, %v5071_v28  ;;  %v5155_v54 = vsel %vm241_vm1, %v267_v47, %v268_v48  ;;  %v5177_v60 = vsel %vm241_vm1, %v268_v48, %v270_v53  ;;  %v275_v61 = vrot.slane %v5160_v57, 1  ;;  %v277_v63 = vrot.slane %v5165_v58, 1  ;;  %v5232_v24 = vld [vmem:[%s6116_s1 + $0xc] sm:$0xf] }
  0x28   : > { %4144 = vmatprep.mubr.msk.f32.mxu1 %vm357_vm2, %v5075_v30  ;;  %v5181_v62 = vsel %vm241_vm1, %v272_v55, %v273_v56  ;;  %v278_v0 = vrot.slane %v5168_v59, 1  ;;  %v280_v3 = vrot.slane %v5186_v1, 1  ;;  %v283_v9 = vrot.slane %v5000_v5, 2 }
  0x29   : > { %4041 = vmatmul.mubr.msk.f32.gmra.mrb[4].mxu0 %vm357_vm2, %v5028_v17  ;;  %v5197_v2 = vsel %vm241_vm1, %v273_v56, %v275_v61  ;;  %v284_v10 = vrot.slane %v5003_v6, 2  ;;  %v286_v13 = vrot.slane %v5006_v7, 2  ;;  %v288_v6 = vrot.slane %v5012_v11, 2 }
  0x2a   : > { %4043 = vmatprep.mubr.msk.f32.mxu0 %vm357_vm2, %v5053_v25  ;;  %v5201_v8 = vsel %vm241_vm1, %v277_v63, %v278_v0  ;;  %v5215_v14 = vsel %vm241_vm1, %v278_v0, %v280_v3  ;;  %v289_v20 = vrot.slane %v5015_v12, 2  ;;  %v291_v21 = vrot.slane %v5022_v15, 2  ;;  %v5246_v15 = vld [vmem:[%s6116_s1 + $0x1c] sm:$0xf] }
  0x2b   : > { %4145 = vmatmul.mubr.msk.f32.gmra.mrb[4].mxu1 %vm357_vm2, %v5099_v36  ;;  %v285_v5 = vsel %vm282_vm3, %v283_v9, %v284_v10  ;;  %v287_v7 = vsel %vm282_vm3, %v284_v10, %v286_v13  ;;  %v293_v31 = vrot.slane %v5025_v16, 2  ;;  %v296_v32 = vrot.slane %v5041_v22, 2 }
  0x2c   : > { %4147 = vmatprep.mubr.msk.f32.mxu1 %vm357_vm2, %v5103_v38  ;;  %v5235_v29 = vsel %vm282_vm3, %v288_v6, %v289_v20  ;;  %v299_v39 = vrot.slane %v5056_v26, 2  ;;  %v303_v45 = vrot.slane %v5087_v34, 2  ;;  %v304_v47 = vrot.slane %v5090_v35, 2 }
  0x2d   : > { %4044 = vmatmul.mubr.msk.f32.gmra.mrb[6].mxu0 %vm357_vm2, %v5056_v26  ;;  %v306_v48 = vrot.slane %v5108_v41, 2  ;;  %v308_v55 = vrot.slane %v5113_v42, 2  ;;  %v309_v56 = vrot.slane %v5116_v43, 2  ;;  %v311_v61 = vrot.slane %v5134_v49, 2 }
  0x2e   : > { %4046 = vmatprep.mubr.msk.f32.mxu0 %vm357_vm2, %v5087_v34  ;;  %v5298_v53 = vsel %vm282_vm3, %v303_v45, %v304_v47  ;;  %v313_v0 = vrot.slane %v5139_v50, 2  ;;  %v314_v3 = vrot.slane %v5142_v51, 2  ;;  %v316_v9 = vrot.slane %v5160_v57, 2  ;;  %v3594_v45 = vld [vmem:[%s6116_s1 + $0x24] sm:$0xf] }
  0x2f   : > { %4148 = vmatmul.mubr.msk.f32.gmra.mrb[6].mxu1 %vm357_vm2, %v5125_v44  ;;  %v5311_v41 = vsel %vm282_vm3, %v304_v47, %v306_v48  ;;  %v5315_v63 = vsel %vm282_vm3, %v308_v55, %v309_v56  ;;  %v5328_v49 = vsel %vm282_vm3, %v309_v56, %v311_v61  ;;  %v318_v13 = vrot.slane %v5165_v58, 2  ;;  %v3682_v47 = vld [vmem:[%s6116_s1 + $0x34] sm:$0xf] }
  0x30   : > { %4150 = vmatprep.mubr.msk.f32.mxu1 %vm357_vm2, %v5129_v46  ;;  %v5332_v10 = vsel %vm282_vm3, %v313_v0, %v314_v3  ;;  %v5345_v57 = vsel %vm282_vm3, %v314_v3, %v316_v9  ;;  %v321_v6 = vrot.slane %v5186_v1, 2  ;;  %v3576_v1 = vld [vmem:[%s6116_s1 + $0x20] sm:$0xf]  ;;  %v3612_v3 = vld [vmem:[%s6116_s1 + $0x28] sm:$0xf] }
  0x31   : > { %4047 = vmatmul.mubr.msk.f32.gmra.mrb[8].mxu0 %vm357_vm2, %v5090_v35 }
  0x32   : > { %4049 = vmatprep.mubr.msk.f32.mxu0 %vm357_vm2, %v5113_v42 }
  0x33   : > { %4151 = vmatmul.mubr.msk.f32.gmra.mrb[8].mxu1 %vm357_vm2, %v5151_v52 }
  0x34   : > { %4153 = vmatprep.mubr.msk.f32.mxu1 %vm357_vm2, %v5155_v54 }
  0x35   : > { %4050 = vmatmul.mubr.msk.f32.gmra.mrb[10].mxu0 %vm357_vm2, %v5116_v43 }
  0x36   : > { %4052 = vmatprep.mubr.msk.f32.mxu0 %vm357_vm2, %v5139_v50 }
  0x37   : > { %4154 = vmatmul.mubr.msk.f32.gmra.mrb[10].mxu1 %vm357_vm2, %v5177_v60 }
  0x38   : > { %4156 = vmatprep.mubr.msk.f32.mxu1 %vm357_vm2, %v5181_v62 }
  0x39   : > { %4053 = vmatmul.mubr.msk.f32.gmra.mrb[12].mxu0 %vm357_vm2, %v5142_v51 }
  0x3a   : > { %4055 = vmatprep.mubr.msk.f32.mxu0 %vm357_vm2, %v5165_v58 }
  0x3b   : > { %4157 = vmatmul.mubr.msk.f32.gmra.mrb[12].mxu1 %vm357_vm2, %v5197_v2 }
  0x3c   : > { %4159 = vmatprep.mubr.msk.f32.mxu1 %vm357_vm2, %v5201_v8 }
  0x3d   : > { %4056 = vmatmul.mubr.msk.f32.gmra.mrb[14].mxu0 %vm357_vm2, %v5168_v59 }
  0x3e   : > { %4060 = vmatprep.mubr.msk.f32.mxu0 %vm357_vm2, %v5033_v18  ;;  %v294_v18 = vrot.slane %v5028_v17, 2 }
  0x3f   : > { %4160 = vmatmul.mubr.msk.f32.gmra.mrb[14].mxu1 %vm357_vm2, %v5215_v14 }
  0x40   : > { %4164 = vmatprep.mubr.msk.f32.mxu1 %vm357_vm2, %v285_v5  ;;  %v5262_v37 = vsel %vm282_vm3, %v293_v31, %v294_v18  ;;  %v5277_v22 = vsel %vm282_vm3, %v294_v18, %v296_v32  ;;  %v319_v5 = vrot.slane %v5168_v59, 2  ;;  %v5420_v31 = vld [vmem:[%s4992_s4 + $0xc8] sm:$0xff]  ;;  %v213_v32 = vld [vmem:[%s4992_s4 + $0xd0] sm:$0x3] }
  0x41   : > { %4061 = vmatmul.mubr.msk.f32.vlgmr.msra.gmra.mrb[0].mxu0 %vm357_vm2, %v5036_v19  ;;  %v5258_v19 = vsel %vm282_vm3, %v289_v20, %v291_v21  ;;  %v3664_v21 = vld [vmem:[%s6116_s1 + $0x30] sm:$0xf]  ;;  %v332_v55 = vrot.slane %v5420_v31, 2  ;;  %v334_v56 = vrot.slane %v213_v32, 2 }
  0x42   : > { %4063 = vmatprep.mubr.msk.f32.mxu0 %vm357_vm2, %v5049_v23  ;;  %4085 = vmatpush3.msk.msra.mxu0 %vm390_vm0, %v4997_v4  ;;  %v298_v4 = vrot.slane %v5053_v25, 2  ;;  %v5349_v20 = vsel %vm282_vm3, %v318_v13, %v319_v5 }
  0x43   : > { %4165 = vmatmul.mubr.msk.f32.vlgmr.msra.gmra.mrb[0].mxu1 %vm357_vm2, %v287_v7  ;;  %4110 = vmatprep.subr.msk.mxu0 %vm390_vm0, %v5232_v24  ;;  %v5360_v7 = vsel %vm282_vm3, %v319_v5, %v321_v6  ;;  %v5533_v0 = vsel %vm282_vm3, %v332_v55, %v334_v56 }
  0x44   : > { %4189 = vmatpush3.msk.msra.mxu1 %vm390_vm0, %v5061_v27  ;;  %4167 = vmatprep.mubr.msk.f32.mxu1 %vm357_vm2, %v5235_v29  ;;  %v301_v27 = vrot.slane %v5080_v33, 2  ;;  %v5281_v40 = vsel %vm282_vm3, %v298_v4, %v299_v39  ;;  %v329_v4 = vrot.slane %v213_v32, 1 }
  0x45   : > { %4064 = vmatmul.mubr.msk.f32.gmra.mrb[2].mxu0 %vm357_vm2, %v5071_v28  ;;  %4214 = vmatprep.subr.msk.mxu1 %vm390_vm0, %v5246_v15 }
  0x46   : > { %4066 = vmatprep.mubr.msk.f32.mxu0 %vm357_vm2, %v5075_v30  ;;  %v5294_v33 = vsel %vm282_vm3, %v299_v39, %v301_v27 }
  0x47   : > { %4168 = vmatmul.mubr.msk.f32.gmra.mrb[2].mxu1 %vm357_vm2, %v5258_v19 }
  0x48   : > { %4170 = vmatprep.mubr.msk.f32.mxu1 %vm357_vm2, %v5262_v37 }
  0x49   : > { %4067 = vmatmul.mubr.msk.f32.gmra.mrb[4].mxu0 %vm357_vm2, %v5099_v36 }
  0x4a   : > { %4069 = vmatprep.mubr.msk.f32.mxu0 %vm357_vm2, %v5103_v38 }
  0x4b   : > { %4171 = vmatmul.mubr.msk.f32.gmra.mrb[4].mxu1 %vm357_vm2, %v5277_v22 }
  0x4c   : > { %4173 = vmatprep.mubr.msk.f32.mxu1 %vm357_vm2, %v5281_v40 }
  0x4d   : > { %4070 = vmatmul.mubr.msk.f32.gmra.mrb[6].mxu0 %vm357_vm2, %v5125_v44 }
  0x4e   : > { %4072 = vmatprep.mubr.msk.f32.mxu0 %vm357_vm2, %v5129_v46 }
  0x4f   : > { %4174 = vmatmul.mubr.msk.f32.gmra.mrb[6].mxu1 %vm357_vm2, %v5294_v33 }
  0x50   : > { %4176 = vmatprep.mubr.msk.f32.mxu1 %vm357_vm2, %v5298_v53 }
  0x51   : > { %4073 = vmatmul.mubr.msk.f32.gmra.mrb[8].mxu0 %vm357_vm2, %v5151_v52 }
  0x52   : > { %4075 = vmatprep.mubr.msk.f32.mxu0 %vm357_vm2, %v5155_v54 }
  0x53   : > { %4177 = vmatmul.mubr.msk.f32.gmra.mrb[8].mxu1 %vm357_vm2, %v5311_v41 }
  0x54   : > { %4179 = vmatprep.mubr.msk.f32.mxu1 %vm357_vm2, %v5315_v63 }
  0x55   : > { %4076 = vmatmul.mubr.msk.f32.gmra.mrb[10].mxu0 %vm357_vm2, %v5177_v60 }
  0x56   : > { %4078 = vmatprep.mubr.msk.f32.mxu0 %vm357_vm2, %v5181_v62 }
  0x57   : > { %4180 = vmatmul.mubr.msk.f32.gmra.mrb[10].mxu1 %vm357_vm2, %v5328_v49 }
  0x58   : > { %4182 = vmatprep.mubr.msk.f32.mxu1 %vm357_vm2, %v5332_v10 }
  0x59   : > { %4079 = vmatmul.mubr.msk.f32.gmra.mrb[12].mxu0 %vm357_vm2, %v5197_v2 }
  0x5a   : > { %4081 = vmatprep.mubr.msk.f32.mxu0 %vm357_vm2, %v5201_v8 }
  0x5b   : > { %4183 = vmatmul.mubr.msk.f32.gmra.mrb[12].mxu1 %vm357_vm2, %v5345_v57 }
  0x5c   : > { %4185 = vmatprep.mubr.msk.f32.mxu1 %vm357_vm2, %v5349_v20 }
  0x5d   : > { %4082 = vmatmul.mubr.msk.f32.gmra.mrb[14].mxu0 %vm357_vm2, %v5215_v14 }
  0x5e   : > { %4086 = vmatprep.mubr.msk.f32.mxu0 %vm357_vm2, %v5012_v11 }
  0x5f   : > { %4186 = vmatmul.mubr.msk.f32.gmra.mrb[14].mxu1 %vm357_vm2, %v5360_v7 }
  0x60   : > { %4190 = vmatprep.mubr.msk.f32.mxu1 %vm357_vm2, %v5049_v23 }
  0x61   : > { %4087 = vmatmul.mubr.msk.f32.vlgmr.msra.gmra.mrb[0].mxu0 %vm357_vm2, %v5015_v12 }
  0x62   : > { %4089 = vmatprep.mubr.msk.f32.mxu0 %vm357_vm2, %v5025_v16  ;;  %4111 = vmatpush3.msk.msra.mxu0 %vm390_vm0, %v5232_v24  ;;  %v5417_v24 = vld [vmem:[%s4992_s4 + $0xc0] sm:$0xff] }
  0x63   : > { %4191 = vmatmul.mubr.msk.f32.vlgmr.msra.gmra.mrb[0].mxu1 %vm357_vm2, %v5071_v28  ;;  %4240 = vmatprep.subr.msk.mxu0 %vm390_vm0, %v3576_v1  ;;  %v326_v18 = vrot.slane %v5417_v24, 1  ;;  %v331_v48 = vrot.slane %v5417_v24, 2 }
  0x64   : > { %4215 = vmatpush3.msk.msra.mxu1 %vm390_vm0, %v5246_v15  ;;  %4193 = vmatprep.mubr.msk.f32.mxu1 %vm357_vm2, %v5075_v30  ;;  %v327_v15 = vrot.slane %v5420_v31, 1 }
  0x65   : > { %4090 = vmatmul.mubr.msk.f32.gmra.mrb[2].mxu0 %vm357_vm2, %v5028_v17  ;;  %4344 = vmatprep.subr.msk.mxu1 %vm390_vm0, %v3664_v21  ;;  %v5522_v61 = vsel %vm282_vm3, %v331_v48, %v332_v55 }
  0x66   : > { %4092 = vmatprep.mubr.msk.f32.mxu0 %vm357_vm2, %v5053_v25  ;;  %v5440_v39 = vsel %vm241_vm1, %v326_v18, %v327_v15  ;;  %v5451_v27 = vsel %vm241_vm1, %v327_v15, %v329_v4 }
  0x67   : > { %4194 = vmatmul.mubr.msk.f32.gmra.mrb[2].mxu1 %vm357_vm2, %v5099_v36 }
  0x68   : > { %4196 = vmatprep.mubr.msk.f32.mxu1 %vm357_vm2, %v5103_v38 }
  0x69   : > { %4093 = vmatmul.mubr.msk.f32.gmra.mrb[4].mxu0 %vm357_vm2, %v5056_v26 }
  0x6a   : > { %4095 = vmatprep.mubr.msk.f32.mxu0 %vm357_vm2, %v5087_v34 }
  0x6b   : > { %4197 = vmatmul.mubr.msk.f32.gmra.mrb[4].mxu1 %vm357_vm2, %v5125_v44 }
  0x6c   : > { %4199 = vmatprep.mubr.msk.f32.mxu1 %vm357_vm2, %v5129_v46 }
  0x6d   : > { %4096 = vmatmul.mubr.msk.f32.gmra.mrb[6].mxu0 %vm357_vm2, %v5090_v35 }
  0x6e   : > { %4098 = vmatprep.mubr.msk.f32.mxu0 %vm357_vm2, %v5113_v42 }
  0x6f   : > { %4200 = vmatmul.mubr.msk.f32.gmra.mrb[6].mxu1 %vm357_vm2, %v5151_v52 }
  0x70   : > { %4202 = vmatprep.mubr.msk.f32.mxu1 %vm357_vm2, %v5155_v54 }
  0x71   : > { %4099 = vmatmul.mubr.msk.f32.gmra.mrb[8].mxu0 %vm357_vm2, %v5116_v43 }
  0x72   : > { %4101 = vmatprep.mubr.msk.f32.mxu0 %vm357_vm2, %v5139_v50 }
  0x73   : > { %4203 = vmatmul.mubr.msk.f32.gmra.mrb[8].mxu1 %vm357_vm2, %v5177_v60 }
  0x74   : > { %4205 = vmatprep.mubr.msk.f32.mxu1 %vm357_vm2, %v5181_v62 }
  0x75   : > { %4102 = vmatmul.mubr.msk.f32.gmra.mrb[10].mxu0 %vm357_vm2, %v5142_v51 }
  0x76   : > { %4104 = vmatprep.mubr.msk.f32.mxu0 %vm357_vm2, %v5165_v58 }
  0x77   : > { %4206 = vmatmul.mubr.msk.f32.gmra.mrb[10].mxu1 %vm357_vm2, %v5197_v2 }
  0x78   : > { %4208 = vmatprep.mubr.msk.f32.mxu1 %vm357_vm2, %v5201_v8 }
  0x79   : > { %4105 = vmatmul.mubr.msk.f32.gmra.mrb[12].mxu0 %vm357_vm2, %v5168_v59 }
  0x7a   : > { %4107 = vmatprep.mubr.msk.f32.mxu0 %vm357_vm2, %v5417_v24 }
  0x7b   : > { %4209 = vmatmul.mubr.msk.f32.gmra.mrb[12].mxu1 %vm357_vm2, %v5215_v14 }
  0x7c   : > { %4211 = vmatprep.mubr.msk.f32.mxu1 %vm357_vm2, %v5440_v39 }
  0x7d   : > { %4108 = vmatmul.mubr.msk.f32.gmra.mrb[14].mxu0 %vm357_vm2, %v5420_v31 }
  0x7e   : > { %4112 = vmatprep.mubr.msk.f32.mxu0 %vm357_vm2, %v5049_v23 }
  0x7f   : > { %4212 = vmatmul.mubr.msk.f32.gmra.mrb[14].mxu1 %vm357_vm2, %v5451_v27 }
  0x80   : > { %4216 = vmatprep.mubr.msk.f32.mxu1 %vm357_vm2, %v5235_v29 }
  0x81   : > { %4113 = vmatmul.mubr.msk.f32.vlgmr.msra.gmra.mrb[0].mxu0 %vm357_vm2, %v5071_v28 }
  0x82   : > { %4115 = vmatprep.mubr.msk.f32.mxu0 %vm357_vm2, %v5075_v30  ;;  %4241 = vmatpush3.msk.msra.mxu0 %vm390_vm0, %v3576_v1 }
  0x83   : > { %4217 = vmatmul.mubr.msk.f32.vlgmr.msra.gmra.mrb[0].mxu1 %vm357_vm2, %v5258_v19  ;;  %4266 = vmatprep.subr.msk.mxu0 %vm390_vm0, %v3594_v45 }
  0x84   : > { %4345 = vmatpush3.msk.msra.mxu1 %vm390_vm0, %v3664_v21  ;;  %4219 = vmatprep.mubr.msk.f32.mxu1 %vm357_vm2, %v5262_v37 }
  0x85   : > { %4116 = vmatmul.mubr.msk.f32.gmra.mrb[2].mxu0 %vm357_vm2, %v5099_v36  ;;  %4370 = vmatprep.subr.msk.mxu1 %vm390_vm0, %v3682_v47 }
  0x86   : > { %4118 = vmatprep.mubr.msk.f32.mxu0 %vm357_vm2, %v5103_v38 }
  0x87   : > { %4220 = vmatmul.mubr.msk.f32.gmra.mrb[2].mxu1 %vm357_vm2, %v5277_v22 }
  0x88   : > { %4222 = vmatprep.mubr.msk.f32.mxu1 %vm357_vm2, %v5281_v40 }
  0x89   : > { %4119 = vmatmul.mubr.msk.f32.gmra.mrb[4].mxu0 %vm357_vm2, %v5125_v44 }
  0x8a   : > { %4121 = vmatprep.mubr.msk.f32.mxu0 %vm357_vm2, %v5129_v46 }
  0x8b   : > { %4223 = vmatmul.mubr.msk.f32.gmra.mrb[4].mxu1 %vm357_vm2, %v5294_v33 }
  0x8c   : > { %4225 = vmatprep.mubr.msk.f32.mxu1 %vm357_vm2, %v5298_v53 }
  0x8d   : > { %4122 = vmatmul.mubr.msk.f32.gmra.mrb[6].mxu0 %vm357_vm2, %v5151_v52 }
  0x8e   : > { %4124 = vmatprep.mubr.msk.f32.mxu0 %vm357_vm2, %v5155_v54 }
  0x8f   : > { %4226 = vmatmul.mubr.msk.f32.gmra.mrb[6].mxu1 %vm357_vm2, %v5311_v41 }
  0x90   : > { %4228 = vmatprep.mubr.msk.f32.mxu1 %vm357_vm2, %v5315_v63 }
  0x91   : > { %4125 = vmatmul.mubr.msk.f32.gmra.mrb[8].mxu0 %vm357_vm2, %v5177_v60 }
  0x92   : > { %4127 = vmatprep.mubr.msk.f32.mxu0 %vm357_vm2, %v5181_v62 }
  0x93   : > { %4229 = vmatmul.mubr.msk.f32.gmra.mrb[8].mxu1 %vm357_vm2, %v5328_v49 }
  0x94   : > { %4231 = vmatprep.mubr.msk.f32.mxu1 %vm357_vm2, %v5332_v10 }
  0x95   : > { %4128 = vmatmul.mubr.msk.f32.gmra.mrb[10].mxu0 %vm357_vm2, %v5197_v2 }
  0x96   : > { %4130 = vmatprep.mubr.msk.f32.mxu0 %vm357_vm2, %v5201_v8 }
  0x97   : > { %4232 = vmatmul.mubr.msk.f32.gmra.mrb[10].mxu1 %vm357_vm2, %v5345_v57 }
  0x98   : > { %4234 = vmatprep.mubr.msk.f32.mxu1 %vm357_vm2, %v5349_v20 }
  0x99   : > { %4131 = vmatmul.mubr.msk.f32.gmra.mrb[12].mxu0 %vm357_vm2, %v5215_v14 }
  0x9a   : > { %4133 = vmatprep.mubr.msk.f32.mxu0 %vm357_vm2, %v5440_v39 }
  0x9b   : > { %4235 = vmatmul.mubr.msk.f32.gmra.mrb[12].mxu1 %vm357_vm2, %v5360_v7 }
  0x9c   : > { %4237 = vmatprep.mubr.msk.f32.mxu1 %vm357_vm2, %v5522_v61 }
  0x9d   : > { %4134 = vmatmul.mubr.msk.f32.gmra.mrb[14].mxu0 %vm357_vm2, %v5451_v27 }
  0x9e   : > { %4242 = vmatprep.mubr.msk.f32.mxu0 %vm357_vm2, %v5012_v11  ;;  %v3700_v11 = vld [vmem:[%s6116_s1 + $0x38] sm:$0xf] }
  0x9f   : > { %4238 = vmatmul.mubr.msk.f32.gmra.mrb[14].mxu1 %vm357_vm2, %v5533_v0 }
  0xa0   : > { %4346 = vmatprep.mubr.msk.f32.mxu1 %vm357_vm2, %v5049_v23 }
  0xa1   : > { %4243 = vmatmul.mubr.msk.f32.vlgmr.msra.gmra.mrb[16].mxu0 %vm357_vm2, %v5015_v12  ;;  %v3630_v12 = vld [vmem:[%s6116_s1 + $0x2c] sm:$0xf] }
  0xa2   : > { %4245 = vmatprep.mubr.msk.f32.mxu0 %vm357_vm2, %v5025_v16  ;;  %4267 = vmatpush3.msk.msra.mxu0 %vm390_vm0, %v3594_v45 }
  0xa3   : > { %4347 = vmatmul.mubr.msk.f32.vlgmr.msra.gmra.mrb[16].mxu1 %vm357_vm2, %v5071_v28  ;;  %4292 = vmatprep.subr.msk.mxu0 %vm390_vm0, %v3612_v3 }
  0xa4   : > { %4371 = vmatpush3.msk.msra.mxu1 %vm390_vm0, %v3682_v47  ;;  %4349 = vmatprep.mubr.msk.f32.mxu1 %vm357_vm2, %v5075_v30 }
  0xa5   : > { %4246 = vmatmul.mubr.msk.f32.gmra.mrb[18].mxu0 %vm357_vm2, %v5028_v17  ;;  %4396 = vmatprep.subr.msk.mxu1 %vm390_vm0, %v3700_v11 }
  0xa6   : > { %4248 = vmatprep.mubr.msk.f32.mxu0 %vm357_vm2, %v5053_v25 }
  0xa7   : > { %4350 = vmatmul.mubr.msk.f32.gmra.mrb[18].mxu1 %vm357_vm2, %v5099_v36 }
  0xa8   : > { %4352 = vmatprep.mubr.msk.f32.mxu1 %vm357_vm2, %v5103_v38 }
  0xa9   : > { %4249 = vmatmul.mubr.msk.f32.gmra.mrb[20].mxu0 %vm357_vm2, %v5056_v26 }
  0xaa   : > { %4251 = vmatprep.mubr.msk.f32.mxu0 %vm357_vm2, %v5087_v34 }
  0xab   : > { %4353 = vmatmul.mubr.msk.f32.gmra.mrb[20].mxu1 %vm357_vm2, %v5125_v44 }
  0xac   : > { %4355 = vmatprep.mubr.msk.f32.mxu1 %vm357_vm2, %v5129_v46 }
  0xad   : > { %4252 = vmatmul.mubr.msk.f32.gmra.mrb[22].mxu0 %vm357_vm2, %v5090_v35 }
  0xae   : > { %4254 = vmatprep.mubr.msk.f32.mxu0 %vm357_vm2, %v5113_v42 }
  0xaf   : > { %4356 = vmatmul.mubr.msk.f32.gmra.mrb[22].mxu1 %vm357_vm2, %v5151_v52 }
  0xb0   : > { %4358 = vmatprep.mubr.msk.f32.mxu1 %vm357_vm2, %v5155_v54 }
  0xb1   : > { %4255 = vmatmul.mubr.msk.f32.gmra.mrb[24].mxu0 %vm357_vm2, %v5116_v43 }
  0xb2   : > { %4257 = vmatprep.mubr.msk.f32.mxu0 %vm357_vm2, %v5139_v50 }
  0xb3   : > { %4359 = vmatmul.mubr.msk.f32.gmra.mrb[24].mxu1 %vm357_vm2, %v5177_v60 }
  0xb4   : > { %4361 = vmatprep.mubr.msk.f32.mxu1 %vm357_vm2, %v5181_v62 }
  0xb5   : > { %4258 = vmatmul.mubr.msk.f32.gmra.mrb[26].mxu0 %vm357_vm2, %v5142_v51 }
  0xb6   : > { %4260 = vmatprep.mubr.msk.f32.mxu0 %vm357_vm2, %v5165_v58 }
  0xb7   : > { %4362 = vmatmul.mubr.msk.f32.gmra.mrb[26].mxu1 %vm357_vm2, %v5197_v2 }
  0xb8   : > { %4364 = vmatprep.mubr.msk.f32.mxu1 %vm357_vm2, %v5201_v8 }
  0xb9   : > { %4261 = vmatmul.mubr.msk.f32.gmra.mrb[28].mxu0 %vm357_vm2, %v5168_v59 }
  0xba   : > { %4263 = vmatprep.mubr.msk.f32.mxu0 %vm357_vm2, %v5417_v24 }
  0xbb   : > { %4365 = vmatmul.mubr.msk.f32.gmra.mrb[28].mxu1 %vm357_vm2, %v5215_v14 }
  0xbc   : > { %4367 = vmatprep.mubr.msk.f32.mxu1 %vm357_vm2, %v5440_v39 }
  0xbd   : > { %4264 = vmatmul.mubr.msk.f32.gmra.mrb[30].mxu0 %vm357_vm2, %v5420_v31 }
  0xbe   : > { %4268 = vmatprep.mubr.msk.f32.mxu0 %vm357_vm2, %v5049_v23  ;;  %v3718_v23 = vld [vmem:[%s6116_s1 + $0x3c] sm:$0xf] }
  0xbf   : > { %4368 = vmatmul.mubr.msk.f32.gmra.mrb[30].mxu1 %vm357_vm2, %v5451_v27 }
  0xc0   : > { %4372 = vmatprep.mubr.msk.f32.mxu1 %vm357_vm2, %v5235_v29 }
  0xc1   : > { %4269 = vmatmul.mubr.msk.f32.vlgmr.msra.gmra.mrb[16].mxu0 %vm357_vm2, %v5071_v28  ;;  %v216_v28 = vld [vmem:[%s4992_s4 + $0xe8] sm:$0x3] }
  0xc2   : > { %4271 = vmatprep.mubr.msk.f32.mxu0 %vm357_vm2, %v5075_v30  ;;  %4293 = vmatpush3.msk.msra.mxu0 %vm390_vm0, %v3612_v3 }
  0xc3   : > { %4373 = vmatmul.mubr.msk.f32.vlgmr.msra.gmra.mrb[16].mxu1 %vm357_vm2, %v5258_v19  ;;  %4318 = vmatprep.subr.msk.mxu0 %vm390_vm0, %v3630_v12 }
  0xc4   : > { %4397 = vmatpush3.msk.msra.mxu1 %vm390_vm0, %v3700_v11  ;;  %4375 = vmatprep.mubr.msk.f32.mxu1 %vm357_vm2, %v5262_v37 }
  0xc5   : > { %4272 = vmatmul.mubr.msk.f32.gmra.mrb[18].mxu0 %vm357_vm2, %v5099_v36  ;;  %4422 = vmatprep.subr.msk.mxu1 %vm390_vm0, %v3718_v23 }
  0xc6   : > { %4274 = vmatprep.mubr.msk.f32.mxu0 %vm357_vm2, %v5103_v38 }
  0xc7   : > { %4376 = vmatmul.mubr.msk.f32.gmra.mrb[18].mxu1 %vm357_vm2, %v5277_v22 }
  0xc8   : > { %4378 = vmatprep.mubr.msk.f32.mxu1 %vm357_vm2, %v5281_v40 }
  0xc9   : > { %4275 = vmatmul.mubr.msk.f32.gmra.mrb[20].mxu0 %vm357_vm2, %v5125_v44 }
  0xca   : > { %4277 = vmatprep.mubr.msk.f32.mxu0 %vm357_vm2, %v5129_v46 }
  0xcb   : > { %4379 = vmatmul.mubr.msk.f32.gmra.mrb[20].mxu1 %vm357_vm2, %v5294_v33 }
  0xcc   : > { %4381 = vmatprep.mubr.msk.f32.mxu1 %vm357_vm2, %v5298_v53 }
  0xcd   : > { %4278 = vmatmul.mubr.msk.f32.gmra.mrb[22].mxu0 %vm357_vm2, %v5151_v52 }
  0xce   : > { %4280 = vmatprep.mubr.msk.f32.mxu0 %vm357_vm2, %v5155_v54 }
  0xcf   : > { %4382 = vmatmul.mubr.msk.f32.gmra.mrb[22].mxu1 %vm357_vm2, %v5311_v41 }
  0xd0   : > { %4384 = vmatprep.mubr.msk.f32.mxu1 %vm357_vm2, %v5315_v63 }
  0xd1   : > { %4281 = vmatmul.mubr.msk.f32.gmra.mrb[24].mxu0 %vm357_vm2, %v5177_v60 }
  0xd2   : > { %4283 = vmatprep.mubr.msk.f32.mxu0 %vm357_vm2, %v5181_v62 }
  0xd3   : > { %4385 = vmatmul.mubr.msk.f32.gmra.mrb[24].mxu1 %vm357_vm2, %v5328_v49 }
  0xd4   : > { %4387 = vmatprep.mubr.msk.f32.mxu1 %vm357_vm2, %v5332_v10 }
  0xd5   : > { %4284 = vmatmul.mubr.msk.f32.gmra.mrb[26].mxu0 %vm357_vm2, %v5197_v2 }
  0xd6   : > { %4286 = vmatprep.mubr.msk.f32.mxu0 %vm357_vm2, %v5201_v8 }
  0xd7   : > { %4388 = vmatmul.mubr.msk.f32.gmra.mrb[26].mxu1 %vm357_vm2, %v5345_v57 }
  0xd8   : > { %4390 = vmatprep.mubr.msk.f32.mxu1 %vm357_vm2, %v5349_v20 }
  0xd9   : > { %4287 = vmatmul.mubr.msk.f32.gmra.mrb[28].mxu0 %vm357_vm2, %v5215_v14 }
  0xda   : > { %4289 = vmatprep.mubr.msk.f32.mxu0 %vm357_vm2, %v5440_v39 }
  0xdb   : > { %4391 = vmatmul.mubr.msk.f32.gmra.mrb[28].mxu1 %vm357_vm2, %v5360_v7 }
  0xdc   : > { %4393 = vmatprep.mubr.msk.f32.mxu1 %vm357_vm2, %v5522_v61 }
  0xdd   : > { %4290 = vmatmul.mubr.msk.f32.gmra.mrb[30].mxu0 %vm357_vm2, %v5451_v27 }
  0xde   : > { %4294 = vmatprep.mubr.msk.f32.mxu0 %vm357_vm2, %v5025_v16  ;;  %v214_v16 = vld [vmem:[%s4992_s4 + $0xd8] sm:$0xff] }
  0xdf   : > { %4394 = vmatmul.mubr.msk.f32.gmra.mrb[30].mxu1 %vm357_vm2, %v5533_v0 }
  0xe0   : > { %4398 = vmatprep.mubr.msk.f32.mxu1 %vm357_vm2, %v5075_v30 }
  0xe1   : > { %4295 = vmatmul.mubr.msk.f32.vlgmr.msra.gmra.mrb[16].mxu0 %vm357_vm2, %v5028_v17  ;;  %v215_v17 = vld [vmem:[%s4992_s4 + $0xe0] sm:$0xff]  ;;  %s175_s4 = sand.u32 1, %s4848_s13  }
  0xe2   : > { %4297 = vmatprep.mubr.msk.f32.mxu0 %vm357_vm2, %v5053_v25  ;;  %4319 = vmatpush3.msk.msra.mxu0 %vm390_vm0, %v3630_v12  ;;  %v339_v25 = vrot.slane %v214_v16, 1  ;;  %s3428_s28 = sshll.u32 %s175_s4, 8  ;;  %s6062_s24 = scalar_lea.sflag [#allocation3], %s175_s4 }
  0xe3   : > { %4399 = vmatmul.mubr.msk.f32.vlgmr.msra.gmra.mrb[16].mxu1 %vm357_vm2, %v5099_v36  ;;  %s5827_s6 = scalar_lea.vmem [#allocation2], %s3428_s28  ;;  %s4875_s28 = smov [#allocation2]  }
  0xe4   : > { %4423 = vmatpush3.msk.msra.mxu1 %vm390_vm0, %v3718_v23  ;;  %4401 = vmatprep.mubr.msk.f32.mxu1 %vm357_vm2, %v5103_v38  ;;  %s3345_s20 = sshll.u32 %s5827_s6, 4  ;;  %s4782_s29 = sshll.u32 %s4875_s28, 4  ;;  %s6054_s20 = int_to_ptr.vmem [resolvable:$true] %s3345_s20  ;;  %s4783_s29 = int_to_ptr.vmem [resolvable:$false] %s4782_s29 }
  0xe5   : > { %4298 = vmatmul.mubr.msk.f32.gmra.mrb[18].mxu0 %vm357_vm2, %v5056_v26  ;;  %v340_v26 = vrot.slane %v215_v17, 1  ;;  %s4778_s27 = scalar_lea.vmem %s6054_s20, 4096  ;;  %s4784_s5 = scalar_lea.vmem %s4783_s29, 8192 }
  0xe6   : > { %4300 = vmatprep.mubr.msk.f32.mxu0 %vm357_vm2, %v5087_v34  ;;  %v342_v34 = vrot.slane %v216_v28, 1  ;;  %p4779_p13 = scmp.ne.s32.totalorder %s6054_s20, %s4778_s27  ;;  %p4785_p2 = scmp.lt.s32.totalorder %s6054_s20, %s4783_s29 }
  0xe7   : > { %4402 = vmatmul.mubr.msk.f32.gmra.mrb[18].mxu1 %vm357_vm2, %v5125_v44  ;;  %p4786_p4 = scmp.lt.s32.totalorder %s4784_s5, %s4778_s27 }
  0xe8   : > { %4404 = vmatprep.mubr.msk.f32.mxu1 %vm357_vm2, %v5129_v46  ;;  %p4780_p0 = pnand %p4779_p13, %p4948_p3 }
  0xe9   : > { %4301 = vmatmul.mubr.msk.f32.gmra.mrb[20].mxu0 %vm357_vm2, %v5090_v35  ;;  %v341_v35 = vsel %vm241_vm1, %v339_v25, %v340_v26  ;;  %p4787_p5 = por %p4786_p4, %p4785_p2 }
  0xea   : > { %4303 = vmatprep.mubr.msk.f32.mxu0 %vm357_vm2, %v5113_v42  ;;  %v343_v42 = vsel %vm241_vm1, %v340_v26, %v342_v34  ;;  %p4781_p1 = pneg %p4780_p0 }
  0xeb   : > { %4405 = vmatmul.mubr.msk.f32.gmra.mrb[20].mxu1 %vm357_vm2, %v5151_v52 }
  0xec   : > { %4407 = vmatprep.mubr.msk.f32.mxu1 %vm357_vm2, %v5155_v54  ;;  %p4788_p6 = pnand %p4787_p5, %p4781_p1 }
  0xed   : > { %4304 = vmatmul.mubr.msk.f32.gmra.mrb[22].mxu0 %vm357_vm2, %v5116_v43 }
  0xee   : > { %4306 = vmatprep.mubr.msk.f32.mxu0 %vm357_vm2, %v5139_v50 }
  0xef   : > { %4408 = vmatmul.mubr.msk.f32.gmra.mrb[22].mxu1 %vm357_vm2, %v5177_v60 }
  0xf0   : > { %4410 = vmatprep.mubr.msk.f32.mxu1 %vm357_vm2, %v5181_v62 }
  0xf1   : > { %4307 = vmatmul.mubr.msk.f32.gmra.mrb[24].mxu0 %vm357_vm2, %v5142_v51 }
  0xf2   : > { %4309 = vmatprep.mubr.msk.f32.mxu0 %vm357_vm2, %v5165_v58 }
  0xf3   : > { %4411 = vmatmul.mubr.msk.f32.gmra.mrb[24].mxu1 %vm357_vm2, %v5197_v2 }
  0xf4   : > { %4413 = vmatprep.mubr.msk.f32.mxu1 %vm357_vm2, %v5201_v8 }
  0xf5   : > { %4310 = vmatmul.mubr.msk.f32.gmra.mrb[26].mxu0 %vm357_vm2, %v5168_v59 }
  0xf6   : > { %4312 = vmatprep.mubr.msk.f32.mxu0 %vm357_vm2, %v5417_v24 }
  0xf7   : > { %4414 = vmatmul.mubr.msk.f32.gmra.mrb[26].mxu1 %vm357_vm2, %v5215_v14 }
  0xf8   : > { %4416 = vmatprep.mubr.msk.f32.mxu1 %vm357_vm2, %v5440_v39 }
  0xf9   : > { %4313 = vmatmul.mubr.msk.f32.gmra.mrb[28].mxu0 %vm357_vm2, %v5420_v31 }
  0xfa   : > { %4315 = vmatprep.mubr.msk.f32.mxu0 %vm357_vm2, %v214_v16 }
  0xfb   : > { %4417 = vmatmul.mubr.msk.f32.gmra.mrb[28].mxu1 %vm357_vm2, %v5451_v27 }
  0xfc   : > { %4419 = vmatprep.mubr.msk.f32.mxu1 %vm357_vm2, %v341_v35 }
  0xfd   : > { %4316 = vmatmul.mubr.msk.f32.gmra.mrb[30].mxu0 %vm357_vm2, %v215_v17 }
  0xfe   : > { %4320 = vmatprep.mubr.msk.f32.mxu0 %vm357_vm2, %v5075_v30  ;;  %v344_v30 = vrot.slane %v214_v16, 2 }
  0xff   : > { %4420 = vmatmul.mubr.msk.f32.gmra.mrb[30].mxu1 %vm357_vm2, %v343_v42 }
 0x100   : > { %4424 = vmatprep.mubr.msk.f32.mxu1 %vm357_vm2, %v5262_v37 }
 0x101   : > { %4321 = vmatmul.mubr.msk.f32.vlgmr.msra.gmra.mrb[16].mxu0 %vm357_vm2, %v5099_v36  ;;  %v345_v36 = vrot.slane %v215_v17, 2 }
 0x102   : > { %4323 = vmatprep.mubr.msk.f32.mxu0 %vm357_vm2, %v5103_v38  ;;  %v347_v38 = vrot.slane %v216_v28, 2 }
 0x103   : > { %4425 = vmatmul.mubr.msk.f32.vlgmr.msra.gmra.mrb[16].mxu1 %vm357_vm2, %v5277_v22  ;;  %v346_v43 = vsel %vm282_vm3, %v344_v30, %v345_v36 }
 0x104   : > { %4427 = vmatprep.mubr.msk.f32.mxu1 %vm357_vm2, %v5281_v40 }
 0x105   : > { %4324 = vmatmul.mubr.msk.f32.gmra.mrb[18].mxu0 %vm357_vm2, %v5125_v44  ;;  %v348_v44 = vsel %vm282_vm3, %v345_v36, %v347_v38 }
 0x106   : > { %4326 = vmatprep.mubr.msk.f32.mxu0 %vm357_vm2, %v5129_v46  ;;  %v5822_v46 = vld [vmem:[%s6117_s2] ss:$0 sm:$0xff] }
 0x107   : > { %4428 = vmatmul.mubr.msk.f32.gmra.mrb[18].mxu1 %vm357_vm2, %v5294_v33 }
 0x108   : > { %4430 = vmatprep.mubr.msk.f32.mxu1 %vm357_vm2, %v5298_v53 }
 0x109   : > { %4327 = vmatmul.mubr.msk.f32.gmra.mrb[20].mxu0 %vm357_vm2, %v5151_v52 }
 0x10a   : > { %4329 = vmatprep.mubr.msk.f32.mxu0 %vm357_vm2, %v5155_v54 }
 0x10b   : > { %4431 = vmatmul.mubr.msk.f32.gmra.mrb[20].mxu1 %vm357_vm2, %v5311_v41 }
 0x10c   : > { %4433 = vmatprep.mubr.msk.f32.mxu1 %vm357_vm2, %v5315_v63 }
 0x10d   : > { %4330 = vmatmul.mubr.msk.f32.gmra.mrb[22].mxu0 %vm357_vm2, %v5177_v60 }
 0x10e   : > { %4332 = vmatprep.mubr.msk.f32.mxu0 %vm357_vm2, %v5181_v62 }
 0x10f   : > { %4434 = vmatmul.mubr.msk.f32.gmra.mrb[22].mxu1 %vm357_vm2, %v5328_v49 }
 0x110   : > { %4436 = vmatprep.mubr.msk.f32.mxu1 %vm357_vm2, %v5332_v10 }
 0x111   : > { %4333 = vmatmul.mubr.msk.f32.gmra.mrb[24].mxu0 %vm357_vm2, %v5197_v2 }
 0x112   : > { %4335 = vmatprep.mubr.msk.f32.mxu0 %vm357_vm2, %v5201_v8 }
 0x113   : > { %4437 = vmatmul.mubr.msk.f32.gmra.mrb[24].mxu1 %vm357_vm2, %v5345_v57 }
 0x114   : > { %4439 = vmatprep.mubr.msk.f32.mxu1 %vm357_vm2, %v5349_v20 }
 0x115   : > { %4336 = vmatmul.mubr.msk.f32.gmra.mrb[26].mxu0 %vm357_vm2, %v5215_v14 }
 0x116   : > { %4338 = vmatprep.mubr.msk.f32.mxu0 %vm357_vm2, %v5440_v39 }
 0x117   : > { %4440 = vmatmul.mubr.msk.f32.gmra.mrb[26].mxu1 %vm357_vm2, %v5360_v7 }
 0x118   : > { %4442 = vmatprep.mubr.msk.f32.mxu1 %vm357_vm2, %v5522_v61 }
 0x119   : > { %4339 = vmatmul.mubr.msk.f32.gmra.mrb[28].mxu0 %vm357_vm2, %v5451_v27 }
 0x11a   : > { %4341 = vmatprep.mubr.msk.f32.mxu0 %vm357_vm2, %v341_v35 }
 0x11b   : > { %4443 = vmatmul.mubr.msk.f32.gmra.mrb[28].mxu1 %vm357_vm2, %v5533_v0 }
 0x11c   : > { %4445 = vmatprep.mubr.msk.f32.mxu1 %vm357_vm2, %v346_v43 }
 0x11d   : > { %4342 = vmatmul.mubr.msk.f32.gmra.mrb[30].mxu0 %vm357_vm2, %v343_v42 }
 0x11f   : > { %4446 = vmatmul.mubr.msk.f32.gmra.mrb[30].mxu1 %vm357_vm2, %v348_v44 }
 0x154   : > { %v4114_v50 = vpop.f32.mrb[0].mxu0 }
 0x155   : > { %v4448_v51 = vadd.f32 %v4114_v50, %v5822_v46  ;;  %v998_v52 = vpop.f32.mrb[1].mxu0 }
 0x156   : > { %v4218_v54 = vpop.f32.mrb[0].mxu1  ;;  %v4449_v58 = vadd.f32 %v5822_v46, %v998_v52 }
 0x157   : > { %v4464_v59 = vadd.f32 %v4218_v54, %v5822_v46  ;;  %v1715_v60 = vpop.f32.mrb[1].mxu1  ;;  %1095 = vst.msk [vmem:[%s5827_s6 + $0x8] sm:$0xff] %vm1093_vm4, %v4448_v51 }
 0x158   : > { %1094 = vst.msk [vmem:[%s5827_s6] sm:$0xff] %vm1093_vm4, %v4449_v58  ;;  %v4117_v62 = vpop.f32.mrb[2].mxu0  ;;  %v4465_v19 = vadd.f32 %v5822_v46, %v1715_v60 }
 0x159   : > { %1828 = vrot.lane.b32.xlu0 %v4464_v59, %s4874_s7  ;;  %v4450_v2 = vadd.f32 %v4117_v62, %v5822_v46  ;;  %v1008_v8 = vpop.f32.mrb[3].mxu0 }
 0x15a   : > { %v4221_v14 = vpop.f32.mrb[2].mxu1  ;;  %v4451_v29 = vadd.f32 %v5822_v46, %v1008_v8 }
 0x15b   : > { %v4466_v37 = vadd.f32 %v4221_v14, %v5822_v46  ;;  %v1725_v22 = vpop.f32.mrb[3].mxu1  ;;  %1097 = vst.msk [vmem:[%s5827_s6 + $0x28] sm:$0xff] %vm1093_vm4, %v4450_v2 }
 0x15c   : > { %1096 = vst.msk [vmem:[%s5827_s6 + $0x20] sm:$0xff] %vm1093_vm4, %v4451_v29  ;;  %v4120_v40 = vpop.f32.mrb[4].mxu0  ;;  %v4467_v49 = vadd.f32 %v5822_v46, %v1725_v22 }
 0x15d   : > { %1826 = vrot.lane.b32.xlu0 %v4465_v19, %s4874_s7  ;;  %1832 = vrot.lane.b32.xlu1 %v4466_v37, %s4874_s7  ;;  %v4452_v33 = vadd.f32 %v4120_v40, %v5822_v46  ;;  %v1018_v53 = vpop.f32.mrb[5].mxu0 }
 0x15e   : > { %v4224_v41 = vpop.f32.mrb[4].mxu1  ;;  %v4453_v63 = vadd.f32 %v5822_v46, %v1018_v53 }
 0x15f   : > { %v1735_v9 = vpop.f32.mrb[5].mxu1  ;;  %1099 = vst.msk [vmem:[%s5827_s6 + $0x48] sm:$0xff] %vm1093_vm4, %v4452_v33  ;;  %v4468_v7 = vadd.f32 %v4224_v41, %v5822_v46 }
 0x160   : > { %v4469_v10 = vadd.f32 %v5822_v46, %v1735_v9  ;;  %1098 = vst.msk [vmem:[%s5827_s6 + $0x40] sm:$0xff] %vm1093_vm4, %v4453_v63  ;;  %v4123_v13 = vpop.f32.mrb[6].mxu0 }
 0x161   : > { %1830 = vrot.lane.b32.xlu1 %v4467_v49, %s4874_s7  ;;  %v4454_v5 = vadd.f32 %v4123_v13, %v5822_v46  ;;  %v1028_v57 = vpop.f32.mrb[7].mxu0 }
 0x162   : > { %1834 = vrot.lane.b32.xlu0 %v4469_v10, %s4874_s7  ;;  %v4227_v6 = vpop.f32.mrb[6].mxu1  ;;  %v4455_v20 = vadd.f32 %v5822_v46, %v1028_v57 }
 0x163   : > { %v1745_v1 = vpop.f32.mrb[7].mxu1  ;;  %1101 = vst.msk [vmem:[%s5827_s6 + $0x68] sm:$0xff] %vm1093_vm4, %v4454_v5  ;;  %v4470_v4 = vadd.f32 %v4227_v6, %v5822_v46 }
 0x164   : > { %v4471_v21 = vadd.f32 %v5822_v46, %v1745_v1  ;;  %1100 = vst.msk [vmem:[%s5827_s6 + $0x60] sm:$0xff] %vm1093_vm4, %v4455_v20  ;;  %v4126_v24 = vpop.f32.mrb[8].mxu0 }
 0x165   : > { %1836 = vrot.lane.b32.xlu1 %v4468_v7, %s4874_s7  ;;  %v4456_v31 = vadd.f32 %v4126_v24, %v5822_v46  ;;  %v1038_v18 = vpop.f32.mrb[9].mxu0 }
 0x166   : > { %1838 = vrot.lane.b32.xlu0 %v4471_v21, %s4874_s7  ;;  %v4230_v15 = vpop.f32.mrb[8].mxu1  ;;  %v4457_v32 = vadd.f32 %v5822_v46, %v1038_v18 }
 0x167   : > { %v1755_v39 = vpop.f32.mrb[9].mxu1  ;;  %1103 = vst.msk [vmem:[%s5827_s6 + $0x88] sm:$0xff] %vm1093_vm4, %v4456_v31  ;;  %v4472_v61 = vadd.f32 %v4230_v15, %v5822_v46 }
 0x168   : > { %v4473_v27 = vadd.f32 %v5822_v46, %v1755_v39  ;;  %1102 = vst.msk [vmem:[%s5827_s6 + $0x80] sm:$0xff] %vm1093_vm4, %v4457_v32  ;;  %v4129_v45 = vpop.f32.mrb[10].mxu0 }
 0x169   : > { %1840 = vrot.lane.b32.xlu1 %v4470_v4, %s4874_s7  ;;  %v4458_v47 = vadd.f32 %v4129_v45, %v5822_v46  ;;  %v1048_v48 = vpop.f32.mrb[11].mxu0 }
 0x16a   : > { %1842 = vrot.lane.b32.xlu0 %v4473_v27, %s4874_s7  ;;  %v4233_v55 = vpop.f32.mrb[10].mxu1  ;;  %v4459_v56 = vadd.f32 %v5822_v46, %v1048_v48 }
 0x16b   : > { %v1765_v0 = vpop.f32.mrb[11].mxu1  ;;  %1105 = vst.msk [vmem:[%s5827_s6 + $0xa8] sm:$0xff] %vm1093_vm4, %v4458_v47  ;;  %v4474_v25 = vadd.f32 %v4233_v55, %v5822_v46 }
 0x16c   : > { %v4475_v3 = vadd.f32 %v5822_v46, %v1765_v0  ;;  %1104 = vst.msk [vmem:[%s5827_s6 + $0xa0] sm:$0xff] %vm1093_vm4, %v4459_v56  ;;  %v4132_v11 = vpop.f32.mrb[12].mxu0 }
 0x16d   : > { %1844 = vrot.lane.b32.xlu1 %v4472_v61, %s4874_s7  ;;  %v4460_v12 = vadd.f32 %v4132_v11, %v5822_v46  ;;  %v1058_v23 = vpop.f32.mrb[13].mxu0 }
 0x16e   : > { %1846 = vrot.lane.b32.xlu0 %v4475_v3, %s4874_s7  ;;  %v4236_v16 = vpop.f32.mrb[12].mxu1  ;;  %v4461_v17 = vadd.f32 %v5822_v46, %v1058_v23 }
 0x16f   : > { %v1775_v26 = vpop.f32.mrb[13].mxu1  ;;  %1107 = vst.msk [vmem:[%s5827_s6 + $0xc8] sm:$0xff] %vm1093_vm4, %v4460_v12  ;;  %v4476_v38 = vadd.f32 %v4236_v16, %v5822_v46 }
 0x170   : > { %v4477_v28 = vadd.f32 %v5822_v46, %v1775_v26  ;;  %1106 = vst.msk [vmem:[%s5827_s6 + $0xc0] sm:$0xff] %vm1093_vm4, %v4461_v17  ;;  %v4135_v34 = vpop.f32.mrb[14].mxu0 }
 0x171   : > { %1848 = vrot.lane.b32.xlu1 %v4474_v25, %s4874_s7  ;;  %v4462_v35 = vadd.f32 %v4135_v34, %v5822_v46  ;;  %v1068_v42 = vpop.f32.mrb[15].mxu0 }
 0x172   : > { %1850 = vrot.lane.b32.xlu0 %v4477_v28, %s4874_s7  ;;  %v4239_v30 = vpop.f32.mrb[14].mxu1  ;;  %v4463_v36 = vadd.f32 %v5822_v46, %v1068_v42 }
 0x173   : > { %v1785_v43 = vpop.f32.mrb[15].mxu1  ;;  %1109 = vst.msk [vmem:[%s5827_s6 + $0xe8] sm:$0xff] %vm1093_vm4, %v4462_v35  ;;  %v4478_v50 = vadd.f32 %v4239_v30, %v5822_v46 }
 0x174   : > { %v4479_v44 = vadd.f32 %v5822_v46, %v1785_v43  ;;  %1108 = vst.msk [vmem:[%s5827_s6 + $0xe0] sm:$0xff] %vm1093_vm4, %v4463_v36 }
 0x175   : > { %1852 = vrot.lane.b32.xlu1 %v4476_v38, %s4874_s7 }
 0x176   : > { %1854 = vrot.lane.b32.xlu0 %v4479_v44, %s4874_s7 }
 0x179   : > { %1856 = vrot.lane.b32.xlu1 %v4478_v50, %s4874_s7 }
 0x1cb   : > { %v1829_v51 = vpop.permute.xlu0 %1828 }
 0x1cc   : > { %1876 = vst.msk [vmem:[%s5827_s6 + $0x8] sm:$0xff] %vm1874_vm5, %v1829_v51 }
 0x1cf   : > { %v1827_v52 = vpop.permute.xlu0 %1826  ;;  %v1833_v54 = vpop.permute.xlu1 %1832 }
 0x1d0   : > { %1875 = vst.msk [vmem:[%s5827_s6] sm:$0xff] %vm1874_vm5, %v1827_v52  ;;  %1878 = vst.msk [vmem:[%s5827_s6 + $0x28] sm:$0xff] %vm1874_vm5, %v1833_v54 }
 0x1d3   : > { %v1831_v58 = vpop.permute.xlu1 %1830 }
 0x1d4   : > { %1877 = vst.msk [vmem:[%s5827_s6 + $0x20] sm:$0xff] %vm1874_vm5, %v1831_v58  ;;  %v1835_v59 = vpop.permute.xlu0 %1834  ;;  %v4322_v60 = vpop.f32.mrb[16].mxu0 }
 0x1d5   : > { %1879 = vst.msk [vmem:[%s5827_s6 + $0x40] sm:$0xff] %vm1874_vm5, %v1835_v59  ;;  %v4480_v62 = vadd.f32 %v4322_v60, %v5822_v46  ;;  %v2468_v2 = vpop.f32.mrb[17].mxu0 }
 0x1d6   : > { %v4426_v8 = vpop.f32.mrb[16].mxu1  ;;  %v4481_v14 = vadd.f32 %v5822_v46, %v2468_v2 }
 0x1d7   : > { %v4496_v29 = vadd.f32 %v4426_v8, %v5822_v46  ;;  %v1837_v19 = vpop.permute.xlu1 %1836  ;;  %v3153_v37 = vpop.f32.mrb[17].mxu1  ;;  %3649 = vst.msk [vmem:[%s5827_s6 + $0x18] sm:$0xff] %vm1093_vm4, %v4480_v62 }
 0x1d8   : > { %1880 = vst.msk [vmem:[%s5827_s6 + $0x48] sm:$0xff] %vm1874_vm5, %v1837_v19  ;;  %v4497_v22 = vadd.f32 %v5822_v46, %v3153_v37  ;;  %v1839_v40 = vpop.permute.xlu0 %1838  ;;  %v4325_v33 = vpop.f32.mrb[18].mxu0 }
 0x1d9   : > { %3648 = vst.msk [vmem:[%s5827_s6 + $0x10] sm:$0xff] %vm1093_vm4, %v4481_v14  ;;  %3266 = vrot.lane.b32.xlu1 %v4496_v29, %s4874_s7  ;;  %v4482_v53 = vadd.f32 %v4325_v33, %v5822_v46  ;;  %v2478_v41 = vpop.f32.mrb[19].mxu0 }
 0x1da   : > { %1881 = vst.msk [vmem:[%s5827_s6 + $0x60] sm:$0xff] %vm1874_vm5, %v1839_v40  ;;  %v4429_v63 = vpop.f32.mrb[18].mxu1  ;;  %3264 = vrot.lane.b32.xlu0 %v4497_v22, %s4874_s7  ;;  %v4483_v49 = vadd.f32 %v5822_v46, %v2478_v41 }
 0x1db   : > { %v4498_v9 = vadd.f32 %v4429_v63, %v5822_v46  ;;  %v1841_v10 = vpop.permute.xlu1 %1840  ;;  %v3163_v13 = vpop.f32.mrb[19].mxu1  ;;  %3651 = vst.msk [vmem:[%s5827_s6 + $0x38] sm:$0xff] %vm1093_vm4, %v4482_v53 }
 0x1dc   : > { %1882 = vst.msk [vmem:[%s5827_s6 + $0x68] sm:$0xff] %vm1874_vm5, %v1841_v10  ;;  %v4499_v5 = vadd.f32 %v5822_v46, %v3163_v13  ;;  %v1843_v57 = vpop.permute.xlu0 %1842  ;;  %v4328_v6 = vpop.f32.mrb[20].mxu0 }
 0x1dd   : > { %3650 = vst.msk [vmem:[%s5827_s6 + $0x30] sm:$0xff] %vm1093_vm4, %v4483_v49  ;;  %3270 = vrot.lane.b32.xlu1 %v4498_v9, %s4874_s7  ;;  %v4484_v20 = vadd.f32 %v4328_v6, %v5822_v46  ;;  %v2488_v7 = vpop.f32.mrb[21].mxu0 }
 0x1de   : > { %1883 = vst.msk [vmem:[%s5827_s6 + $0x80] sm:$0xff] %vm1874_vm5, %v1843_v57  ;;  %v4432_v1 = vpop.f32.mrb[20].mxu1  ;;  %3268 = vrot.lane.b32.xlu0 %v4499_v5, %s4874_s7  ;;  %v4485_v21 = vadd.f32 %v5822_v46, %v2488_v7 }
 0x1df   : > { %v4500_v24 = vadd.f32 %v4432_v1, %v5822_v46  ;;  %v1845_v31 = vpop.permute.xlu1 %1844  ;;  %v3173_v18 = vpop.f32.mrb[21].mxu1  ;;  %3653 = vst.msk [vmem:[%s5827_s6 + $0x58] sm:$0xff] %vm1093_vm4, %v4484_v20 }
 0x1e0   : > { %1884 = vst.msk [vmem:[%s5827_s6 + $0x88] sm:$0xff] %vm1874_vm5, %v1845_v31  ;;  %v4501_v15 = vadd.f32 %v5822_v46, %v3173_v18  ;;  %v1847_v32 = vpop.permute.xlu0 %1846  ;;  %v4331_v4 = vpop.f32.mrb[22].mxu0 }
 0x1e1   : > { %3652 = vst.msk [vmem:[%s5827_s6 + $0x50] sm:$0xff] %vm1093_vm4, %v4485_v21  ;;  %3274 = vrot.lane.b32.xlu1 %v4500_v24, %s4874_s7  ;;  %v4486_v39 = vadd.f32 %v4331_v4, %v5822_v46  ;;  %v2498_v27 = vpop.f32.mrb[23].mxu0 }
 0x1e2   : > { %1885 = vst.msk [vmem:[%s5827_s6 + $0xa0] sm:$0xff] %vm1874_vm5, %v1847_v32  ;;  %v4435_v45 = vpop.f32.mrb[22].mxu1  ;;  %3272 = vrot.lane.b32.xlu0 %v4501_v15, %s4874_s7  ;;  %v4487_v47 = vadd.f32 %v5822_v46, %v2498_v27 }
 0x1e3   : > { %v4502_v48 = vadd.f32 %v4435_v45, %v5822_v46  ;;  %v1849_v55 = vpop.permute.xlu1 %1848  ;;  %v3183_v56 = vpop.f32.mrb[23].mxu1  ;;  %3655 = vst.msk [vmem:[%s5827_s6 + $0x78] sm:$0xff] %vm1093_vm4, %v4486_v39 }
 0x1e4   : > { %1886 = vst.msk [vmem:[%s5827_s6 + $0xa8] sm:$0xff] %vm1874_vm5, %v1849_v55  ;;  %v4503_v61 = vadd.f32 %v5822_v46, %v3183_v56  ;;  %v1851_v0 = vpop.permute.xlu0 %1850  ;;  %v4334_v3 = vpop.f32.mrb[24].mxu0 }
 0x1e5   : > { %3654 = vst.msk [vmem:[%s5827_s6 + $0x70] sm:$0xff] %vm1093_vm4, %v4487_v47  ;;  %3278 = vrot.lane.b32.xlu1 %v4502_v48, %s4874_s7  ;;  %v4488_v11 = vadd.f32 %v4334_v3, %v5822_v46  ;;  %v2508_v12 = vpop.f32.mrb[25].mxu0 }
 0x1e6   : > { %1887 = vst.msk [vmem:[%s5827_s6 + $0xc0] sm:$0xff] %vm1874_vm5, %v1851_v0  ;;  %v4438_v23 = vpop.f32.mrb[24].mxu1  ;;  %3276 = vrot.lane.b32.xlu0 %v4503_v61, %s4874_s7  ;;  %v4489_v16 = vadd.f32 %v5822_v46, %v2508_v12 }
 0x1e7   : > { %v4504_v17 = vadd.f32 %v4438_v23, %v5822_v46  ;;  %v1853_v25 = vpop.permute.xlu1 %1852  ;;  %v3193_v26 = vpop.f32.mrb[25].mxu1  ;;  %3657 = vst.msk [vmem:[%s5827_s6 + $0x98] sm:$0xff] %vm1093_vm4, %v4488_v11 }
 0x1e8   : > { %1888 = vst.msk [vmem:[%s5827_s6 + $0xc8] sm:$0xff] %vm1874_vm5, %v1853_v25  ;;  %v4505_v28 = vadd.f32 %v5822_v46, %v3193_v26  ;;  %v1855_v34 = vpop.permute.xlu0 %1854  ;;  %v4337_v35 = vpop.f32.mrb[26].mxu0 }
 0x1e9   : > { %3656 = vst.msk [vmem:[%s5827_s6 + $0x90] sm:$0xff] %vm1093_vm4, %v4489_v16  ;;  %3282 = vrot.lane.b32.xlu1 %v4504_v17, %s4874_s7  ;;  %v4490_v42 = vadd.f32 %v4337_v35, %v5822_v46  ;;  %v2518_v30 = vpop.f32.mrb[27].mxu0 }
 0x1ea   : > { %1889 = vst.msk [vmem:[%s5827_s6 + $0xe0] sm:$0xff] %vm1874_vm5, %v1855_v34  ;;  %v4441_v36 = vpop.f32.mrb[26].mxu1  ;;  %3280 = vrot.lane.b32.xlu0 %v4505_v28, %s4874_s7  ;;  %v4491_v38 = vadd.f32 %v5822_v46, %v2518_v30 }
 0x1eb   : > { %v4506_v43 = vadd.f32 %v4441_v36, %v5822_v46  ;;  %v1857_v44 = vpop.permute.xlu1 %1856  ;;  %v3203_v50 = vpop.f32.mrb[27].mxu1  ;;  %3659 = vst.msk [vmem:[%s5827_s6 + $0xb8] sm:$0xff] %vm1093_vm4, %v4490_v42 }
 0x1ec   : > { %1890 = vst.msk [vmem:[%s5827_s6 + $0xe8] sm:$0xff] %vm1874_vm5, %v1857_v44  ;;  %v4507_v51 = vadd.f32 %v5822_v46, %v3203_v50  ;;  %v4340_v52 = vpop.f32.mrb[28].mxu0 }
 0x1ed   : > { %3658 = vst.msk [vmem:[%s5827_s6 + $0xb0] sm:$0xff] %vm1093_vm4, %v4491_v38  ;;  %3286 = vrot.lane.b32.xlu1 %v4506_v43, %s4874_s7  ;;  %v4492_v54 = vadd.f32 %v4340_v52, %v5822_v46  ;;  %v2528_v58 = vpop.f32.mrb[29].mxu0 }
 0x1ee   : > { %v4444_v59 = vpop.f32.mrb[28].mxu1  ;;  %3284 = vrot.lane.b32.xlu0 %v4507_v51, %s4874_s7  ;;  %v4493_v60 = vadd.f32 %v5822_v46, %v2528_v58 }
 0x1ef   : > { %v4508_v62 = vadd.f32 %v4444_v59, %v5822_v46  ;;  %v3213_v2 = vpop.f32.mrb[29].mxu1  ;;  %3661 = vst.msk [vmem:[%s5827_s6 + $0xd8] sm:$0xff] %vm1093_vm4, %v4492_v54 }
 0x1f0   : > { %v4509_v8 = vadd.f32 %v5822_v46, %v3213_v2  ;;  %3660 = vst.msk [vmem:[%s5827_s6 + $0xd0] sm:$0xff] %vm1093_vm4, %v4493_v60  ;;  %v4343_v14 = vpop.f32.mrb[30].mxu0 }
 0x1f1   : > { %3290 = vrot.lane.b32.xlu1 %v4508_v62, %s4874_s7  ;;  %v4494_v29 = vadd.f32 %v4343_v14, %v5822_v46  ;;  %v2538_v19 = vpop.f32.mrb[31].mxu0 }
 0x1f2   : > { %v4447_v37 = vpop.f32.mrb[30].mxu1  ;;  %3288 = vrot.lane.b32.xlu0 %v4509_v8, %s4874_s7  ;;  %v4495_v22 = vadd.f32 %v5822_v46, %v2538_v19 }
 0x1f3   : > { %v4510_v40 = vadd.f32 %v4447_v37, %v5822_v46  ;;  %v3223_v33 = vpop.f32.mrb[31].mxu1  ;;  %3663 = vst.msk [vmem:[%s5827_s6 + $0xf8] sm:$0xff] %vm1093_vm4, %v4494_v29 }
 0x1f4   : > { %v4511_v53 = vadd.f32 %v5822_v46, %v3223_v33  ;;  %3662 = vst.msk [vmem:[%s5827_s6 + $0xf0] sm:$0xff] %vm1093_vm4, %v4495_v22 }
 0x1f5   : > { %3294 = vrot.lane.b32.xlu1 %v4510_v40, %s4874_s7 }
 0x1f6   : > { %3292 = vrot.lane.b32.xlu0 %v4511_v53, %s4874_s7 }
 0x24b   : > { %v3267_v41 = vpop.permute.xlu1 %3266 }
 0x24c   : > { %3737 = vst.msk [vmem:[%s5827_s6 + $0x18] sm:$0xff] %vm1874_vm5, %v3267_v41  ;;  %v3265_v63 = vpop.permute.xlu0 %3264 }
 0x24d   : > { %3736 = vst.msk [vmem:[%s5827_s6 + $0x10] sm:$0xff] %vm1874_vm5, %v3265_v63 }
 0x24f   : > { %v3271_v49 = vpop.permute.xlu1 %3270 }
 0x250   : > { %3739 = vst.msk [vmem:[%s5827_s6 + $0x38] sm:$0xff] %vm1874_vm5, %v3271_v49  ;;  %v3269_v46 = vpop.permute.xlu0 %3268 }
 0x251   : > { %3738 = vst.msk [vmem:[%s5827_s6 + $0x30] sm:$0xff] %vm1874_vm5, %v3269_v46 }
 0x253   : > { %v3275_v9 = vpop.permute.xlu1 %3274 }
 0x254   : > { %3741 = vst.msk [vmem:[%s5827_s6 + $0x58] sm:$0xff] %vm1874_vm5, %v3275_v9  ;;  %v3273_v10 = vpop.permute.xlu0 %3272 }
 0x255   : > { %3740 = vst.msk [vmem:[%s5827_s6 + $0x50] sm:$0xff] %vm1874_vm5, %v3273_v10 }
 0x257   : > { %v3279_v13 = vpop.permute.xlu1 %3278 }
 0x258   : > { %3743 = vst.msk [vmem:[%s5827_s6 + $0x78] sm:$0xff] %vm1874_vm5, %v3279_v13  ;;  %v3277_v5 = vpop.permute.xlu0 %3276 }
 0x259   : > { %3742 = vst.msk [vmem:[%s5827_s6 + $0x70] sm:$0xff] %vm1874_vm5, %v3277_v5 }
 0x25b   : > { %v3283_v57 = vpop.permute.xlu1 %3282 }
 0x25c   : > { %3745 = vst.msk [vmem:[%s5827_s6 + $0x98] sm:$0xff] %vm1874_vm5, %v3283_v57  ;;  %v3281_v6 = vpop.permute.xlu0 %3280 }
 0x25d   : > { %3744 = vst.msk [vmem:[%s5827_s6 + $0x90] sm:$0xff] %vm1874_vm5, %v3281_v6 }
 0x25f   : > { %v3287_v20 = vpop.permute.xlu1 %3286 }
 0x260   : > { %3747 = vst.msk [vmem:[%s5827_s6 + $0xb8] sm:$0xff] %vm1874_vm5, %v3287_v20  ;;  %v3285_v7 = vpop.permute.xlu0 %3284 }
 0x261   : > { %3746 = vst.msk [vmem:[%s5827_s6 + $0xb0] sm:$0xff] %vm1874_vm5, %v3285_v7 }
 0x263   : > { %v3291_v1 = vpop.permute.xlu1 %3290 }
 0x264   : > { %3749 = vst.msk [vmem:[%s5827_s6 + $0xd8] sm:$0xff] %vm1874_vm5, %v3291_v1  ;;  %v3289_v21 = vpop.permute.xlu0 %3288 }
 0x265   : > { %3748 = vst.msk [vmem:[%s5827_s6 + $0xd0] sm:$0xff] %vm1874_vm5, %v3289_v21 }
 0x267   : > { %v3295_v24 = vpop.permute.xlu1 %3294 }
 0x268   : > { %3751 = vst.msk [vmem:[%s5827_s6 + $0xf8] sm:$0xff] %vm1874_vm5, %v3295_v24  ;;  %v3293_v31 = vpop.permute.xlu0 %3292 }
 0x269   : > { %3750 = vst.msk [vmem:[%s5827_s6 + $0xf0] sm:$0xff] %vm1874_vm5, %v3293_v31 }
 0x26a   : > { %4791 = shalt.err (!%p4788_p6)
}
 0x26b   : > { %s4792_s4 = scalar_lea.hbm %s6052_s21, 4096  ;;  %s4796_s9 = scalar_lea.hbm %s6118_s3, 16384 }
 0x26c   : > { %p4793_p7 = scmp.ne.s32.totalorder %s6052_s21, %s4792_s4  ;;  %p4797_p11 = scmp.lt.u32.totalorder %s6052_s21, %s6118_s3 }
 0x26d   : > { %p4798_p12 = scmp.lt.u32.totalorder %s4796_s9, %s4792_s4  ;;  %p4800_p0 = scmp.lt.u32.totalorder %s4792_s4, %s6052_s21 }
 0x26e   : > { %p4794_p9 = pnand %p4793_p7, %p4948_p3 }
 0x26f   : > { %p4799_p13 = por %p4798_p12, %p4797_p11 }
 0x270   : > { %p4795_p10 = pneg %p4794_p9 }
 0x271   : > { %p4801_p1 = por %p4800_p0, %p4799_p13 }
 0x273   : > { %p4802_p2 = pnand %p4801_p1, %p4795_p10 }
 0x275   : > { %4805 = shalt.err (!%p4802_p2)
}
 0x276   : > { %s4876_s15 = smov 128  }
 0x277   : > { %4705 = dma.vmem_to_hbm [thread:$0]  (%p4948_p3), %s6054_s20, 4096, %s6052_s21, %s6062_s24, %s4876_s15, %s4876_s15, %s4874_s7  }
 0x278 PF: > { %p4711_p4 = scmp.ge.s32.totalorder %s4872_s19, 2  ;;  %s3360_s16 = sand.u32 1, %s4844_s12  }
 0x279   : > { %s3361_s27 = scalar_lea.sflag [#allocation3], %s3360_s16 }
 0x27a   : > { %p4708_p5 = pnand %p4711_p4, %p4957_p8 }
 0x27c   : > { %4839 = dma.done.wait (!%p4708_p5), %s3361_s27, 4096  }
 0x27d   : > { %4841 = vsyncadd (!%p4708_p5), %s3361_s27, 4294963200  ;;  %s16_s19 = sadd.s32 1, %s4872_s19   ;;  %s6121_s12 = smov %s4848_s13 }
 0x27e   : > { %p13_p6 = scmp.ge.s32.totalorder %s16_s19, 6   ;;  %s6122_s13 = smov %s4852_s14 }
 0x27f   : > { %s6123_s14 = smov %s4966_s30  ;;  %s6124_s15 = smov %s4864_s17 }
 0x280   : > { %s6125_s16 = smov %s4868_s18  ;;  %s6126_s17 = smov %s6129_s22 }
 0x281   : > { %s6127_s18 = smov %s6133_s23  ;;  %15 = sbr.rel (!%p13_p6) target bundleno = 5 (0x5), region = 84 }
 0x288   :  { %3366 = vsyncpa [#allocation3], 1 }
 0x289   :  { %3368 = vsyncpa [#allocation3 + $0x1], 1 }

</bundles_post_ra>
